<compile_context>
chip_gen: v7x
topology: tpu7x:2x2x1
jax: 0.10.0
libtpu: 0.0.40
codegen_flags: <defaults>
</compile_context>

<pallas_src>
import jax
import jax.numpy as jnp
from jax import lax
from jax.experimental import pallas as pl
from jax.experimental.pallas import tpu as pltpu


# ------------------------- fused Pallas kernel -------------------------

def _fused_lstm_linear_kernel(x_ref, wih0_ref, wih_ref, whh_ref, b_ref,
                              wlin_ref, blin_ref, out_ref):
    """Fused 5-layer LSTM + Linear.

    x:(T*B, F) time-major rows (row = t*B + b). wih0:(F, 4H). wih:(L-1, H, 4H).
    whh:(L, H, 4H). b:(L, 1, 4H) with b_ih+b_hh pre-summed. wlin:(T, H, OUTF).
    blin:(1, OUTF). out:(B, OUTF). Gate order along 4H is PyTorch's [i, f, g, o].
    """
    L, H, _ = whh_ref.shape
    T = wlin_ref.shape[0]
    B, OUTF = out_ref.shape

    # Layer-0 input projection for all timesteps in one MXU matmul, bias folded.
    xw0 = jnp.dot(x_ref[...], wih0_ref[...],
                  preferred_element_type=jnp.float32) + b_ref[0]      # (T*B, 4H)

    # Hoist the (1,4H) -> (B,4H) bias broadcasts out of the unrolled loop
    # (JAX does not CSE broadcast_in_dim).
    b_bc = [jnp.broadcast_to(b_ref[l], (B, 4 * H)) for l in range(1, L)]

    def cell(gates, c_prev):
        i = jax.nn.sigmoid(gates[:, 0 * H:1 * H])
        f = jax.nn.sigmoid(gates[:, 1 * H:2 * H])
        g = jnp.tanh(gates[:, 2 * H:3 * H])
        o = jax.nn.sigmoid(gates[:, 3 * H:4 * H])
        c_new = f * c_prev + i * g
        h_new = o * jnp.tanh(c_new)
        return h_new, c_new

    zeros = jnp.zeros((B, H), jnp.float32)
    h_st = [zeros] * L          # h_{l, t-1} (also the output passed up to layer l+1)
    c_st = [zeros] * L
    y_acc = jnp.zeros((B, OUTF), jnp.float32)

    # Fully-unrolled wavefront over (timestep, layer): at step s, layer l runs
    # timestep t = s - l; all cells of one step depend only on the previous step.
    for s in range(T + L - 1):
        new_h = list(h_st)
        new_c = list(c_st)
        for l in range(L):
            t = s - l
            if t < 0 or t >= T:
                continue
            if l == 0:
                gates = xw0[t * B:(t + 1) * B, :] + jnp.dot(
                    h_st[0], whh_ref[0], preferred_element_type=jnp.float32)
            else:
                gates = (jnp.dot(h_st[l - 1], wih_ref[l - 1],
                                 preferred_element_type=jnp.float32)
                         + jnp.dot(h_st[l], whh_ref[l],
                                   preferred_element_type=jnp.float32)
                         + b_bc[l - 1])
            h_new, c_new = cell(gates, c_st[l])
            new_h[l] = h_new
            new_c[l] = c_new
            if l == L - 1:
                # Fused Linear epilogue: this timestep's slice of flat @ Wlin.
                y_acc = y_acc + jnp.dot(h_new, wlin_ref[t],
                                        preferred_element_type=jnp.float32)
        h_st = new_h
        c_st = new_c

    out_ref[...] = (y_acc + blin_ref[...]).astype(out_ref.dtype)


# ------------------------- wrapper -------------------------

def lstm_linear_forward(x, params):
    """Mirrors LSTM_linear_.forward: 5-layer LSTM -> flatten -> Linear -> reshape."""
    B, T, F = x.shape
    lstm = params["lstm"]
    L = len(lstm)
    H = lstm[0][1].shape[0]
    w_lin_t, b_lin = params["linear"]
    OUTF = w_lin_t.shape[1]

    # Kernel-ready packing (layout plumbing, outside the kernel).
    x_tm = jnp.swapaxes(x, 0, 1).reshape(T * B, F)            # time-major rows
    wih0 = lstm[0][0]                                         # (F, 4H)
    wih_rest = jnp.stack([lstm[l][0] for l in range(1, L)])   # (L-1, H, 4H)
    whh = jnp.stack([lstm[l][1] for l in range(L)])           # (L, H, 4H)
    b = jnp.stack([lstm[l][2] for l in range(L)])             # (L, 1, 4H)
    wlin = w_lin_t.reshape(T, H, OUTF)                        # (T, H, OUTF)

    y = pl.pallas_call(
        _fused_lstm_linear_kernel,
        out_shape=jax.ShapeDtypeStruct((B, OUTF), jnp.float32),
        in_specs=[pl.BlockSpec(memory_space=pltpu.MemorySpace.VMEM)] * 7,
        out_specs=pl.BlockSpec(memory_space=pltpu.MemorySpace.VMEM),
    )(x_tm, wih0, wih_rest, whh, b, wlin, b_lin)
    # TODO(synk): on v7x a batch-parallel grid could use both TensorCores, but at
    # B=2 it would serialize the recurrence on single-TC v5e/v6e, so it is omitted.
    return y.reshape(B, OUTF // F, F)


def init_params(key, inputs, outputs, features, hidden, num_layers=5):
    """Deterministic init matching PyTorch shapes (uniform +/- 1/sqrt(fan))."""
    params = {"lstm": []}
    k = 1.0 / float(jnp.sqrt(float(hidden)))
    keys = jax.random.split(key, num_layers * 4 + 2)
    idx = 0
    for layer in range(num_layers):
        in_dim = features if layer == 0 else hidden
        wih = jax.random.uniform(keys[idx], (4 * hidden, in_dim), jnp.float32, -k, k); idx += 1
        whh = jax.random.uniform(keys[idx], (4 * hidden, hidden), jnp.float32, -k, k); idx += 1
        bih = jax.random.uniform(keys[idx], (4 * hidden,), jnp.float32, -k, k); idx += 1
        bhh = jax.random.uniform(keys[idx], (4 * hidden,), jnp.float32, -k, k); idx += 1
        params["lstm"].append((wih.T, whh.T, (bih + bhh).reshape(1, 4 * hidden)))
    in_f = inputs * hidden
    out_f = outputs * features
    kl = 1.0 / float(jnp.sqrt(float(in_f)))
    w = jax.random.uniform(keys[idx], (out_f, in_f), jnp.float32, -kl, kl); idx += 1
    bl = jax.random.uniform(keys[idx], (out_f,), jnp.float32, -kl, kl)
    params["linear"] = (w.T, bl.reshape(1, out_f))
    return params


# ------------------------- pure-JAX reference -------------------------

def _ref_forward(x, params):
    B, T, F = x.shape
    h_seq = x
    for (wih_t, whh_t, b) in params["lstm"]:
        H = whh_t.shape[0]

        def cell(carry, x_t):
            h, c = carry
            gates = x_t @ wih_t + h @ whh_t + b[0]
            i, f, g, o = jnp.split(gates, 4, axis=-1)
            i = jax.nn.sigmoid(i); f = jax.nn.sigmoid(f)
            g = jnp.tanh(g); o = jax.nn.sigmoid(o)
            c = f * c + i * g
            h = o * jnp.tanh(c)
            return (h, c), h

        init = (jnp.zeros((B, H), jnp.float32), jnp.zeros((B, H), jnp.float32))
        _, hs = lax.scan(cell, init, jnp.swapaxes(h_seq, 0, 1))
        h_seq = jnp.swapaxes(hs, 0, 1)
    flat = h_seq.reshape(B, -1)
    w_t, bl = params["linear"]
    y = flat @ w_t + bl[0]
    return y.reshape(B, y.shape[1] // F, F)


if __name__ == "__main__":
    B, T, F, H, OUT = 2, 8, 32, 32, 4   # batch, seq(inputs), features, hidden, outputs
    key = jax.random.PRNGKey(0)
    kx, kp = jax.random.split(key)
    x = jax.random.normal(kx, (B, T, F), jnp.float32)
    params = init_params(kp, inputs=T, outputs=OUT, features=F, hidden=H)

    y = lstm_linear_forward(x, params)
    y = jax.block_until_ready(y)

    y_ref = _ref_forward(x, params)
    assert y.shape == (B, OUT, F), y.shape
    assert jnp.allclose(y, y_ref, atol=2e-4, rtol=2e-4), float(jnp.max(jnp.abs(y - y_ref)))
    print("KERNEL_OK")
</pallas_src>

<mosaic_0001>
module attributes {stable_mosaic.version = 11 : i64} {
  func.func @_fused_lstm_linear_kernel(%arg0: memref<16x32xf32, #tpu.memory_space<vmem>>, %arg1: memref<32x128xf32, #tpu.memory_space<vmem>>, %arg2: memref<4x32x128xf32, #tpu.memory_space<vmem>>, %arg3: memref<5x32x128xf32, #tpu.memory_space<vmem>>, %arg4: memref<5x1x128xf32, #tpu.memory_space<vmem>>, %arg5: memref<8x32x128xf32, #tpu.memory_space<vmem>>, %arg6: memref<1x128xf32, #tpu.memory_space<vmem>>, %arg7: memref<2x128xf32, #tpu.memory_space<vmem>>) attributes {dimension_semantics = [], scalar_prefetch = 0 : i64, scratch_operands = 0 : i64, tpu.core_type = #tpu.core_type<tc>} {
    %c0 = arith.constant 0 : index
    %c0_0 = arith.constant 0 : index
    %0 = vector.load %arg0[%c0, %c0_0] : memref<16x32xf32, #tpu.memory_space<vmem>>, vector<16x32xf32>
    %c0_1 = arith.constant 0 : index
    %c0_2 = arith.constant 0 : index
    %1 = vector.load %arg1[%c0_1, %c0_2] : memref<32x128xf32, #tpu.memory_space<vmem>>, vector<32x128xf32>
    %cst = arith.constant dense<0.000000e+00> : vector<16x128xf32>
    %2 = tpu.matmul %0, %1, %cst {dimension_numbers = #tpu.dot_dimension_numbers<[1], [0], [0], [1], [0, 0, 1, 1], [], []>} : vector<16x32xf32>, vector<32x128xf32>, vector<16x128xf32> -> vector<16x128xf32>
    %c0_3 = arith.constant 0 : index
    %c0_4 = arith.constant 0 : index
    %c0_5 = arith.constant 0 : index
    %3 = vector.load %arg4[%c0_3, %c0_4, %c0_5] : memref<5x1x128xf32, #tpu.memory_space<vmem>>, vector<1x1x128xf32>
    %4 = vector.shape_cast %3 : vector<1x1x128xf32> to vector<1x128xf32>
    %5 = vector.broadcast %4 : vector<1x128xf32> to vector<16x128xf32>
    %6 = arith.addf %2, %5 : vector<16x128xf32>
    %c1 = arith.constant 1 : index
    %c0_6 = arith.constant 0 : index
    %c0_7 = arith.constant 0 : index
    %7 = vector.load %arg4[%c1, %c0_6, %c0_7] : memref<5x1x128xf32, #tpu.memory_space<vmem>>, vector<1x1x128xf32>
    %8 = vector.shape_cast %7 : vector<1x1x128xf32> to vector<1x128xf32>
    %9 = vector.shape_cast %8 : vector<1x128xf32> to vector<1x128xf32>
    %10 = vector.broadcast %9 : vector<1x128xf32> to vector<2x128xf32>
    %c2 = arith.constant 2 : index
    %c0_8 = arith.constant 0 : index
    %c0_9 = arith.constant 0 : index
    %11 = vector.load %arg4[%c2, %c0_8, %c0_9] : memref<5x1x128xf32, #tpu.memory_space<vmem>>, vector<1x1x128xf32>
    %12 = vector.shape_cast %11 : vector<1x1x128xf32> to vector<1x128xf32>
    %13 = vector.shape_cast %12 : vector<1x128xf32> to vector<1x128xf32>
    %14 = vector.broadcast %13 : vector<1x128xf32> to vector<2x128xf32>
    %c3 = arith.constant 3 : index
    %c0_10 = arith.constant 0 : index
    %c0_11 = arith.constant 0 : index
    %15 = vector.load %arg4[%c3, %c0_10, %c0_11] : memref<5x1x128xf32, #tpu.memory_space<vmem>>, vector<1x1x128xf32>
    %16 = vector.shape_cast %15 : vector<1x1x128xf32> to vector<1x128xf32>
    %17 = vector.shape_cast %16 : vector<1x128xf32> to vector<1x128xf32>
    %18 = vector.broadcast %17 : vector<1x128xf32> to vector<2x128xf32>
    %c4 = arith.constant 4 : index
    %c0_12 = arith.constant 0 : index
    %c0_13 = arith.constant 0 : index
    %19 = vector.load %arg4[%c4, %c0_12, %c0_13] : memref<5x1x128xf32, #tpu.memory_space<vmem>>, vector<1x1x128xf32>
    %20 = vector.shape_cast %19 : vector<1x1x128xf32> to vector<1x128xf32>
    %21 = vector.shape_cast %20 : vector<1x128xf32> to vector<1x128xf32>
    %22 = vector.broadcast %21 : vector<1x128xf32> to vector<2x128xf32>
    %cst_14 = arith.constant 0.000000e+00 : f32
    %23 = vector.broadcast %cst_14 : f32 to vector<2x32xf32>
    %cst_15 = arith.constant 0.000000e+00 : f32
    %24 = vector.broadcast %cst_15 : f32 to vector<2x128xf32>
    %25 = vector.extract_strided_slice %6 {offsets = [0, 0], sizes = [2, 128], strides = [1, 1]} : vector<16x128xf32> to vector<2x128xf32>
    %c0_16 = arith.constant 0 : index
    %c0_17 = arith.constant 0 : index
    %c0_18 = arith.constant 0 : index
    %26 = vector.load %arg3[%c0_16, %c0_17, %c0_18] : memref<5x32x128xf32, #tpu.memory_space<vmem>>, vector<1x32x128xf32>
    %27 = vector.shape_cast %26 : vector<1x32x128xf32> to vector<32x128xf32>
    %cst_19 = arith.constant dense<0.000000e+00> : vector<2x128xf32>
    %28 = tpu.matmul %23, %27, %cst_19 {dimension_numbers = #tpu.dot_dimension_numbers<[1], [0], [0], [1], [0, 0, 1, 1], [], []>} : vector<2x32xf32>, vector<32x128xf32>, vector<2x128xf32> -> vector<2x128xf32>
    %29 = arith.addf %25, %28 : vector<2x128xf32>
    %30 = vector.extract_strided_slice %29 {offsets = [0, 0], sizes = [2, 32], strides = [1, 1]} : vector<2x128xf32> to vector<2x32xf32>
    %31 = arith.negf %30 : vector<2x32xf32>
    %32 = math.exp %31 : vector<2x32xf32>
    %cst_20 = arith.constant 1.000000e+00 : f32
    %33 = vector.broadcast %cst_20 : f32 to vector<2x32xf32>
    %34 = arith.addf %33, %32 : vector<2x32xf32>
    %35 = arith.divf %33, %34 : vector<2x32xf32>
    %36 = vector.extract_strided_slice %29 {offsets = [0, 32], sizes = [2, 32], strides = [1, 1]} : vector<2x128xf32> to vector<2x32xf32>
    %37 = arith.negf %36 : vector<2x32xf32>
    %38 = math.exp %37 : vector<2x32xf32>
    %cst_21 = arith.constant 1.000000e+00 : f32
    %39 = vector.broadcast %cst_21 : f32 to vector<2x32xf32>
    %40 = arith.addf %39, %38 : vector<2x32xf32>
    %41 = arith.divf %39, %40 : vector<2x32xf32>
    %42 = vector.extract_strided_slice %29 {offsets = [0, 64], sizes = [2, 32], strides = [1, 1]} : vector<2x128xf32> to vector<2x32xf32>
    %43 = math.tanh %42 : vector<2x32xf32>
    %44 = vector.extract_strided_slice %29 {offsets = [0, 96], sizes = [2, 32], strides = [1, 1]} : vector<2x128xf32> to vector<2x32xf32>
    %45 = arith.negf %44 : vector<2x32xf32>
    %46 = math.exp %45 : vector<2x32xf32>
    %cst_22 = arith.constant 1.000000e+00 : f32
    %47 = vector.broadcast %cst_22 : f32 to vector<2x32xf32>
    %48 = arith.addf %47, %46 : vector<2x32xf32>
    %49 = arith.divf %47, %48 : vector<2x32xf32>
    %50 = arith.mulf %41, %23 : vector<2x32xf32>
    %51 = arith.mulf %35, %43 : vector<2x32xf32>
    %52 = arith.addf %50, %51 : vector<2x32xf32>
    %53 = math.tanh %52 : vector<2x32xf32>
    %54 = arith.mulf %49, %53 : vector<2x32xf32>
    %55 = vector.extract_strided_slice %6 {offsets = [2, 0], sizes = [2, 128], strides = [1, 1]} : vector<16x128xf32> to vector<2x128xf32>
    %c0_23 = arith.constant 0 : index
    %c0_24 = arith.constant 0 : index
    %c0_25 = arith.constant 0 : index
    %56 = vector.load %arg3[%c0_23, %c0_24, %c0_25] : memref<5x32x128xf32, #tpu.memory_space<vmem>>, vector<1x32x128xf32>
    %57 = vector.shape_cast %56 : vector<1x32x128xf32> to vector<32x128xf32>
    %cst_26 = arith.constant dense<0.000000e+00> : vector<2x128xf32>
    %58 = tpu.matmul %54, %57, %cst_26 {dimension_numbers = #tpu.dot_dimension_numbers<[1], [0], [0], [1], [0, 0, 1, 1], [], []>} : vector<2x32xf32>, vector<32x128xf32>, vector<2x128xf32> -> vector<2x128xf32>
    %59 = arith.addf %55, %58 : vector<2x128xf32>
    %60 = vector.extract_strided_slice %59 {offsets = [0, 0], sizes = [2, 32], strides = [1, 1]} : vector<2x128xf32> to vector<2x32xf32>
    %61 = arith.negf %60 : vector<2x32xf32>
    %62 = math.exp %61 : vector<2x32xf32>
    %cst_27 = arith.constant 1.000000e+00 : f32
    %63 = vector.broadcast %cst_27 : f32 to vector<2x32xf32>
    %64 = arith.addf %63, %62 : vector<2x32xf32>
    %65 = arith.divf %63, %64 : vector<2x32xf32>
    %66 = vector.extract_strided_slice %59 {offsets = [0, 32], sizes = [2, 32], strides = [1, 1]} : vector<2x128xf32> to vector<2x32xf32>
    %67 = arith.negf %66 : vector<2x32xf32>
    %68 = math.exp %67 : vector<2x32xf32>
    %cst_28 = arith.constant 1.000000e+00 : f32
    %69 = vector.broadcast %cst_28 : f32 to vector<2x32xf32>
    %70 = arith.addf %69, %68 : vector<2x32xf32>
    %71 = arith.divf %69, %70 : vector<2x32xf32>
    %72 = vector.extract_strided_slice %59 {offsets = [0, 64], sizes = [2, 32], strides = [1, 1]} : vector<2x128xf32> to vector<2x32xf32>
    %73 = math.tanh %72 : vector<2x32xf32>
    %74 = vector.extract_strided_slice %59 {offsets = [0, 96], sizes = [2, 32], strides = [1, 1]} : vector<2x128xf32> to vector<2x32xf32>
    %75 = arith.negf %74 : vector<2x32xf32>
    %76 = math.exp %75 : vector<2x32xf32>
    %cst_29 = arith.constant 1.000000e+00 : f32
    %77 = vector.broadcast %cst_29 : f32 to vector<2x32xf32>
    %78 = arith.addf %77, %76 : vector<2x32xf32>
    %79 = arith.divf %77, %78 : vector<2x32xf32>
    %80 = arith.mulf %71, %52 : vector<2x32xf32>
    %81 = arith.mulf %65, %73 : vector<2x32xf32>
    %82 = arith.addf %80, %81 : vector<2x32xf32>
    %83 = math.tanh %82 : vector<2x32xf32>
    %84 = arith.mulf %79, %83 : vector<2x32xf32>
    %c0_30 = arith.constant 0 : index
    %c0_31 = arith.constant 0 : index
    %c0_32 = arith.constant 0 : index
    %85 = vector.load %arg2[%c0_30, %c0_31, %c0_32] : memref<4x32x128xf32, #tpu.memory_space<vmem>>, vector<1x32x128xf32>
    %86 = vector.shape_cast %85 : vector<1x32x128xf32> to vector<32x128xf32>
    %cst_33 = arith.constant dense<0.000000e+00> : vector<2x128xf32>
    %87 = tpu.matmul %54, %86, %cst_33 {dimension_numbers = #tpu.dot_dimension_numbers<[1], [0], [0], [1], [0, 0, 1, 1], [], []>} : vector<2x32xf32>, vector<32x128xf32>, vector<2x128xf32> -> vector<2x128xf32>
    %c1_34 = arith.constant 1 : index
    %c0_35 = arith.constant 0 : index
    %c0_36 = arith.constant 0 : index
    %88 = vector.load %arg3[%c1_34, %c0_35, %c0_36] : memref<5x32x128xf32, #tpu.memory_space<vmem>>, vector<1x32x128xf32>
    %89 = vector.shape_cast %88 : vector<1x32x128xf32> to vector<32x128xf32>
    %cst_37 = arith.constant dense<0.000000e+00> : vector<2x128xf32>
    %90 = tpu.matmul %23, %89, %cst_37 {dimension_numbers = #tpu.dot_dimension_numbers<[1], [0], [0], [1], [0, 0, 1, 1], [], []>} : vector<2x32xf32>, vector<32x128xf32>, vector<2x128xf32> -> vector<2x128xf32>
    %91 = arith.addf %87, %90 : vector<2x128xf32>
    %92 = arith.addf %91, %10 : vector<2x128xf32>
    %93 = vector.extract_strided_slice %92 {offsets = [0, 0], sizes = [2, 32], strides = [1, 1]} : vector<2x128xf32> to vector<2x32xf32>
    %94 = arith.negf %93 : vector<2x32xf32>
    %95 = math.exp %94 : vector<2x32xf32>
    %cst_38 = arith.constant 1.000000e+00 : f32
    %96 = vector.broadcast %cst_38 : f32 to vector<2x32xf32>
    %97 = arith.addf %96, %95 : vector<2x32xf32>
    %98 = arith.divf %96, %97 : vector<2x32xf32>
    %99 = vector.extract_strided_slice %92 {offsets = [0, 32], sizes = [2, 32], strides = [1, 1]} : vector<2x128xf32> to vector<2x32xf32>
    %100 = arith.negf %99 : vector<2x32xf32>
    %101 = math.exp %100 : vector<2x32xf32>
    %cst_39 = arith.constant 1.000000e+00 : f32
    %102 = vector.broadcast %cst_39 : f32 to vector<2x32xf32>
    %103 = arith.addf %102, %101 : vector<2x32xf32>
    %104 = arith.divf %102, %103 : vector<2x32xf32>
    %105 = vector.extract_strided_slice %92 {offsets = [0, 64], sizes = [2, 32], strides = [1, 1]} : vector<2x128xf32> to vector<2x32xf32>
    %106 = math.tanh %105 : vector<2x32xf32>
    %107 = vector.extract_strided_slice %92 {offsets = [0, 96], sizes = [2, 32], strides = [1, 1]} : vector<2x128xf32> to vector<2x32xf32>
    %108 = arith.negf %107 : vector<2x32xf32>
    %109 = math.exp %108 : vector<2x32xf32>
    %cst_40 = arith.constant 1.000000e+00 : f32
    %110 = vector.broadcast %cst_40 : f32 to vector<2x32xf32>
    %111 = arith.addf %110, %109 : vector<2x32xf32>
    %112 = arith.divf %110, %111 : vector<2x32xf32>
    %113 = arith.mulf %104, %23 : vector<2x32xf32>
    %114 = arith.mulf %98, %106 : vector<2x32xf32>
    %115 = arith.addf %113, %114 : vector<2x32xf32>
    %116 = math.tanh %115 : vector<2x32xf32>
    %117 = arith.mulf %112, %116 : vector<2x32xf32>
    %118 = vector.extract_strided_slice %6 {offsets = [4, 0], sizes = [2, 128], strides = [1, 1]} : vector<16x128xf32> to vector<2x128xf32>
    %c0_41 = arith.constant 0 : index
    %c0_42 = arith.constant 0 : index
    %c0_43 = arith.constant 0 : index
    %119 = vector.load %arg3[%c0_41, %c0_42, %c0_43] : memref<5x32x128xf32, #tpu.memory_space<vmem>>, vector<1x32x128xf32>
    %120 = vector.shape_cast %119 : vector<1x32x128xf32> to vector<32x128xf32>
    %cst_44 = arith.constant dense<0.000000e+00> : vector<2x128xf32>
    %121 = tpu.matmul %84, %120, %cst_44 {dimension_numbers = #tpu.dot_dimension_numbers<[1], [0], [0], [1], [0, 0, 1, 1], [], []>} : vector<2x32xf32>, vector<32x128xf32>, vector<2x128xf32> -> vector<2x128xf32>
    %122 = arith.addf %118, %121 : vector<2x128xf32>
    %123 = vector.extract_strided_slice %122 {offsets = [0, 0], sizes = [2, 32], strides = [1, 1]} : vector<2x128xf32> to vector<2x32xf32>
    %124 = arith.negf %123 : vector<2x32xf32>
    %125 = math.exp %124 : vector<2x32xf32>
    %cst_45 = arith.constant 1.000000e+00 : f32
    %126 = vector.broadcast %cst_45 : f32 to vector<2x32xf32>
    %127 = arith.addf %126, %125 : vector<2x32xf32>
    %128 = arith.divf %126, %127 : vector<2x32xf32>
    %129 = vector.extract_strided_slice %122 {offsets = [0, 32], sizes = [2, 32], strides = [1, 1]} : vector<2x128xf32> to vector<2x32xf32>
    %130 = arith.negf %129 : vector<2x32xf32>
    %131 = math.exp %130 : vector<2x32xf32>
    %cst_46 = arith.constant 1.000000e+00 : f32
    %132 = vector.broadcast %cst_46 : f32 to vector<2x32xf32>
    %133 = arith.addf %132, %131 : vector<2x32xf32>
    %134 = arith.divf %132, %133 : vector<2x32xf32>
    %135 = vector.extract_strided_slice %122 {offsets = [0, 64], sizes = [2, 32], strides = [1, 1]} : vector<2x128xf32> to vector<2x32xf32>
    %136 = math.tanh %135 : vector<2x32xf32>
    %137 = vector.extract_strided_slice %122 {offsets = [0, 96], sizes = [2, 32], strides = [1, 1]} : vector<2x128xf32> to vector<2x32xf32>
    %138 = arith.negf %137 : vector<2x32xf32>
    %139 = math.exp %138 : vector<2x32xf32>
    %cst_47 = arith.constant 1.000000e+00 : f32
    %140 = vector.broadcast %cst_47 : f32 to vector<2x32xf32>
    %141 = arith.addf %140, %139 : vector<2x32xf32>
    %142 = arith.divf %140, %141 : vector<2x32xf32>
    %143 = arith.mulf %134, %82 : vector<2x32xf32>
    %144 = arith.mulf %128, %136 : vector<2x32xf32>
    %145 = arith.addf %143, %144 : vector<2x32xf32>
    %146 = math.tanh %145 : vector<2x32xf32>
    %147 = arith.mulf %142, %146 : vector<2x32xf32>
    %c0_48 = arith.constant 0 : index
    %c0_49 = arith.constant 0 : index
    %c0_50 = arith.constant 0 : index
    %148 = vector.load %arg2[%c0_48, %c0_49, %c0_50] : memref<4x32x128xf32, #tpu.memory_space<vmem>>, vector<1x32x128xf32>
    %149 = vector.shape_cast %148 : vector<1x32x128xf32> to vector<32x128xf32>
    %cst_51 = arith.constant dense<0.000000e+00> : vector<2x128xf32>
    %150 = tpu.matmul %84, %149, %cst_51 {dimension_numbers = #tpu.dot_dimension_numbers<[1], [0], [0], [1], [0, 0, 1, 1], [], []>} : vector<2x32xf32>, vector<32x128xf32>, vector<2x128xf32> -> vector<2x128xf32>
    %c1_52 = arith.constant 1 : index
    %c0_53 = arith.constant 0 : index
    %c0_54 = arith.constant 0 : index
    %151 = vector.load %arg3[%c1_52, %c0_53, %c0_54] : memref<5x32x128xf32, #tpu.memory_space<vmem>>, vector<1x32x128xf32>
    %152 = vector.shape_cast %151 : vector<1x32x128xf32> to vector<32x128xf32>
    %cst_55 = arith.constant dense<0.000000e+00> : vector<2x128xf32>
    %153 = tpu.matmul %117, %152, %cst_55 {dimension_numbers = #tpu.dot_dimension_numbers<[1], [0], [0], [1], [0, 0, 1, 1], [], []>} : vector<2x32xf32>, vector<32x128xf32>, vector<2x128xf32> -> vector<2x128xf32>
    %154 = arith.addf %150, %153 : vector<2x128xf32>
    %155 = arith.addf %154, %10 : vector<2x128xf32>
    %156 = vector.extract_strided_slice %155 {offsets = [0, 0], sizes = [2, 32], strides = [1, 1]} : vector<2x128xf32> to vector<2x32xf32>
    %157 = arith.negf %156 : vector<2x32xf32>
    %158 = math.exp %157 : vector<2x32xf32>
    %cst_56 = arith.constant 1.000000e+00 : f32
    %159 = vector.broadcast %cst_56 : f32 to vector<2x32xf32>
    %160 = arith.addf %159, %158 : vector<2x32xf32>
    %161 = arith.divf %159, %160 : vector<2x32xf32>
    %162 = vector.extract_strided_slice %155 {offsets = [0, 32], sizes = [2, 32], strides = [1, 1]} : vector<2x128xf32> to vector<2x32xf32>
    %163 = arith.negf %162 : vector<2x32xf32>
    %164 = math.exp %163 : vector<2x32xf32>
    %cst_57 = arith.constant 1.000000e+00 : f32
    %165 = vector.broadcast %cst_57 : f32 to vector<2x32xf32>
    %166 = arith.addf %165, %164 : vector<2x32xf32>
    %167 = arith.divf %165, %166 : vector<2x32xf32>
    %168 = vector.extract_strided_slice %155 {offsets = [0, 64], sizes = [2, 32], strides = [1, 1]} : vector<2x128xf32> to vector<2x32xf32>
    %169 = math.tanh %168 : vector<2x32xf32>
    %170 = vector.extract_strided_slice %155 {offsets = [0, 96], sizes = [2, 32], strides = [1, 1]} : vector<2x128xf32> to vector<2x32xf32>
    %171 = arith.negf %170 : vector<2x32xf32>
    %172 = math.exp %171 : vector<2x32xf32>
    %cst_58 = arith.constant 1.000000e+00 : f32
    %173 = vector.broadcast %cst_58 : f32 to vector<2x32xf32>
    %174 = arith.addf %173, %172 : vector<2x32xf32>
    %175 = arith.divf %173, %174 : vector<2x32xf32>
    %176 = arith.mulf %167, %115 : vector<2x32xf32>
    %177 = arith.mulf %161, %169 : vector<2x32xf32>
    %178 = arith.addf %176, %177 : vector<2x32xf32>
    %179 = math.tanh %178 : vector<2x32xf32>
    %180 = arith.mulf %175, %179 : vector<2x32xf32>
    %c1_59 = arith.constant 1 : index
    %c0_60 = arith.constant 0 : index
    %c0_61 = arith.constant 0 : index
    %181 = vector.load %arg2[%c1_59, %c0_60, %c0_61] : memref<4x32x128xf32, #tpu.memory_space<vmem>>, vector<1x32x128xf32>
    %182 = vector.shape_cast %181 : vector<1x32x128xf32> to vector<32x128xf32>
    %cst_62 = arith.constant dense<0.000000e+00> : vector<2x128xf32>
    %183 = tpu.matmul %117, %182, %cst_62 {dimension_numbers = #tpu.dot_dimension_numbers<[1], [0], [0], [1], [0, 0, 1, 1], [], []>} : vector<2x32xf32>, vector<32x128xf32>, vector<2x128xf32> -> vector<2x128xf32>
    %c2_63 = arith.constant 2 : index
    %c0_64 = arith.constant 0 : index
    %c0_65 = arith.constant 0 : index
    %184 = vector.load %arg3[%c2_63, %c0_64, %c0_65] : memref<5x32x128xf32, #tpu.memory_space<vmem>>, vector<1x32x128xf32>
    %185 = vector.shape_cast %184 : vector<1x32x128xf32> to vector<32x128xf32>
    %cst_66 = arith.constant dense<0.000000e+00> : vector<2x128xf32>
    %186 = tpu.matmul %23, %185, %cst_66 {dimension_numbers = #tpu.dot_dimension_numbers<[1], [0], [0], [1], [0, 0, 1, 1], [], []>} : vector<2x32xf32>, vector<32x128xf32>, vector<2x128xf32> -> vector<2x128xf32>
    %187 = arith.addf %183, %186 : vector<2x128xf32>
    %188 = arith.addf %187, %14 : vector<2x128xf32>
    %189 = vector.extract_strided_slice %188 {offsets = [0, 0], sizes = [2, 32], strides = [1, 1]} : vector<2x128xf32> to vector<2x32xf32>
    %190 = arith.negf %189 : vector<2x32xf32>
    %191 = math.exp %190 : vector<2x32xf32>
    %cst_67 = arith.constant 1.000000e+00 : f32
    %192 = vector.broadcast %cst_67 : f32 to vector<2x32xf32>
    %193 = arith.addf %192, %191 : vector<2x32xf32>
    %194 = arith.divf %192, %193 : vector<2x32xf32>
    %195 = vector.extract_strided_slice %188 {offsets = [0, 32], sizes = [2, 32], strides = [1, 1]} : vector<2x128xf32> to vector<2x32xf32>
    %196 = arith.negf %195 : vector<2x32xf32>
    %197 = math.exp %196 : vector<2x32xf32>
    %cst_68 = arith.constant 1.000000e+00 : f32
    %198 = vector.broadcast %cst_68 : f32 to vector<2x32xf32>
    %199 = arith.addf %198, %197 : vector<2x32xf32>
    %200 = arith.divf %198, %199 : vector<2x32xf32>
    %201 = vector.extract_strided_slice %188 {offsets = [0, 64], sizes = [2, 32], strides = [1, 1]} : vector<2x128xf32> to vector<2x32xf32>
    %202 = math.tanh %201 : vector<2x32xf32>
    %203 = vector.extract_strided_slice %188 {offsets = [0, 96], sizes = [2, 32], strides = [1, 1]} : vector<2x128xf32> to vector<2x32xf32>
    %204 = arith.negf %203 : vector<2x32xf32>
    %205 = math.exp %204 : vector<2x32xf32>
    %cst_69 = arith.constant 1.000000e+00 : f32
    %206 = vector.broadcast %cst_69 : f32 to vector<2x32xf32>
    %207 = arith.addf %206, %205 : vector<2x32xf32>
    %208 = arith.divf %206, %207 : vector<2x32xf32>
    %209 = arith.mulf %200, %23 : vector<2x32xf32>
    %210 = arith.mulf %194, %202 : vector<2x32xf32>
    %211 = arith.addf %209, %210 : vector<2x32xf32>
    %212 = math.tanh %211 : vector<2x32xf32>
    %213 = arith.mulf %208, %212 : vector<2x32xf32>
    %214 = vector.extract_strided_slice %6 {offsets = [6, 0], sizes = [2, 128], strides = [1, 1]} : vector<16x128xf32> to vector<2x128xf32>
    %c0_70 = arith.constant 0 : index
    %c0_71 = arith.constant 0 : index
    %c0_72 = arith.constant 0 : index
    %215 = vector.load %arg3[%c0_70, %c0_71, %c0_72] : memref<5x32x128xf32, #tpu.memory_space<vmem>>, vector<1x32x128xf32>
    %216 = vector.shape_cast %215 : vector<1x32x128xf32> to vector<32x128xf32>
    %cst_73 = arith.constant dense<0.000000e+00> : vector<2x128xf32>
    %217 = tpu.matmul %147, %216, %cst_73 {dimension_numbers = #tpu.dot_dimension_numbers<[1], [0], [0], [1], [0, 0, 1, 1], [], []>} : vector<2x32xf32>, vector<32x128xf32>, vector<2x128xf32> -> vector<2x128xf32>
    %218 = arith.addf %214, %217 : vector<2x128xf32>
    %219 = vector.extract_strided_slice %218 {offsets = [0, 0], sizes = [2, 32], strides = [1, 1]} : vector<2x128xf32> to vector<2x32xf32>
    %220 = arith.negf %219 : vector<2x32xf32>
    %221 = math.exp %220 : vector<2x32xf32>
    %cst_74 = arith.constant 1.000000e+00 : f32
    %222 = vector.broadcast %cst_74 : f32 to vector<2x32xf32>
    %223 = arith.addf %222, %221 : vector<2x32xf32>
    %224 = arith.divf %222, %223 : vector<2x32xf32>
    %225 = vector.extract_strided_slice %218 {offsets = [0, 32], sizes = [2, 32], strides = [1, 1]} : vector<2x128xf32> to vector<2x32xf32>
    %226 = arith.negf %225 : vector<2x32xf32>
    %227 = math.exp %226 : vector<2x32xf32>
    %cst_75 = arith.constant 1.000000e+00 : f32
    %228 = vector.broadcast %cst_75 : f32 to vector<2x32xf32>
    %229 = arith.addf %228, %227 : vector<2x32xf32>
    %230 = arith.divf %228, %229 : vector<2x32xf32>
    %231 = vector.extract_strided_slice %218 {offsets = [0, 64], sizes = [2, 32], strides = [1, 1]} : vector<2x128xf32> to vector<2x32xf32>
    %232 = math.tanh %231 : vector<2x32xf32>
    %233 = vector.extract_strided_slice %218 {offsets = [0, 96], sizes = [2, 32], strides = [1, 1]} : vector<2x128xf32> to vector<2x32xf32>
    %234 = arith.negf %233 : vector<2x32xf32>
    %235 = math.exp %234 : vector<2x32xf32>
    %cst_76 = arith.constant 1.000000e+00 : f32
    %236 = vector.broadcast %cst_76 : f32 to vector<2x32xf32>
    %237 = arith.addf %236, %235 : vector<2x32xf32>
    %238 = arith.divf %236, %237 : vector<2x32xf32>
    %239 = arith.mulf %230, %145 : vector<2x32xf32>
    %240 = arith.mulf %224, %232 : vector<2x32xf32>
    %241 = arith.addf %239, %240 : vector<2x32xf32>
    %242 = math.tanh %241 : vector<2x32xf32>
    %243 = arith.mulf %238, %242 : vector<2x32xf32>
    %c0_77 = arith.constant 0 : index
    %c0_78 = arith.constant 0 : index
    %c0_79 = arith.constant 0 : index
    %244 = vector.load %arg2[%c0_77, %c0_78, %c0_79] : memref<4x32x128xf32, #tpu.memory_space<vmem>>, vector<1x32x128xf32>
    %245 = vector.shape_cast %244 : vector<1x32x128xf32> to vector<32x128xf32>
    %cst_80 = arith.constant dense<0.000000e+00> : vector<2x128xf32>
    %246 = tpu.matmul %147, %245, %cst_80 {dimension_numbers = #tpu.dot_dimension_numbers<[1], [0], [0], [1], [0, 0, 1, 1], [], []>} : vector<2x32xf32>, vector<32x128xf32>, vector<2x128xf32> -> vector<2x128xf32>
    %c1_81 = arith.constant 1 : index
    %c0_82 = arith.constant 0 : index
    %c0_83 = arith.constant 0 : index
    %247 = vector.load %arg3[%c1_81, %c0_82, %c0_83] : memref<5x32x128xf32, #tpu.memory_space<vmem>>, vector<1x32x128xf32>
    %248 = vector.shape_cast %247 : vector<1x32x128xf32> to vector<32x128xf32>
    %cst_84 = arith.constant dense<0.000000e+00> : vector<2x128xf32>
    %249 = tpu.matmul %180, %248, %cst_84 {dimension_numbers = #tpu.dot_dimension_numbers<[1], [0], [0], [1], [0, 0, 1, 1], [], []>} : vector<2x32xf32>, vector<32x128xf32>, vector<2x128xf32> -> vector<2x128xf32>
    %250 = arith.addf %246, %249 : vector<2x128xf32>
    %251 = arith.addf %250, %10 : vector<2x128xf32>
    %252 = vector.extract_strided_slice %251 {offsets = [0, 0], sizes = [2, 32], strides = [1, 1]} : vector<2x128xf32> to vector<2x32xf32>
    %253 = arith.negf %252 : vector<2x32xf32>
    %254 = math.exp %253 : vector<2x32xf32>
    %cst_85 = arith.constant 1.000000e+00 : f32
    %255 = vector.broadcast %cst_85 : f32 to vector<2x32xf32>
    %256 = arith.addf %255, %254 : vector<2x32xf32>
    %257 = arith.divf %255, %256 : vector<2x32xf32>
    %258 = vector.extract_strided_slice %251 {offsets = [0, 32], sizes = [2, 32], strides = [1, 1]} : vector<2x128xf32> to vector<2x32xf32>
    %259 = arith.negf %258 : vector<2x32xf32>
    %260 = math.exp %259 : vector<2x32xf32>
    %cst_86 = arith.constant 1.000000e+00 : f32
    %261 = vector.broadcast %cst_86 : f32 to vector<2x32xf32>
    %262 = arith.addf %261, %260 : vector<2x32xf32>
    %263 = arith.divf %261, %262 : vector<2x32xf32>
    %264 = vector.extract_strided_slice %251 {offsets = [0, 64], sizes = [2, 32], strides = [1, 1]} : vector<2x128xf32> to vector<2x32xf32>
    %265 = math.tanh %264 : vector<2x32xf32>
    %266 = vector.extract_strided_slice %251 {offsets = [0, 96], sizes = [2, 32], strides = [1, 1]} : vector<2x128xf32> to vector<2x32xf32>
    %267 = arith.negf %266 : vector<2x32xf32>
    %268 = math.exp %267 : vector<2x32xf32>
    %cst_87 = arith.constant 1.000000e+00 : f32
    %269 = vector.broadcast %cst_87 : f32 to vector<2x32xf32>
    %270 = arith.addf %269, %268 : vector<2x32xf32>
    %271 = arith.divf %269, %270 : vector<2x32xf32>
    %272 = arith.mulf %263, %178 : vector<2x32xf32>
    %273 = arith.mulf %257, %265 : vector<2x32xf32>
    %274 = arith.addf %272, %273 : vector<2x32xf32>
    %275 = math.tanh %274 : vector<2x32xf32>
    %276 = arith.mulf %271, %275 : vector<2x32xf32>
    %c1_88 = arith.constant 1 : index
    %c0_89 = arith.constant 0 : index
    %c0_90 = arith.constant 0 : index
    %277 = vector.load %arg2[%c1_88, %c0_89, %c0_90] : memref<4x32x128xf32, #tpu.memory_space<vmem>>, vector<1x32x128xf32>
    %278 = vector.shape_cast %277 : vector<1x32x128xf32> to vector<32x128xf32>
    %cst_91 = arith.constant dense<0.000000e+00> : vector<2x128xf32>
    %279 = tpu.matmul %180, %278, %cst_91 {dimension_numbers = #tpu.dot_dimension_numbers<[1], [0], [0], [1], [0, 0, 1, 1], [], []>} : vector<2x32xf32>, vector<32x128xf32>, vector<2x128xf32> -> vector<2x128xf32>
    %c2_92 = arith.constant 2 : index
    %c0_93 = arith.constant 0 : index
    %c0_94 = arith.constant 0 : index
    %280 = vector.load %arg3[%c2_92, %c0_93, %c0_94] : memref<5x32x128xf32, #tpu.memory_space<vmem>>, vector<1x32x128xf32>
    %281 = vector.shape_cast %280 : vector<1x32x128xf32> to vector<32x128xf32>
    %cst_95 = arith.constant dense<0.000000e+00> : vector<2x128xf32>
    %282 = tpu.matmul %213, %281, %cst_95 {dimension_numbers = #tpu.dot_dimension_numbers<[1], [0], [0], [1], [0, 0, 1, 1], [], []>} : vector<2x32xf32>, vector<32x128xf32>, vector<2x128xf32> -> vector<2x128xf32>
    %283 = arith.addf %279, %282 : vector<2x128xf32>
    %284 = arith.addf %283, %14 : vector<2x128xf32>
    %285 = vector.extract_strided_slice %284 {offsets = [0, 0], sizes = [2, 32], strides = [1, 1]} : vector<2x128xf32> to vector<2x32xf32>
    %286 = arith.negf %285 : vector<2x32xf32>
    %287 = math.exp %286 : vector<2x32xf32>
    %cst_96 = arith.constant 1.000000e+00 : f32
    %288 = vector.broadcast %cst_96 : f32 to vector<2x32xf32>
    %289 = arith.addf %288, %287 : vector<2x32xf32>
    %290 = arith.divf %288, %289 : vector<2x32xf32>
    %291 = vector.extract_strided_slice %284 {offsets = [0, 32], sizes = [2, 32], strides = [1, 1]} : vector<2x128xf32> to vector<2x32xf32>
    %292 = arith.negf %291 : vector<2x32xf32>
    %293 = math.exp %292 : vector<2x32xf32>
    %cst_97 = arith.constant 1.000000e+00 : f32
    %294 = vector.broadcast %cst_97 : f32 to vector<2x32xf32>
    %295 = arith.addf %294, %293 : vector<2x32xf32>
    %296 = arith.divf %294, %295 : vector<2x32xf32>
    %297 = vector.extract_strided_slice %284 {offsets = [0, 64], sizes = [2, 32], strides = [1, 1]} : vector<2x128xf32> to vector<2x32xf32>
    %298 = math.tanh %297 : vector<2x32xf32>
    %299 = vector.extract_strided_slice %284 {offsets = [0, 96], sizes = [2, 32], strides = [1, 1]} : vector<2x128xf32> to vector<2x32xf32>
    %300 = arith.negf %299 : vector<2x32xf32>
    %301 = math.exp %300 : vector<2x32xf32>
    %cst_98 = arith.constant 1.000000e+00 : f32
    %302 = vector.broadcast %cst_98 : f32 to vector<2x32xf32>
    %303 = arith.addf %302, %301 : vector<2x32xf32>
    %304 = arith.divf %302, %303 : vector<2x32xf32>
    %305 = arith.mulf %296, %211 : vector<2x32xf32>
    %306 = arith.mulf %290, %298 : vector<2x32xf32>
    %307 = arith.addf %305, %306 : vector<2x32xf32>
    %308 = math.tanh %307 : vector<2x32xf32>
    %309 = arith.mulf %304, %308 : vector<2x32xf32>
    %c2_99 = arith.constant 2 : index
    %c0_100 = arith.constant 0 : index
    %c0_101 = arith.constant 0 : index
    %310 = vector.load %arg2[%c2_99, %c0_100, %c0_101] : memref<4x32x128xf32, #tpu.memory_space<vmem>>, vector<1x32x128xf32>
    %311 = vector.shape_cast %310 : vector<1x32x128xf32> to vector<32x128xf32>
    %cst_102 = arith.constant dense<0.000000e+00> : vector<2x128xf32>
    %312 = tpu.matmul %213, %311, %cst_102 {dimension_numbers = #tpu.dot_dimension_numbers<[1], [0], [0], [1], [0, 0, 1, 1], [], []>} : vector<2x32xf32>, vector<32x128xf32>, vector<2x128xf32> -> vector<2x128xf32>
    %c3_103 = arith.constant 3 : index
    %c0_104 = arith.constant 0 : index
    %c0_105 = arith.constant 0 : index
    %313 = vector.load %arg3[%c3_103, %c0_104, %c0_105] : memref<5x32x128xf32, #tpu.memory_space<vmem>>, vector<1x32x128xf32>
    %314 = vector.shape_cast %313 : vector<1x32x128xf32> to vector<32x128xf32>
    %cst_106 = arith.constant dense<0.000000e+00> : vector<2x128xf32>
    %315 = tpu.matmul %23, %314, %cst_106 {dimension_numbers = #tpu.dot_dimension_numbers<[1], [0], [0], [1], [0, 0, 1, 1], [], []>} : vector<2x32xf32>, vector<32x128xf32>, vector<2x128xf32> -> vector<2x128xf32>
    %316 = arith.addf %312, %315 : vector<2x128xf32>
    %317 = arith.addf %316, %18 : vector<2x128xf32>
    %318 = vector.extract_strided_slice %317 {offsets = [0, 0], sizes = [2, 32], strides = [1, 1]} : vector<2x128xf32> to vector<2x32xf32>
    %319 = arith.negf %318 : vector<2x32xf32>
    %320 = math.exp %319 : vector<2x32xf32>
    %cst_107 = arith.constant 1.000000e+00 : f32
    %321 = vector.broadcast %cst_107 : f32 to vector<2x32xf32>
    %322 = arith.addf %321, %320 : vector<2x32xf32>
    %323 = arith.divf %321, %322 : vector<2x32xf32>
    %324 = vector.extract_strided_slice %317 {offsets = [0, 32], sizes = [2, 32], strides = [1, 1]} : vector<2x128xf32> to vector<2x32xf32>
    %325 = arith.negf %324 : vector<2x32xf32>
    %326 = math.exp %325 : vector<2x32xf32>
    %cst_108 = arith.constant 1.000000e+00 : f32
    %327 = vector.broadcast %cst_108 : f32 to vector<2x32xf32>
    %328 = arith.addf %327, %326 : vector<2x32xf32>
    %329 = arith.divf %327, %328 : vector<2x32xf32>
    %330 = vector.extract_strided_slice %317 {offsets = [0, 64], sizes = [2, 32], strides = [1, 1]} : vector<2x128xf32> to vector<2x32xf32>
    %331 = math.tanh %330 : vector<2x32xf32>
    %332 = vector.extract_strided_slice %317 {offsets = [0, 96], sizes = [2, 32], strides = [1, 1]} : vector<2x128xf32> to vector<2x32xf32>
    %333 = arith.negf %332 : vector<2x32xf32>
    %334 = math.exp %333 : vector<2x32xf32>
    %cst_109 = arith.constant 1.000000e+00 : f32
    %335 = vector.broadcast %cst_109 : f32 to vector<2x32xf32>
    %336 = arith.addf %335, %334 : vector<2x32xf32>
    %337 = arith.divf %335, %336 : vector<2x32xf32>
    %338 = arith.mulf %329, %23 : vector<2x32xf32>
    %339 = arith.mulf %323, %331 : vector<2x32xf32>
    %340 = arith.addf %338, %339 : vector<2x32xf32>
    %341 = math.tanh %340 : vector<2x32xf32>
    %342 = arith.mulf %337, %341 : vector<2x32xf32>
    %343 = vector.extract_strided_slice %6 {offsets = [8, 0], sizes = [2, 128], strides = [1, 1]} : vector<16x128xf32> to vector<2x128xf32>
    %c0_110 = arith.constant 0 : index
    %c0_111 = arith.constant 0 : index
    %c0_112 = arith.constant 0 : index
    %344 = vector.load %arg3[%c0_110, %c0_111, %c0_112] : memref<5x32x128xf32, #tpu.memory_space<vmem>>, vector<1x32x128xf32>
    %345 = vector.shape_cast %344 : vector<1x32x128xf32> to vector<32x128xf32>
    %cst_113 = arith.constant dense<0.000000e+00> : vector<2x128xf32>
    %346 = tpu.matmul %243, %345, %cst_113 {dimension_numbers = #tpu.dot_dimension_numbers<[1], [0], [0], [1], [0, 0, 1, 1], [], []>} : vector<2x32xf32>, vector<32x128xf32>, vector<2x128xf32> -> vector<2x128xf32>
    %347 = arith.addf %343, %346 : vector<2x128xf32>
    %348 = vector.extract_strided_slice %347 {offsets = [0, 0], sizes = [2, 32], strides = [1, 1]} : vector<2x128xf32> to vector<2x32xf32>
    %349 = arith.negf %348 : vector<2x32xf32>
    %350 = math.exp %349 : vector<2x32xf32>
    %cst_114 = arith.constant 1.000000e+00 : f32
    %351 = vector.broadcast %cst_114 : f32 to vector<2x32xf32>
    %352 = arith.addf %351, %350 : vector<2x32xf32>
    %353 = arith.divf %351, %352 : vector<2x32xf32>
    %354 = vector.extract_strided_slice %347 {offsets = [0, 32], sizes = [2, 32], strides = [1, 1]} : vector<2x128xf32> to vector<2x32xf32>
    %355 = arith.negf %354 : vector<2x32xf32>
    %356 = math.exp %355 : vector<2x32xf32>
    %cst_115 = arith.constant 1.000000e+00 : f32
    %357 = vector.broadcast %cst_115 : f32 to vector<2x32xf32>
    %358 = arith.addf %357, %356 : vector<2x32xf32>
    %359 = arith.divf %357, %358 : vector<2x32xf32>
    %360 = vector.extract_strided_slice %347 {offsets = [0, 64], sizes = [2, 32], strides = [1, 1]} : vector<2x128xf32> to vector<2x32xf32>
    %361 = math.tanh %360 : vector<2x32xf32>
    %362 = vector.extract_strided_slice %347 {offsets = [0, 96], sizes = [2, 32], strides = [1, 1]} : vector<2x128xf32> to vector<2x32xf32>
    %363 = arith.negf %362 : vector<2x32xf32>
    %364 = math.exp %363 : vector<2x32xf32>
    %cst_116 = arith.constant 1.000000e+00 : f32
    %365 = vector.broadcast %cst_116 : f32 to vector<2x32xf32>
    %366 = arith.addf %365, %364 : vector<2x32xf32>
    %367 = arith.divf %365, %366 : vector<2x32xf32>
    %368 = arith.mulf %359, %241 : vector<2x32xf32>
    %369 = arith.mulf %353, %361 : vector<2x32xf32>
    %370 = arith.addf %368, %369 : vector<2x32xf32>
    %371 = math.tanh %370 : vector<2x32xf32>
    %372 = arith.mulf %367, %371 : vector<2x32xf32>
    %c0_117 = arith.constant 0 : index
    %c0_118 = arith.constant 0 : index
    %c0_119 = arith.constant 0 : index
    %373 = vector.load %arg2[%c0_117, %c0_118, %c0_119] : memref<4x32x128xf32, #tpu.memory_space<vmem>>, vector<1x32x128xf32>
    %374 = vector.shape_cast %373 : vector<1x32x128xf32> to vector<32x128xf32>
    %cst_120 = arith.constant dense<0.000000e+00> : vector<2x128xf32>
    %375 = tpu.matmul %243, %374, %cst_120 {dimension_numbers = #tpu.dot_dimension_numbers<[1], [0], [0], [1], [0, 0, 1, 1], [], []>} : vector<2x32xf32>, vector<32x128xf32>, vector<2x128xf32> -> vector<2x128xf32>
    %c1_121 = arith.constant 1 : index
    %c0_122 = arith.constant 0 : index
    %c0_123 = arith.constant 0 : index
    %376 = vector.load %arg3[%c1_121, %c0_122, %c0_123] : memref<5x32x128xf32, #tpu.memory_space<vmem>>, vector<1x32x128xf32>
    %377 = vector.shape_cast %376 : vector<1x32x128xf32> to vector<32x128xf32>
    %cst_124 = arith.constant dense<0.000000e+00> : vector<2x128xf32>
    %378 = tpu.matmul %276, %377, %cst_124 {dimension_numbers = #tpu.dot_dimension_numbers<[1], [0], [0], [1], [0, 0, 1, 1], [], []>} : vector<2x32xf32>, vector<32x128xf32>, vector<2x128xf32> -> vector<2x128xf32>
    %379 = arith.addf %375, %378 : vector<2x128xf32>
    %380 = arith.addf %379, %10 : vector<2x128xf32>
    %381 = vector.extract_strided_slice %380 {offsets = [0, 0], sizes = [2, 32], strides = [1, 1]} : vector<2x128xf32> to vector<2x32xf32>
    %382 = arith.negf %381 : vector<2x32xf32>
    %383 = math.exp %382 : vector<2x32xf32>
    %cst_125 = arith.constant 1.000000e+00 : f32
    %384 = vector.broadcast %cst_125 : f32 to vector<2x32xf32>
    %385 = arith.addf %384, %383 : vector<2x32xf32>
    %386 = arith.divf %384, %385 : vector<2x32xf32>
    %387 = vector.extract_strided_slice %380 {offsets = [0, 32], sizes = [2, 32], strides = [1, 1]} : vector<2x128xf32> to vector<2x32xf32>
    %388 = arith.negf %387 : vector<2x32xf32>
    %389 = math.exp %388 : vector<2x32xf32>
    %cst_126 = arith.constant 1.000000e+00 : f32
    %390 = vector.broadcast %cst_126 : f32 to vector<2x32xf32>
    %391 = arith.addf %390, %389 : vector<2x32xf32>
    %392 = arith.divf %390, %391 : vector<2x32xf32>
    %393 = vector.extract_strided_slice %380 {offsets = [0, 64], sizes = [2, 32], strides = [1, 1]} : vector<2x128xf32> to vector<2x32xf32>
    %394 = math.tanh %393 : vector<2x32xf32>
    %395 = vector.extract_strided_slice %380 {offsets = [0, 96], sizes = [2, 32], strides = [1, 1]} : vector<2x128xf32> to vector<2x32xf32>
    %396 = arith.negf %395 : vector<2x32xf32>
    %397 = math.exp %396 : vector<2x32xf32>
    %cst_127 = arith.constant 1.000000e+00 : f32
    %398 = vector.broadcast %cst_127 : f32 to vector<2x32xf32>
    %399 = arith.addf %398, %397 : vector<2x32xf32>
    %400 = arith.divf %398, %399 : vector<2x32xf32>
    %401 = arith.mulf %392, %274 : vector<2x32xf32>
    %402 = arith.mulf %386, %394 : vector<2x32xf32>
    %403 = arith.addf %401, %402 : vector<2x32xf32>
    %404 = math.tanh %403 : vector<2x32xf32>
    %405 = arith.mulf %400, %404 : vector<2x32xf32>
    %c1_128 = arith.constant 1 : index
    %c0_129 = arith.constant 0 : index
    %c0_130 = arith.constant 0 : index
    %406 = vector.load %arg2[%c1_128, %c0_129, %c0_130] : memref<4x32x128xf32, #tpu.memory_space<vmem>>, vector<1x32x128xf32>
    %407 = vector.shape_cast %406 : vector<1x32x128xf32> to vector<32x128xf32>
    %cst_131 = arith.constant dense<0.000000e+00> : vector<2x128xf32>
    %408 = tpu.matmul %276, %407, %cst_131 {dimension_numbers = #tpu.dot_dimension_numbers<[1], [0], [0], [1], [0, 0, 1, 1], [], []>} : vector<2x32xf32>, vector<32x128xf32>, vector<2x128xf32> -> vector<2x128xf32>
    %c2_132 = arith.constant 2 : index
    %c0_133 = arith.constant 0 : index
    %c0_134 = arith.constant 0 : index
    %409 = vector.load %arg3[%c2_132, %c0_133, %c0_134] : memref<5x32x128xf32, #tpu.memory_space<vmem>>, vector<1x32x128xf32>
    %410 = vector.shape_cast %409 : vector<1x32x128xf32> to vector<32x128xf32>
    %cst_135 = arith.constant dense<0.000000e+00> : vector<2x128xf32>
    %411 = tpu.matmul %309, %410, %cst_135 {dimension_numbers = #tpu.dot_dimension_numbers<[1], [0], [0], [1], [0, 0, 1, 1], [], []>} : vector<2x32xf32>, vector<32x128xf32>, vector<2x128xf32> -> vector<2x128xf32>
    %412 = arith.addf %408, %411 : vector<2x128xf32>
    %413 = arith.addf %412, %14 : vector<2x128xf32>
    %414 = vector.extract_strided_slice %413 {offsets = [0, 0], sizes = [2, 32], strides = [1, 1]} : vector<2x128xf32> to vector<2x32xf32>
    %415 = arith.negf %414 : vector<2x32xf32>
    %416 = math.exp %415 : vector<2x32xf32>
    %cst_136 = arith.constant 1.000000e+00 : f32
    %417 = vector.broadcast %cst_136 : f32 to vector<2x32xf32>
    %418 = arith.addf %417, %416 : vector<2x32xf32>
    %419 = arith.divf %417, %418 : vector<2x32xf32>
    %420 = vector.extract_strided_slice %413 {offsets = [0, 32], sizes = [2, 32], strides = [1, 1]} : vector<2x128xf32> to vector<2x32xf32>
    %421 = arith.negf %420 : vector<2x32xf32>
    %422 = math.exp %421 : vector<2x32xf32>
    %cst_137 = arith.constant 1.000000e+00 : f32
    %423 = vector.broadcast %cst_137 : f32 to vector<2x32xf32>
    %424 = arith.addf %423, %422 : vector<2x32xf32>
    %425 = arith.divf %423, %424 : vector<2x32xf32>
    %426 = vector.extract_strided_slice %413 {offsets = [0, 64], sizes = [2, 32], strides = [1, 1]} : vector<2x128xf32> to vector<2x32xf32>
    %427 = math.tanh %426 : vector<2x32xf32>
    %428 = vector.extract_strided_slice %413 {offsets = [0, 96], sizes = [2, 32], strides = [1, 1]} : vector<2x128xf32> to vector<2x32xf32>
    %429 = arith.negf %428 : vector<2x32xf32>
    %430 = math.exp %429 : vector<2x32xf32>
    %cst_138 = arith.constant 1.000000e+00 : f32
    %431 = vector.broadcast %cst_138 : f32 to vector<2x32xf32>
    %432 = arith.addf %431, %430 : vector<2x32xf32>
    %433 = arith.divf %431, %432 : vector<2x32xf32>
    %434 = arith.mulf %425, %307 : vector<2x32xf32>
    %435 = arith.mulf %419, %427 : vector<2x32xf32>
    %436 = arith.addf %434, %435 : vector<2x32xf32>
    %437 = math.tanh %436 : vector<2x32xf32>
    %438 = arith.mulf %433, %437 : vector<2x32xf32>
    %c2_139 = arith.constant 2 : index
    %c0_140 = arith.constant 0 : index
    %c0_141 = arith.constant 0 : index
    %439 = vector.load %arg2[%c2_139, %c0_140, %c0_141] : memref<4x32x128xf32, #tpu.memory_space<vmem>>, vector<1x32x128xf32>
    %440 = vector.shape_cast %439 : vector<1x32x128xf32> to vector<32x128xf32>
    %cst_142 = arith.constant dense<0.000000e+00> : vector<2x128xf32>
    %441 = tpu.matmul %309, %440, %cst_142 {dimension_numbers = #tpu.dot_dimension_numbers<[1], [0], [0], [1], [0, 0, 1, 1], [], []>} : vector<2x32xf32>, vector<32x128xf32>, vector<2x128xf32> -> vector<2x128xf32>
    %c3_143 = arith.constant 3 : index
    %c0_144 = arith.constant 0 : index
    %c0_145 = arith.constant 0 : index
    %442 = vector.load %arg3[%c3_143, %c0_144, %c0_145] : memref<5x32x128xf32, #tpu.memory_space<vmem>>, vector<1x32x128xf32>
    %443 = vector.shape_cast %442 : vector<1x32x128xf32> to vector<32x128xf32>
    %cst_146 = arith.constant dense<0.000000e+00> : vector<2x128xf32>
    %444 = tpu.matmul %342, %443, %cst_146 {dimension_numbers = #tpu.dot_dimension_numbers<[1], [0], [0], [1], [0, 0, 1, 1], [], []>} : vector<2x32xf32>, vector<32x128xf32>, vector<2x128xf32> -> vector<2x128xf32>
    %445 = arith.addf %441, %444 : vector<2x128xf32>
    %446 = arith.addf %445, %18 : vector<2x128xf32>
    %447 = vector.extract_strided_slice %446 {offsets = [0, 0], sizes = [2, 32], strides = [1, 1]} : vector<2x128xf32> to vector<2x32xf32>
    %448 = arith.negf %447 : vector<2x32xf32>
    %449 = math.exp %448 : vector<2x32xf32>
    %cst_147 = arith.constant 1.000000e+00 : f32
    %450 = vector.broadcast %cst_147 : f32 to vector<2x32xf32>
    %451 = arith.addf %450, %449 : vector<2x32xf32>
    %452 = arith.divf %450, %451 : vector<2x32xf32>
    %453 = vector.extract_strided_slice %446 {offsets = [0, 32], sizes = [2, 32], strides = [1, 1]} : vector<2x128xf32> to vector<2x32xf32>
    %454 = arith.negf %453 : vector<2x32xf32>
    %455 = math.exp %454 : vector<2x32xf32>
    %cst_148 = arith.constant 1.000000e+00 : f32
    %456 = vector.broadcast %cst_148 : f32 to vector<2x32xf32>
    %457 = arith.addf %456, %455 : vector<2x32xf32>
    %458 = arith.divf %456, %457 : vector<2x32xf32>
    %459 = vector.extract_strided_slice %446 {offsets = [0, 64], sizes = [2, 32], strides = [1, 1]} : vector<2x128xf32> to vector<2x32xf32>
    %460 = math.tanh %459 : vector<2x32xf32>
    %461 = vector.extract_strided_slice %446 {offsets = [0, 96], sizes = [2, 32], strides = [1, 1]} : vector<2x128xf32> to vector<2x32xf32>
    %462 = arith.negf %461 : vector<2x32xf32>
    %463 = math.exp %462 : vector<2x32xf32>
    %cst_149 = arith.constant 1.000000e+00 : f32
    %464 = vector.broadcast %cst_149 : f32 to vector<2x32xf32>
    %465 = arith.addf %464, %463 : vector<2x32xf32>
    %466 = arith.divf %464, %465 : vector<2x32xf32>
    %467 = arith.mulf %458, %340 : vector<2x32xf32>
    %468 = arith.mulf %452, %460 : vector<2x32xf32>
    %469 = arith.addf %467, %468 : vector<2x32xf32>
    %470 = math.tanh %469 : vector<2x32xf32>
    %471 = arith.mulf %466, %470 : vector<2x32xf32>
    %c3_150 = arith.constant 3 : index
    %c0_151 = arith.constant 0 : index
    %c0_152 = arith.constant 0 : index
    %472 = vector.load %arg2[%c3_150, %c0_151, %c0_152] : memref<4x32x128xf32, #tpu.memory_space<vmem>>, vector<1x32x128xf32>
    %473 = vector.shape_cast %472 : vector<1x32x128xf32> to vector<32x128xf32>
    %cst_153 = arith.constant dense<0.000000e+00> : vector<2x128xf32>
    %474 = tpu.matmul %342, %473, %cst_153 {dimension_numbers = #tpu.dot_dimension_numbers<[1], [0], [0], [1], [0, 0, 1, 1], [], []>} : vector<2x32xf32>, vector<32x128xf32>, vector<2x128xf32> -> vector<2x128xf32>
    %c4_154 = arith.constant 4 : index
    %c0_155 = arith.constant 0 : index
    %c0_156 = arith.constant 0 : index
    %475 = vector.load %arg3[%c4_154, %c0_155, %c0_156] : memref<5x32x128xf32, #tpu.memory_space<vmem>>, vector<1x32x128xf32>
    %476 = vector.shape_cast %475 : vector<1x32x128xf32> to vector<32x128xf32>
    %cst_157 = arith.constant dense<0.000000e+00> : vector<2x128xf32>
    %477 = tpu.matmul %23, %476, %cst_157 {dimension_numbers = #tpu.dot_dimension_numbers<[1], [0], [0], [1], [0, 0, 1, 1], [], []>} : vector<2x32xf32>, vector<32x128xf32>, vector<2x128xf32> -> vector<2x128xf32>
    %478 = arith.addf %474, %477 : vector<2x128xf32>
    %479 = arith.addf %478, %22 : vector<2x128xf32>
    %480 = vector.extract_strided_slice %479 {offsets = [0, 0], sizes = [2, 32], strides = [1, 1]} : vector<2x128xf32> to vector<2x32xf32>
    %481 = arith.negf %480 : vector<2x32xf32>
    %482 = math.exp %481 : vector<2x32xf32>
    %cst_158 = arith.constant 1.000000e+00 : f32
    %483 = vector.broadcast %cst_158 : f32 to vector<2x32xf32>
    %484 = arith.addf %483, %482 : vector<2x32xf32>
    %485 = arith.divf %483, %484 : vector<2x32xf32>
    %486 = vector.extract_strided_slice %479 {offsets = [0, 32], sizes = [2, 32], strides = [1, 1]} : vector<2x128xf32> to vector<2x32xf32>
    %487 = arith.negf %486 : vector<2x32xf32>
    %488 = math.exp %487 : vector<2x32xf32>
    %cst_159 = arith.constant 1.000000e+00 : f32
    %489 = vector.broadcast %cst_159 : f32 to vector<2x32xf32>
    %490 = arith.addf %489, %488 : vector<2x32xf32>
    %491 = arith.divf %489, %490 : vector<2x32xf32>
    %492 = vector.extract_strided_slice %479 {offsets = [0, 64], sizes = [2, 32], strides = [1, 1]} : vector<2x128xf32> to vector<2x32xf32>
    %493 = math.tanh %492 : vector<2x32xf32>
    %494 = vector.extract_strided_slice %479 {offsets = [0, 96], sizes = [2, 32], strides = [1, 1]} : vector<2x128xf32> to vector<2x32xf32>
    %495 = arith.negf %494 : vector<2x32xf32>
    %496 = math.exp %495 : vector<2x32xf32>
    %cst_160 = arith.constant 1.000000e+00 : f32
    %497 = vector.broadcast %cst_160 : f32 to vector<2x32xf32>
    %498 = arith.addf %497, %496 : vector<2x32xf32>
    %499 = arith.divf %497, %498 : vector<2x32xf32>
    %500 = arith.mulf %491, %23 : vector<2x32xf32>
    %501 = arith.mulf %485, %493 : vector<2x32xf32>
    %502 = arith.addf %500, %501 : vector<2x32xf32>
    %503 = math.tanh %502 : vector<2x32xf32>
    %504 = arith.mulf %499, %503 : vector<2x32xf32>
    %c0_161 = arith.constant 0 : index
    %c0_162 = arith.constant 0 : index
    %c0_163 = arith.constant 0 : index
    %505 = vector.load %arg5[%c0_161, %c0_162, %c0_163] : memref<8x32x128xf32, #tpu.memory_space<vmem>>, vector<1x32x128xf32>
    %506 = vector.shape_cast %505 : vector<1x32x128xf32> to vector<32x128xf32>
    %cst_164 = arith.constant dense<0.000000e+00> : vector<2x128xf32>
    %507 = tpu.matmul %504, %506, %cst_164 {dimension_numbers = #tpu.dot_dimension_numbers<[1], [0], [0], [1], [0, 0, 1, 1], [], []>} : vector<2x32xf32>, vector<32x128xf32>, vector<2x128xf32> -> vector<2x128xf32>
    %508 = arith.addf %24, %507 : vector<2x128xf32>
    %509 = vector.extract_strided_slice %6 {offsets = [10, 0], sizes = [2, 128], strides = [1, 1]} : vector<16x128xf32> to vector<2x128xf32>
    %c0_165 = arith.constant 0 : index
    %c0_166 = arith.constant 0 : index
    %c0_167 = arith.constant 0 : index
    %510 = vector.load %arg3[%c0_165, %c0_166, %c0_167] : memref<5x32x128xf32, #tpu.memory_space<vmem>>, vector<1x32x128xf32>
    %511 = vector.shape_cast %510 : vector<1x32x128xf32> to vector<32x128xf32>
    %cst_168 = arith.constant dense<0.000000e+00> : vector<2x128xf32>
    %512 = tpu.matmul %372, %511, %cst_168 {dimension_numbers = #tpu.dot_dimension_numbers<[1], [0], [0], [1], [0, 0, 1, 1], [], []>} : vector<2x32xf32>, vector<32x128xf32>, vector<2x128xf32> -> vector<2x128xf32>
    %513 = arith.addf %509, %512 : vector<2x128xf32>
    %514 = vector.extract_strided_slice %513 {offsets = [0, 0], sizes = [2, 32], strides = [1, 1]} : vector<2x128xf32> to vector<2x32xf32>
    %515 = arith.negf %514 : vector<2x32xf32>
    %516 = math.exp %515 : vector<2x32xf32>
    %cst_169 = arith.constant 1.000000e+00 : f32
    %517 = vector.broadcast %cst_169 : f32 to vector<2x32xf32>
    %518 = arith.addf %517, %516 : vector<2x32xf32>
    %519 = arith.divf %517, %518 : vector<2x32xf32>
    %520 = vector.extract_strided_slice %513 {offsets = [0, 32], sizes = [2, 32], strides = [1, 1]} : vector<2x128xf32> to vector<2x32xf32>
    %521 = arith.negf %520 : vector<2x32xf32>
    %522 = math.exp %521 : vector<2x32xf32>
    %cst_170 = arith.constant 1.000000e+00 : f32
    %523 = vector.broadcast %cst_170 : f32 to vector<2x32xf32>
    %524 = arith.addf %523, %522 : vector<2x32xf32>
    %525 = arith.divf %523, %524 : vector<2x32xf32>
    %526 = vector.extract_strided_slice %513 {offsets = [0, 64], sizes = [2, 32], strides = [1, 1]} : vector<2x128xf32> to vector<2x32xf32>
    %527 = math.tanh %526 : vector<2x32xf32>
    %528 = vector.extract_strided_slice %513 {offsets = [0, 96], sizes = [2, 32], strides = [1, 1]} : vector<2x128xf32> to vector<2x32xf32>
    %529 = arith.negf %528 : vector<2x32xf32>
    %530 = math.exp %529 : vector<2x32xf32>
    %cst_171 = arith.constant 1.000000e+00 : f32
    %531 = vector.broadcast %cst_171 : f32 to vector<2x32xf32>
    %532 = arith.addf %531, %530 : vector<2x32xf32>
    %533 = arith.divf %531, %532 : vector<2x32xf32>
    %534 = arith.mulf %525, %370 : vector<2x32xf32>
    %535 = arith.mulf %519, %527 : vector<2x32xf32>
    %536 = arith.addf %534, %535 : vector<2x32xf32>
    %537 = math.tanh %536 : vector<2x32xf32>
    %538 = arith.mulf %533, %537 : vector<2x32xf32>
    %c0_172 = arith.constant 0 : index
    %c0_173 = arith.constant 0 : index
    %c0_174 = arith.constant 0 : index
    %539 = vector.load %arg2[%c0_172, %c0_173, %c0_174] : memref<4x32x128xf32, #tpu.memory_space<vmem>>, vector<1x32x128xf32>
    %540 = vector.shape_cast %539 : vector<1x32x128xf32> to vector<32x128xf32>
    %cst_175 = arith.constant dense<0.000000e+00> : vector<2x128xf32>
    %541 = tpu.matmul %372, %540, %cst_175 {dimension_numbers = #tpu.dot_dimension_numbers<[1], [0], [0], [1], [0, 0, 1, 1], [], []>} : vector<2x32xf32>, vector<32x128xf32>, vector<2x128xf32> -> vector<2x128xf32>
    %c1_176 = arith.constant 1 : index
    %c0_177 = arith.constant 0 : index
    %c0_178 = arith.constant 0 : index
    %542 = vector.load %arg3[%c1_176, %c0_177, %c0_178] : memref<5x32x128xf32, #tpu.memory_space<vmem>>, vector<1x32x128xf32>
    %543 = vector.shape_cast %542 : vector<1x32x128xf32> to vector<32x128xf32>
    %cst_179 = arith.constant dense<0.000000e+00> : vector<2x128xf32>
    %544 = tpu.matmul %405, %543, %cst_179 {dimension_numbers = #tpu.dot_dimension_numbers<[1], [0], [0], [1], [0, 0, 1, 1], [], []>} : vector<2x32xf32>, vector<32x128xf32>, vector<2x128xf32> -> vector<2x128xf32>
    %545 = arith.addf %541, %544 : vector<2x128xf32>
    %546 = arith.addf %545, %10 : vector<2x128xf32>
    %547 = vector.extract_strided_slice %546 {offsets = [0, 0], sizes = [2, 32], strides = [1, 1]} : vector<2x128xf32> to vector<2x32xf32>
    %548 = arith.negf %547 : vector<2x32xf32>
    %549 = math.exp %548 : vector<2x32xf32>
    %cst_180 = arith.constant 1.000000e+00 : f32
    %550 = vector.broadcast %cst_180 : f32 to vector<2x32xf32>
    %551 = arith.addf %550, %549 : vector<2x32xf32>
    %552 = arith.divf %550, %551 : vector<2x32xf32>
    %553 = vector.extract_strided_slice %546 {offsets = [0, 32], sizes = [2, 32], strides = [1, 1]} : vector<2x128xf32> to vector<2x32xf32>
    %554 = arith.negf %553 : vector<2x32xf32>
    %555 = math.exp %554 : vector<2x32xf32>
    %cst_181 = arith.constant 1.000000e+00 : f32
    %556 = vector.broadcast %cst_181 : f32 to vector<2x32xf32>
    %557 = arith.addf %556, %555 : vector<2x32xf32>
    %558 = arith.divf %556, %557 : vector<2x32xf32>
    %559 = vector.extract_strided_slice %546 {offsets = [0, 64], sizes = [2, 32], strides = [1, 1]} : vector<2x128xf32> to vector<2x32xf32>
    %560 = math.tanh %559 : vector<2x32xf32>
    %561 = vector.extract_strided_slice %546 {offsets = [0, 96], sizes = [2, 32], strides = [1, 1]} : vector<2x128xf32> to vector<2x32xf32>
    %562 = arith.negf %561 : vector<2x32xf32>
    %563 = math.exp %562 : vector<2x32xf32>
    %cst_182 = arith.constant 1.000000e+00 : f32
    %564 = vector.broadcast %cst_182 : f32 to vector<2x32xf32>
    %565 = arith.addf %564, %563 : vector<2x32xf32>
    %566 = arith.divf %564, %565 : vector<2x32xf32>
    %567 = arith.mulf %558, %403 : vector<2x32xf32>
    %568 = arith.mulf %552, %560 : vector<2x32xf32>
    %569 = arith.addf %567, %568 : vector<2x32xf32>
    %570 = math.tanh %569 : vector<2x32xf32>
    %571 = arith.mulf %566, %570 : vector<2x32xf32>
    %c1_183 = arith.constant 1 : index
    %c0_184 = arith.constant 0 : index
    %c0_185 = arith.constant 0 : index
    %572 = vector.load %arg2[%c1_183, %c0_184, %c0_185] : memref<4x32x128xf32, #tpu.memory_space<vmem>>, vector<1x32x128xf32>
    %573 = vector.shape_cast %572 : vector<1x32x128xf32> to vector<32x128xf32>
    %cst_186 = arith.constant dense<0.000000e+00> : vector<2x128xf32>
    %574 = tpu.matmul %405, %573, %cst_186 {dimension_numbers = #tpu.dot_dimension_numbers<[1], [0], [0], [1], [0, 0, 1, 1], [], []>} : vector<2x32xf32>, vector<32x128xf32>, vector<2x128xf32> -> vector<2x128xf32>
    %c2_187 = arith.constant 2 : index
    %c0_188 = arith.constant 0 : index
    %c0_189 = arith.constant 0 : index
    %575 = vector.load %arg3[%c2_187, %c0_188, %c0_189] : memref<5x32x128xf32, #tpu.memory_space<vmem>>, vector<1x32x128xf32>
    %576 = vector.shape_cast %575 : vector<1x32x128xf32> to vector<32x128xf32>
    %cst_190 = arith.constant dense<0.000000e+00> : vector<2x128xf32>
    %577 = tpu.matmul %438, %576, %cst_190 {dimension_numbers = #tpu.dot_dimension_numbers<[1], [0], [0], [1], [0, 0, 1, 1], [], []>} : vector<2x32xf32>, vector<32x128xf32>, vector<2x128xf32> -> vector<2x128xf32>
    %578 = arith.addf %574, %577 : vector<2x128xf32>
    %579 = arith.addf %578, %14 : vector<2x128xf32>
    %580 = vector.extract_strided_slice %579 {offsets = [0, 0], sizes = [2, 32], strides = [1, 1]} : vector<2x128xf32> to vector<2x32xf32>
    %581 = arith.negf %580 : vector<2x32xf32>
    %582 = math.exp %581 : vector<2x32xf32>
    %cst_191 = arith.constant 1.000000e+00 : f32
    %583 = vector.broadcast %cst_191 : f32 to vector<2x32xf32>
    %584 = arith.addf %583, %582 : vector<2x32xf32>
    %585 = arith.divf %583, %584 : vector<2x32xf32>
    %586 = vector.extract_strided_slice %579 {offsets = [0, 32], sizes = [2, 32], strides = [1, 1]} : vector<2x128xf32> to vector<2x32xf32>
    %587 = arith.negf %586 : vector<2x32xf32>
    %588 = math.exp %587 : vector<2x32xf32>
    %cst_192 = arith.constant 1.000000e+00 : f32
    %589 = vector.broadcast %cst_192 : f32 to vector<2x32xf32>
    %590 = arith.addf %589, %588 : vector<2x32xf32>
    %591 = arith.divf %589, %590 : vector<2x32xf32>
    %592 = vector.extract_strided_slice %579 {offsets = [0, 64], sizes = [2, 32], strides = [1, 1]} : vector<2x128xf32> to vector<2x32xf32>
    %593 = math.tanh %592 : vector<2x32xf32>
    %594 = vector.extract_strided_slice %579 {offsets = [0, 96], sizes = [2, 32], strides = [1, 1]} : vector<2x128xf32> to vector<2x32xf32>
    %595 = arith.negf %594 : vector<2x32xf32>
    %596 = math.exp %595 : vector<2x32xf32>
    %cst_193 = arith.constant 1.000000e+00 : f32
    %597 = vector.broadcast %cst_193 : f32 to vector<2x32xf32>
    %598 = arith.addf %597, %596 : vector<2x32xf32>
    %599 = arith.divf %597, %598 : vector<2x32xf32>
    %600 = arith.mulf %591, %436 : vector<2x32xf32>
    %601 = arith.mulf %585, %593 : vector<2x32xf32>
    %602 = arith.addf %600, %601 : vector<2x32xf32>
    %603 = math.tanh %602 : vector<2x32xf32>
    %604 = arith.mulf %599, %603 : vector<2x32xf32>
    %c2_194 = arith.constant 2 : index
    %c0_195 = arith.constant 0 : index
    %c0_196 = arith.constant 0 : index
    %605 = vector.load %arg2[%c2_194, %c0_195, %c0_196] : memref<4x32x128xf32, #tpu.memory_space<vmem>>, vector<1x32x128xf32>
    %606 = vector.shape_cast %605 : vector<1x32x128xf32> to vector<32x128xf32>
    %cst_197 = arith.constant dense<0.000000e+00> : vector<2x128xf32>
    %607 = tpu.matmul %438, %606, %cst_197 {dimension_numbers = #tpu.dot_dimension_numbers<[1], [0], [0], [1], [0, 0, 1, 1], [], []>} : vector<2x32xf32>, vector<32x128xf32>, vector<2x128xf32> -> vector<2x128xf32>
    %c3_198 = arith.constant 3 : index
    %c0_199 = arith.constant 0 : index
    %c0_200 = arith.constant 0 : index
    %608 = vector.load %arg3[%c3_198, %c0_199, %c0_200] : memref<5x32x128xf32, #tpu.memory_space<vmem>>, vector<1x32x128xf32>
    %609 = vector.shape_cast %608 : vector<1x32x128xf32> to vector<32x128xf32>
    %cst_201 = arith.constant dense<0.000000e+00> : vector<2x128xf32>
    %610 = tpu.matmul %471, %609, %cst_201 {dimension_numbers = #tpu.dot_dimension_numbers<[1], [0], [0], [1], [0, 0, 1, 1], [], []>} : vector<2x32xf32>, vector<32x128xf32>, vector<2x128xf32> -> vector<2x128xf32>
    %611 = arith.addf %607, %610 : vector<2x128xf32>
    %612 = arith.addf %611, %18 : vector<2x128xf32>
    %613 = vector.extract_strided_slice %612 {offsets = [0, 0], sizes = [2, 32], strides = [1, 1]} : vector<2x128xf32> to vector<2x32xf32>
    %614 = arith.negf %613 : vector<2x32xf32>
    %615 = math.exp %614 : vector<2x32xf32>
    %cst_202 = arith.constant 1.000000e+00 : f32
    %616 = vector.broadcast %cst_202 : f32 to vector<2x32xf32>
    %617 = arith.addf %616, %615 : vector<2x32xf32>
    %618 = arith.divf %616, %617 : vector<2x32xf32>
    %619 = vector.extract_strided_slice %612 {offsets = [0, 32], sizes = [2, 32], strides = [1, 1]} : vector<2x128xf32> to vector<2x32xf32>
    %620 = arith.negf %619 : vector<2x32xf32>
    %621 = math.exp %620 : vector<2x32xf32>
    %cst_203 = arith.constant 1.000000e+00 : f32
    %622 = vector.broadcast %cst_203 : f32 to vector<2x32xf32>
    %623 = arith.addf %622, %621 : vector<2x32xf32>
    %624 = arith.divf %622, %623 : vector<2x32xf32>
    %625 = vector.extract_strided_slice %612 {offsets = [0, 64], sizes = [2, 32], strides = [1, 1]} : vector<2x128xf32> to vector<2x32xf32>
    %626 = math.tanh %625 : vector<2x32xf32>
    %627 = vector.extract_strided_slice %612 {offsets = [0, 96], sizes = [2, 32], strides = [1, 1]} : vector<2x128xf32> to vector<2x32xf32>
    %628 = arith.negf %627 : vector<2x32xf32>
    %629 = math.exp %628 : vector<2x32xf32>
    %cst_204 = arith.constant 1.000000e+00 : f32
    %630 = vector.broadcast %cst_204 : f32 to vector<2x32xf32>
    %631 = arith.addf %630, %629 : vector<2x32xf32>
    %632 = arith.divf %630, %631 : vector<2x32xf32>
    %633 = arith.mulf %624, %469 : vector<2x32xf32>
    %634 = arith.mulf %618, %626 : vector<2x32xf32>
    %635 = arith.addf %633, %634 : vector<2x32xf32>
    %636 = math.tanh %635 : vector<2x32xf32>
    %637 = arith.mulf %632, %636 : vector<2x32xf32>
    %c3_205 = arith.constant 3 : index
    %c0_206 = arith.constant 0 : index
    %c0_207 = arith.constant 0 : index
    %638 = vector.load %arg2[%c3_205, %c0_206, %c0_207] : memref<4x32x128xf32, #tpu.memory_space<vmem>>, vector<1x32x128xf32>
    %639 = vector.shape_cast %638 : vector<1x32x128xf32> to vector<32x128xf32>
    %cst_208 = arith.constant dense<0.000000e+00> : vector<2x128xf32>
    %640 = tpu.matmul %471, %639, %cst_208 {dimension_numbers = #tpu.dot_dimension_numbers<[1], [0], [0], [1], [0, 0, 1, 1], [], []>} : vector<2x32xf32>, vector<32x128xf32>, vector<2x128xf32> -> vector<2x128xf32>
    %c4_209 = arith.constant 4 : index
    %c0_210 = arith.constant 0 : index
    %c0_211 = arith.constant 0 : index
    %641 = vector.load %arg3[%c4_209, %c0_210, %c0_211] : memref<5x32x128xf32, #tpu.memory_space<vmem>>, vector<1x32x128xf32>
    %642 = vector.shape_cast %641 : vector<1x32x128xf32> to vector<32x128xf32>
    %cst_212 = arith.constant dense<0.000000e+00> : vector<2x128xf32>
    %643 = tpu.matmul %504, %642, %cst_212 {dimension_numbers = #tpu.dot_dimension_numbers<[1], [0], [0], [1], [0, 0, 1, 1], [], []>} : vector<2x32xf32>, vector<32x128xf32>, vector<2x128xf32> -> vector<2x128xf32>
    %644 = arith.addf %640, %643 : vector<2x128xf32>
    %645 = arith.addf %644, %22 : vector<2x128xf32>
    %646 = vector.extract_strided_slice %645 {offsets = [0, 0], sizes = [2, 32], strides = [1, 1]} : vector<2x128xf32> to vector<2x32xf32>
    %647 = arith.negf %646 : vector<2x32xf32>
    %648 = math.exp %647 : vector<2x32xf32>
    %cst_213 = arith.constant 1.000000e+00 : f32
    %649 = vector.broadcast %cst_213 : f32 to vector<2x32xf32>
    %650 = arith.addf %649, %648 : vector<2x32xf32>
    %651 = arith.divf %649, %650 : vector<2x32xf32>
    %652 = vector.extract_strided_slice %645 {offsets = [0, 32], sizes = [2, 32], strides = [1, 1]} : vector<2x128xf32> to vector<2x32xf32>
    %653 = arith.negf %652 : vector<2x32xf32>
    %654 = math.exp %653 : vector<2x32xf32>
    %cst_214 = arith.constant 1.000000e+00 : f32
    %655 = vector.broadcast %cst_214 : f32 to vector<2x32xf32>
    %656 = arith.addf %655, %654 : vector<2x32xf32>
    %657 = arith.divf %655, %656 : vector<2x32xf32>
    %658 = vector.extract_strided_slice %645 {offsets = [0, 64], sizes = [2, 32], strides = [1, 1]} : vector<2x128xf32> to vector<2x32xf32>
    %659 = math.tanh %658 : vector<2x32xf32>
    %660 = vector.extract_strided_slice %645 {offsets = [0, 96], sizes = [2, 32], strides = [1, 1]} : vector<2x128xf32> to vector<2x32xf32>
    %661 = arith.negf %660 : vector<2x32xf32>
    %662 = math.exp %661 : vector<2x32xf32>
    %cst_215 = arith.constant 1.000000e+00 : f32
    %663 = vector.broadcast %cst_215 : f32 to vector<2x32xf32>
    %664 = arith.addf %663, %662 : vector<2x32xf32>
    %665 = arith.divf %663, %664 : vector<2x32xf32>
    %666 = arith.mulf %657, %502 : vector<2x32xf32>
    %667 = arith.mulf %651, %659 : vector<2x32xf32>
    %668 = arith.addf %666, %667 : vector<2x32xf32>
    %669 = math.tanh %668 : vector<2x32xf32>
    %670 = arith.mulf %665, %669 : vector<2x32xf32>
    %c1_216 = arith.constant 1 : index
    %c0_217 = arith.constant 0 : index
    %c0_218 = arith.constant 0 : index
    %671 = vector.load %arg5[%c1_216, %c0_217, %c0_218] : memref<8x32x128xf32, #tpu.memory_space<vmem>>, vector<1x32x128xf32>
    %672 = vector.shape_cast %671 : vector<1x32x128xf32> to vector<32x128xf32>
    %cst_219 = arith.constant dense<0.000000e+00> : vector<2x128xf32>
    %673 = tpu.matmul %670, %672, %cst_219 {dimension_numbers = #tpu.dot_dimension_numbers<[1], [0], [0], [1], [0, 0, 1, 1], [], []>} : vector<2x32xf32>, vector<32x128xf32>, vector<2x128xf32> -> vector<2x128xf32>
    %674 = arith.addf %508, %673 : vector<2x128xf32>
    %675 = vector.extract_strided_slice %6 {offsets = [12, 0], sizes = [2, 128], strides = [1, 1]} : vector<16x128xf32> to vector<2x128xf32>
    %c0_220 = arith.constant 0 : index
    %c0_221 = arith.constant 0 : index
    %c0_222 = arith.constant 0 : index
    %676 = vector.load %arg3[%c0_220, %c0_221, %c0_222] : memref<5x32x128xf32, #tpu.memory_space<vmem>>, vector<1x32x128xf32>
    %677 = vector.shape_cast %676 : vector<1x32x128xf32> to vector<32x128xf32>
    %cst_223 = arith.constant dense<0.000000e+00> : vector<2x128xf32>
    %678 = tpu.matmul %538, %677, %cst_223 {dimension_numbers = #tpu.dot_dimension_numbers<[1], [0], [0], [1], [0, 0, 1, 1], [], []>} : vector<2x32xf32>, vector<32x128xf32>, vector<2x128xf32> -> vector<2x128xf32>
    %679 = arith.addf %675, %678 : vector<2x128xf32>
    %680 = vector.extract_strided_slice %679 {offsets = [0, 0], sizes = [2, 32], strides = [1, 1]} : vector<2x128xf32> to vector<2x32xf32>
    %681 = arith.negf %680 : vector<2x32xf32>
    %682 = math.exp %681 : vector<2x32xf32>
    %cst_224 = arith.constant 1.000000e+00 : f32
    %683 = vector.broadcast %cst_224 : f32 to vector<2x32xf32>
    %684 = arith.addf %683, %682 : vector<2x32xf32>
    %685 = arith.divf %683, %684 : vector<2x32xf32>
    %686 = vector.extract_strided_slice %679 {offsets = [0, 32], sizes = [2, 32], strides = [1, 1]} : vector<2x128xf32> to vector<2x32xf32>
    %687 = arith.negf %686 : vector<2x32xf32>
    %688 = math.exp %687 : vector<2x32xf32>
    %cst_225 = arith.constant 1.000000e+00 : f32
    %689 = vector.broadcast %cst_225 : f32 to vector<2x32xf32>
    %690 = arith.addf %689, %688 : vector<2x32xf32>
    %691 = arith.divf %689, %690 : vector<2x32xf32>
    %692 = vector.extract_strided_slice %679 {offsets = [0, 64], sizes = [2, 32], strides = [1, 1]} : vector<2x128xf32> to vector<2x32xf32>
    %693 = math.tanh %692 : vector<2x32xf32>
    %694 = vector.extract_strided_slice %679 {offsets = [0, 96], sizes = [2, 32], strides = [1, 1]} : vector<2x128xf32> to vector<2x32xf32>
    %695 = arith.negf %694 : vector<2x32xf32>
    %696 = math.exp %695 : vector<2x32xf32>
    %cst_226 = arith.constant 1.000000e+00 : f32
    %697 = vector.broadcast %cst_226 : f32 to vector<2x32xf32>
    %698 = arith.addf %697, %696 : vector<2x32xf32>
    %699 = arith.divf %697, %698 : vector<2x32xf32>
    %700 = arith.mulf %691, %536 : vector<2x32xf32>
    %701 = arith.mulf %685, %693 : vector<2x32xf32>
    %702 = arith.addf %700, %701 : vector<2x32xf32>
    %703 = math.tanh %702 : vector<2x32xf32>
    %704 = arith.mulf %699, %703 : vector<2x32xf32>
    %c0_227 = arith.constant 0 : index
    %c0_228 = arith.constant 0 : index
    %c0_229 = arith.constant 0 : index
    %705 = vector.load %arg2[%c0_227, %c0_228, %c0_229] : memref<4x32x128xf32, #tpu.memory_space<vmem>>, vector<1x32x128xf32>
    %706 = vector.shape_cast %705 : vector<1x32x128xf32> to vector<32x128xf32>
    %cst_230 = arith.constant dense<0.000000e+00> : vector<2x128xf32>
    %707 = tpu.matmul %538, %706, %cst_230 {dimension_numbers = #tpu.dot_dimension_numbers<[1], [0], [0], [1], [0, 0, 1, 1], [], []>} : vector<2x32xf32>, vector<32x128xf32>, vector<2x128xf32> -> vector<2x128xf32>
    %c1_231 = arith.constant 1 : index
    %c0_232 = arith.constant 0 : index
    %c0_233 = arith.constant 0 : index
    %708 = vector.load %arg3[%c1_231, %c0_232, %c0_233] : memref<5x32x128xf32, #tpu.memory_space<vmem>>, vector<1x32x128xf32>
    %709 = vector.shape_cast %708 : vector<1x32x128xf32> to vector<32x128xf32>
    %cst_234 = arith.constant dense<0.000000e+00> : vector<2x128xf32>
    %710 = tpu.matmul %571, %709, %cst_234 {dimension_numbers = #tpu.dot_dimension_numbers<[1], [0], [0], [1], [0, 0, 1, 1], [], []>} : vector<2x32xf32>, vector<32x128xf32>, vector<2x128xf32> -> vector<2x128xf32>
    %711 = arith.addf %707, %710 : vector<2x128xf32>
    %712 = arith.addf %711, %10 : vector<2x128xf32>
    %713 = vector.extract_strided_slice %712 {offsets = [0, 0], sizes = [2, 32], strides = [1, 1]} : vector<2x128xf32> to vector<2x32xf32>
    %714 = arith.negf %713 : vector<2x32xf32>
    %715 = math.exp %714 : vector<2x32xf32>
    %cst_235 = arith.constant 1.000000e+00 : f32
    %716 = vector.broadcast %cst_235 : f32 to vector<2x32xf32>
    %717 = arith.addf %716, %715 : vector<2x32xf32>
    %718 = arith.divf %716, %717 : vector<2x32xf32>
    %719 = vector.extract_strided_slice %712 {offsets = [0, 32], sizes = [2, 32], strides = [1, 1]} : vector<2x128xf32> to vector<2x32xf32>
    %720 = arith.negf %719 : vector<2x32xf32>
    %721 = math.exp %720 : vector<2x32xf32>
    %cst_236 = arith.constant 1.000000e+00 : f32
    %722 = vector.broadcast %cst_236 : f32 to vector<2x32xf32>
    %723 = arith.addf %722, %721 : vector<2x32xf32>
    %724 = arith.divf %722, %723 : vector<2x32xf32>
    %725 = vector.extract_strided_slice %712 {offsets = [0, 64], sizes = [2, 32], strides = [1, 1]} : vector<2x128xf32> to vector<2x32xf32>
    %726 = math.tanh %725 : vector<2x32xf32>
    %727 = vector.extract_strided_slice %712 {offsets = [0, 96], sizes = [2, 32], strides = [1, 1]} : vector<2x128xf32> to vector<2x32xf32>
    %728 = arith.negf %727 : vector<2x32xf32>
    %729 = math.exp %728 : vector<2x32xf32>
    %cst_237 = arith.constant 1.000000e+00 : f32
    %730 = vector.broadcast %cst_237 : f32 to vector<2x32xf32>
    %731 = arith.addf %730, %729 : vector<2x32xf32>
    %732 = arith.divf %730, %731 : vector<2x32xf32>
    %733 = arith.mulf %724, %569 : vector<2x32xf32>
    %734 = arith.mulf %718, %726 : vector<2x32xf32>
    %735 = arith.addf %733, %734 : vector<2x32xf32>
    %736 = math.tanh %735 : vector<2x32xf32>
    %737 = arith.mulf %732, %736 : vector<2x32xf32>
    %c1_238 = arith.constant 1 : index
    %c0_239 = arith.constant 0 : index
    %c0_240 = arith.constant 0 : index
    %738 = vector.load %arg2[%c1_238, %c0_239, %c0_240] : memref<4x32x128xf32, #tpu.memory_space<vmem>>, vector<1x32x128xf32>
    %739 = vector.shape_cast %738 : vector<1x32x128xf32> to vector<32x128xf32>
    %cst_241 = arith.constant dense<0.000000e+00> : vector<2x128xf32>
    %740 = tpu.matmul %571, %739, %cst_241 {dimension_numbers = #tpu.dot_dimension_numbers<[1], [0], [0], [1], [0, 0, 1, 1], [], []>} : vector<2x32xf32>, vector<32x128xf32>, vector<2x128xf32> -> vector<2x128xf32>
    %c2_242 = arith.constant 2 : index
    %c0_243 = arith.constant 0 : index
    %c0_244 = arith.constant 0 : index
    %741 = vector.load %arg3[%c2_242, %c0_243, %c0_244] : memref<5x32x128xf32, #tpu.memory_space<vmem>>, vector<1x32x128xf32>
    %742 = vector.shape_cast %741 : vector<1x32x128xf32> to vector<32x128xf32>
    %cst_245 = arith.constant dense<0.000000e+00> : vector<2x128xf32>
    %743 = tpu.matmul %604, %742, %cst_245 {dimension_numbers = #tpu.dot_dimension_numbers<[1], [0], [0], [1], [0, 0, 1, 1], [], []>} : vector<2x32xf32>, vector<32x128xf32>, vector<2x128xf32> -> vector<2x128xf32>
    %744 = arith.addf %740, %743 : vector<2x128xf32>
    %745 = arith.addf %744, %14 : vector<2x128xf32>
    %746 = vector.extract_strided_slice %745 {offsets = [0, 0], sizes = [2, 32], strides = [1, 1]} : vector<2x128xf32> to vector<2x32xf32>
    %747 = arith.negf %746 : vector<2x32xf32>
    %748 = math.exp %747 : vector<2x32xf32>
    %cst_246 = arith.constant 1.000000e+00 : f32
    %749 = vector.broadcast %cst_246 : f32 to vector<2x32xf32>
    %750 = arith.addf %749, %748 : vector<2x32xf32>
    %751 = arith.divf %749, %750 : vector<2x32xf32>
    %752 = vector.extract_strided_slice %745 {offsets = [0, 32], sizes = [2, 32], strides = [1, 1]} : vector<2x128xf32> to vector<2x32xf32>
    %753 = arith.negf %752 : vector<2x32xf32>
    %754 = math.exp %753 : vector<2x32xf32>
    %cst_247 = arith.constant 1.000000e+00 : f32
    %755 = vector.broadcast %cst_247 : f32 to vector<2x32xf32>
    %756 = arith.addf %755, %754 : vector<2x32xf32>
    %757 = arith.divf %755, %756 : vector<2x32xf32>
    %758 = vector.extract_strided_slice %745 {offsets = [0, 64], sizes = [2, 32], strides = [1, 1]} : vector<2x128xf32> to vector<2x32xf32>
    %759 = math.tanh %758 : vector<2x32xf32>
    %760 = vector.extract_strided_slice %745 {offsets = [0, 96], sizes = [2, 32], strides = [1, 1]} : vector<2x128xf32> to vector<2x32xf32>
    %761 = arith.negf %760 : vector<2x32xf32>
    %762 = math.exp %761 : vector<2x32xf32>
    %cst_248 = arith.constant 1.000000e+00 : f32
    %763 = vector.broadcast %cst_248 : f32 to vector<2x32xf32>
    %764 = arith.addf %763, %762 : vector<2x32xf32>
    %765 = arith.divf %763, %764 : vector<2x32xf32>
    %766 = arith.mulf %757, %602 : vector<2x32xf32>
    %767 = arith.mulf %751, %759 : vector<2x32xf32>
    %768 = arith.addf %766, %767 : vector<2x32xf32>
    %769 = math.tanh %768 : vector<2x32xf32>
    %770 = arith.mulf %765, %769 : vector<2x32xf32>
    %c2_249 = arith.constant 2 : index
    %c0_250 = arith.constant 0 : index
    %c0_251 = arith.constant 0 : index
    %771 = vector.load %arg2[%c2_249, %c0_250, %c0_251] : memref<4x32x128xf32, #tpu.memory_space<vmem>>, vector<1x32x128xf32>
    %772 = vector.shape_cast %771 : vector<1x32x128xf32> to vector<32x128xf32>
    %cst_252 = arith.constant dense<0.000000e+00> : vector<2x128xf32>
    %773 = tpu.matmul %604, %772, %cst_252 {dimension_numbers = #tpu.dot_dimension_numbers<[1], [0], [0], [1], [0, 0, 1, 1], [], []>} : vector<2x32xf32>, vector<32x128xf32>, vector<2x128xf32> -> vector<2x128xf32>
    %c3_253 = arith.constant 3 : index
    %c0_254 = arith.constant 0 : index
    %c0_255 = arith.constant 0 : index
    %774 = vector.load %arg3[%c3_253, %c0_254, %c0_255] : memref<5x32x128xf32, #tpu.memory_space<vmem>>, vector<1x32x128xf32>
    %775 = vector.shape_cast %774 : vector<1x32x128xf32> to vector<32x128xf32>
    %cst_256 = arith.constant dense<0.000000e+00> : vector<2x128xf32>
    %776 = tpu.matmul %637, %775, %cst_256 {dimension_numbers = #tpu.dot_dimension_numbers<[1], [0], [0], [1], [0, 0, 1, 1], [], []>} : vector<2x32xf32>, vector<32x128xf32>, vector<2x128xf32> -> vector<2x128xf32>
    %777 = arith.addf %773, %776 : vector<2x128xf32>
    %778 = arith.addf %777, %18 : vector<2x128xf32>
    %779 = vector.extract_strided_slice %778 {offsets = [0, 0], sizes = [2, 32], strides = [1, 1]} : vector<2x128xf32> to vector<2x32xf32>
    %780 = arith.negf %779 : vector<2x32xf32>
    %781 = math.exp %780 : vector<2x32xf32>
    %cst_257 = arith.constant 1.000000e+00 : f32
    %782 = vector.broadcast %cst_257 : f32 to vector<2x32xf32>
    %783 = arith.addf %782, %781 : vector<2x32xf32>
    %784 = arith.divf %782, %783 : vector<2x32xf32>
    %785 = vector.extract_strided_slice %778 {offsets = [0, 32], sizes = [2, 32], strides = [1, 1]} : vector<2x128xf32> to vector<2x32xf32>
    %786 = arith.negf %785 : vector<2x32xf32>
    %787 = math.exp %786 : vector<2x32xf32>
    %cst_258 = arith.constant 1.000000e+00 : f32
    %788 = vector.broadcast %cst_258 : f32 to vector<2x32xf32>
    %789 = arith.addf %788, %787 : vector<2x32xf32>
    %790 = arith.divf %788, %789 : vector<2x32xf32>
    %791 = vector.extract_strided_slice %778 {offsets = [0, 64], sizes = [2, 32], strides = [1, 1]} : vector<2x128xf32> to vector<2x32xf32>
    %792 = math.tanh %791 : vector<2x32xf32>
    %793 = vector.extract_strided_slice %778 {offsets = [0, 96], sizes = [2, 32], strides = [1, 1]} : vector<2x128xf32> to vector<2x32xf32>
    %794 = arith.negf %793 : vector<2x32xf32>
    %795 = math.exp %794 : vector<2x32xf32>
    %cst_259 = arith.constant 1.000000e+00 : f32
    %796 = vector.broadcast %cst_259 : f32 to vector<2x32xf32>
    %797 = arith.addf %796, %795 : vector<2x32xf32>
    %798 = arith.divf %796, %797 : vector<2x32xf32>
    %799 = arith.mulf %790, %635 : vector<2x32xf32>
    %800 = arith.mulf %784, %792 : vector<2x32xf32>
    %801 = arith.addf %799, %800 : vector<2x32xf32>
    %802 = math.tanh %801 : vector<2x32xf32>
    %803 = arith.mulf %798, %802 : vector<2x32xf32>
    %c3_260 = arith.constant 3 : index
    %c0_261 = arith.constant 0 : index
    %c0_262 = arith.constant 0 : index
    %804 = vector.load %arg2[%c3_260, %c0_261, %c0_262] : memref<4x32x128xf32, #tpu.memory_space<vmem>>, vector<1x32x128xf32>
    %805 = vector.shape_cast %804 : vector<1x32x128xf32> to vector<32x128xf32>
    %cst_263 = arith.constant dense<0.000000e+00> : vector<2x128xf32>
    %806 = tpu.matmul %637, %805, %cst_263 {dimension_numbers = #tpu.dot_dimension_numbers<[1], [0], [0], [1], [0, 0, 1, 1], [], []>} : vector<2x32xf32>, vector<32x128xf32>, vector<2x128xf32> -> vector<2x128xf32>
    %c4_264 = arith.constant 4 : index
    %c0_265 = arith.constant 0 : index
    %c0_266 = arith.constant 0 : index
    %807 = vector.load %arg3[%c4_264, %c0_265, %c0_266] : memref<5x32x128xf32, #tpu.memory_space<vmem>>, vector<1x32x128xf32>
    %808 = vector.shape_cast %807 : vector<1x32x128xf32> to vector<32x128xf32>
    %cst_267 = arith.constant dense<0.000000e+00> : vector<2x128xf32>
    %809 = tpu.matmul %670, %808, %cst_267 {dimension_numbers = #tpu.dot_dimension_numbers<[1], [0], [0], [1], [0, 0, 1, 1], [], []>} : vector<2x32xf32>, vector<32x128xf32>, vector<2x128xf32> -> vector<2x128xf32>
    %810 = arith.addf %806, %809 : vector<2x128xf32>
    %811 = arith.addf %810, %22 : vector<2x128xf32>
    %812 = vector.extract_strided_slice %811 {offsets = [0, 0], sizes = [2, 32], strides = [1, 1]} : vector<2x128xf32> to vector<2x32xf32>
    %813 = arith.negf %812 : vector<2x32xf32>
    %814 = math.exp %813 : vector<2x32xf32>
    %cst_268 = arith.constant 1.000000e+00 : f32
    %815 = vector.broadcast %cst_268 : f32 to vector<2x32xf32>
    %816 = arith.addf %815, %814 : vector<2x32xf32>
    %817 = arith.divf %815, %816 : vector<2x32xf32>
    %818 = vector.extract_strided_slice %811 {offsets = [0, 32], sizes = [2, 32], strides = [1, 1]} : vector<2x128xf32> to vector<2x32xf32>
    %819 = arith.negf %818 : vector<2x32xf32>
    %820 = math.exp %819 : vector<2x32xf32>
    %cst_269 = arith.constant 1.000000e+00 : f32
    %821 = vector.broadcast %cst_269 : f32 to vector<2x32xf32>
    %822 = arith.addf %821, %820 : vector<2x32xf32>
    %823 = arith.divf %821, %822 : vector<2x32xf32>
    %824 = vector.extract_strided_slice %811 {offsets = [0, 64], sizes = [2, 32], strides = [1, 1]} : vector<2x128xf32> to vector<2x32xf32>
    %825 = math.tanh %824 : vector<2x32xf32>
    %826 = vector.extract_strided_slice %811 {offsets = [0, 96], sizes = [2, 32], strides = [1, 1]} : vector<2x128xf32> to vector<2x32xf32>
    %827 = arith.negf %826 : vector<2x32xf32>
    %828 = math.exp %827 : vector<2x32xf32>
    %cst_270 = arith.constant 1.000000e+00 : f32
    %829 = vector.broadcast %cst_270 : f32 to vector<2x32xf32>
    %830 = arith.addf %829, %828 : vector<2x32xf32>
    %831 = arith.divf %829, %830 : vector<2x32xf32>
    %832 = arith.mulf %823, %668 : vector<2x32xf32>
    %833 = arith.mulf %817, %825 : vector<2x32xf32>
    %834 = arith.addf %832, %833 : vector<2x32xf32>
    %835 = math.tanh %834 : vector<2x32xf32>
    %836 = arith.mulf %831, %835 : vector<2x32xf32>
    %c2_271 = arith.constant 2 : index
    %c0_272 = arith.constant 0 : index
    %c0_273 = arith.constant 0 : index
    %837 = vector.load %arg5[%c2_271, %c0_272, %c0_273] : memref<8x32x128xf32, #tpu.memory_space<vmem>>, vector<1x32x128xf32>
    %838 = vector.shape_cast %837 : vector<1x32x128xf32> to vector<32x128xf32>
    %cst_274 = arith.constant dense<0.000000e+00> : vector<2x128xf32>
    %839 = tpu.matmul %836, %838, %cst_274 {dimension_numbers = #tpu.dot_dimension_numbers<[1], [0], [0], [1], [0, 0, 1, 1], [], []>} : vector<2x32xf32>, vector<32x128xf32>, vector<2x128xf32> -> vector<2x128xf32>
    %840 = arith.addf %674, %839 : vector<2x128xf32>
    %841 = vector.extract_strided_slice %6 {offsets = [14, 0], sizes = [2, 128], strides = [1, 1]} : vector<16x128xf32> to vector<2x128xf32>
    %c0_275 = arith.constant 0 : index
    %c0_276 = arith.constant 0 : index
    %c0_277 = arith.constant 0 : index
    %842 = vector.load %arg3[%c0_275, %c0_276, %c0_277] : memref<5x32x128xf32, #tpu.memory_space<vmem>>, vector<1x32x128xf32>
    %843 = vector.shape_cast %842 : vector<1x32x128xf32> to vector<32x128xf32>
    %cst_278 = arith.constant dense<0.000000e+00> : vector<2x128xf32>
    %844 = tpu.matmul %704, %843, %cst_278 {dimension_numbers = #tpu.dot_dimension_numbers<[1], [0], [0], [1], [0, 0, 1, 1], [], []>} : vector<2x32xf32>, vector<32x128xf32>, vector<2x128xf32> -> vector<2x128xf32>
    %845 = arith.addf %841, %844 : vector<2x128xf32>
    %846 = vector.extract_strided_slice %845 {offsets = [0, 0], sizes = [2, 32], strides = [1, 1]} : vector<2x128xf32> to vector<2x32xf32>
    %847 = arith.negf %846 : vector<2x32xf32>
    %848 = math.exp %847 : vector<2x32xf32>
    %cst_279 = arith.constant 1.000000e+00 : f32
    %849 = vector.broadcast %cst_279 : f32 to vector<2x32xf32>
    %850 = arith.addf %849, %848 : vector<2x32xf32>
    %851 = arith.divf %849, %850 : vector<2x32xf32>
    %852 = vector.extract_strided_slice %845 {offsets = [0, 32], sizes = [2, 32], strides = [1, 1]} : vector<2x128xf32> to vector<2x32xf32>
    %853 = arith.negf %852 : vector<2x32xf32>
    %854 = math.exp %853 : vector<2x32xf32>
    %cst_280 = arith.constant 1.000000e+00 : f32
    %855 = vector.broadcast %cst_280 : f32 to vector<2x32xf32>
    %856 = arith.addf %855, %854 : vector<2x32xf32>
    %857 = arith.divf %855, %856 : vector<2x32xf32>
    %858 = vector.extract_strided_slice %845 {offsets = [0, 64], sizes = [2, 32], strides = [1, 1]} : vector<2x128xf32> to vector<2x32xf32>
    %859 = math.tanh %858 : vector<2x32xf32>
    %860 = vector.extract_strided_slice %845 {offsets = [0, 96], sizes = [2, 32], strides = [1, 1]} : vector<2x128xf32> to vector<2x32xf32>
    %861 = arith.negf %860 : vector<2x32xf32>
    %862 = math.exp %861 : vector<2x32xf32>
    %cst_281 = arith.constant 1.000000e+00 : f32
    %863 = vector.broadcast %cst_281 : f32 to vector<2x32xf32>
    %864 = arith.addf %863, %862 : vector<2x32xf32>
    %865 = arith.divf %863, %864 : vector<2x32xf32>
    %866 = arith.mulf %857, %702 : vector<2x32xf32>
    %867 = arith.mulf %851, %859 : vector<2x32xf32>
    %868 = arith.addf %866, %867 : vector<2x32xf32>
    %869 = math.tanh %868 : vector<2x32xf32>
    %870 = arith.mulf %865, %869 : vector<2x32xf32>
    %c0_282 = arith.constant 0 : index
    %c0_283 = arith.constant 0 : index
    %c0_284 = arith.constant 0 : index
    %871 = vector.load %arg2[%c0_282, %c0_283, %c0_284] : memref<4x32x128xf32, #tpu.memory_space<vmem>>, vector<1x32x128xf32>
    %872 = vector.shape_cast %871 : vector<1x32x128xf32> to vector<32x128xf32>
    %cst_285 = arith.constant dense<0.000000e+00> : vector<2x128xf32>
    %873 = tpu.matmul %704, %872, %cst_285 {dimension_numbers = #tpu.dot_dimension_numbers<[1], [0], [0], [1], [0, 0, 1, 1], [], []>} : vector<2x32xf32>, vector<32x128xf32>, vector<2x128xf32> -> vector<2x128xf32>
    %c1_286 = arith.constant 1 : index
    %c0_287 = arith.constant 0 : index
    %c0_288 = arith.constant 0 : index
    %874 = vector.load %arg3[%c1_286, %c0_287, %c0_288] : memref<5x32x128xf32, #tpu.memory_space<vmem>>, vector<1x32x128xf32>
    %875 = vector.shape_cast %874 : vector<1x32x128xf32> to vector<32x128xf32>
    %cst_289 = arith.constant dense<0.000000e+00> : vector<2x128xf32>
    %876 = tpu.matmul %737, %875, %cst_289 {dimension_numbers = #tpu.dot_dimension_numbers<[1], [0], [0], [1], [0, 0, 1, 1], [], []>} : vector<2x32xf32>, vector<32x128xf32>, vector<2x128xf32> -> vector<2x128xf32>
    %877 = arith.addf %873, %876 : vector<2x128xf32>
    %878 = arith.addf %877, %10 : vector<2x128xf32>
    %879 = vector.extract_strided_slice %878 {offsets = [0, 0], sizes = [2, 32], strides = [1, 1]} : vector<2x128xf32> to vector<2x32xf32>
    %880 = arith.negf %879 : vector<2x32xf32>
    %881 = math.exp %880 : vector<2x32xf32>
    %cst_290 = arith.constant 1.000000e+00 : f32
    %882 = vector.broadcast %cst_290 : f32 to vector<2x32xf32>
    %883 = arith.addf %882, %881 : vector<2x32xf32>
    %884 = arith.divf %882, %883 : vector<2x32xf32>
    %885 = vector.extract_strided_slice %878 {offsets = [0, 32], sizes = [2, 32], strides = [1, 1]} : vector<2x128xf32> to vector<2x32xf32>
    %886 = arith.negf %885 : vector<2x32xf32>
    %887 = math.exp %886 : vector<2x32xf32>
    %cst_291 = arith.constant 1.000000e+00 : f32
    %888 = vector.broadcast %cst_291 : f32 to vector<2x32xf32>
    %889 = arith.addf %888, %887 : vector<2x32xf32>
    %890 = arith.divf %888, %889 : vector<2x32xf32>
    %891 = vector.extract_strided_slice %878 {offsets = [0, 64], sizes = [2, 32], strides = [1, 1]} : vector<2x128xf32> to vector<2x32xf32>
    %892 = math.tanh %891 : vector<2x32xf32>
    %893 = vector.extract_strided_slice %878 {offsets = [0, 96], sizes = [2, 32], strides = [1, 1]} : vector<2x128xf32> to vector<2x32xf32>
    %894 = arith.negf %893 : vector<2x32xf32>
    %895 = math.exp %894 : vector<2x32xf32>
    %cst_292 = arith.constant 1.000000e+00 : f32
    %896 = vector.broadcast %cst_292 : f32 to vector<2x32xf32>
    %897 = arith.addf %896, %895 : vector<2x32xf32>
    %898 = arith.divf %896, %897 : vector<2x32xf32>
    %899 = arith.mulf %890, %735 : vector<2x32xf32>
    %900 = arith.mulf %884, %892 : vector<2x32xf32>
    %901 = arith.addf %899, %900 : vector<2x32xf32>
    %902 = math.tanh %901 : vector<2x32xf32>
    %903 = arith.mulf %898, %902 : vector<2x32xf32>
    %c1_293 = arith.constant 1 : index
    %c0_294 = arith.constant 0 : index
    %c0_295 = arith.constant 0 : index
    %904 = vector.load %arg2[%c1_293, %c0_294, %c0_295] : memref<4x32x128xf32, #tpu.memory_space<vmem>>, vector<1x32x128xf32>
    %905 = vector.shape_cast %904 : vector<1x32x128xf32> to vector<32x128xf32>
    %cst_296 = arith.constant dense<0.000000e+00> : vector<2x128xf32>
    %906 = tpu.matmul %737, %905, %cst_296 {dimension_numbers = #tpu.dot_dimension_numbers<[1], [0], [0], [1], [0, 0, 1, 1], [], []>} : vector<2x32xf32>, vector<32x128xf32>, vector<2x128xf32> -> vector<2x128xf32>
    %c2_297 = arith.constant 2 : index
    %c0_298 = arith.constant 0 : index
    %c0_299 = arith.constant 0 : index
    %907 = vector.load %arg3[%c2_297, %c0_298, %c0_299] : memref<5x32x128xf32, #tpu.memory_space<vmem>>, vector<1x32x128xf32>
    %908 = vector.shape_cast %907 : vector<1x32x128xf32> to vector<32x128xf32>
    %cst_300 = arith.constant dense<0.000000e+00> : vector<2x128xf32>
    %909 = tpu.matmul %770, %908, %cst_300 {dimension_numbers = #tpu.dot_dimension_numbers<[1], [0], [0], [1], [0, 0, 1, 1], [], []>} : vector<2x32xf32>, vector<32x128xf32>, vector<2x128xf32> -> vector<2x128xf32>
    %910 = arith.addf %906, %909 : vector<2x128xf32>
    %911 = arith.addf %910, %14 : vector<2x128xf32>
    %912 = vector.extract_strided_slice %911 {offsets = [0, 0], sizes = [2, 32], strides = [1, 1]} : vector<2x128xf32> to vector<2x32xf32>
    %913 = arith.negf %912 : vector<2x32xf32>
    %914 = math.exp %913 : vector<2x32xf32>
    %cst_301 = arith.constant 1.000000e+00 : f32
    %915 = vector.broadcast %cst_301 : f32 to vector<2x32xf32>
    %916 = arith.addf %915, %914 : vector<2x32xf32>
    %917 = arith.divf %915, %916 : vector<2x32xf32>
    %918 = vector.extract_strided_slice %911 {offsets = [0, 32], sizes = [2, 32], strides = [1, 1]} : vector<2x128xf32> to vector<2x32xf32>
    %919 = arith.negf %918 : vector<2x32xf32>
    %920 = math.exp %919 : vector<2x32xf32>
    %cst_302 = arith.constant 1.000000e+00 : f32
    %921 = vector.broadcast %cst_302 : f32 to vector<2x32xf32>
    %922 = arith.addf %921, %920 : vector<2x32xf32>
    %923 = arith.divf %921, %922 : vector<2x32xf32>
    %924 = vector.extract_strided_slice %911 {offsets = [0, 64], sizes = [2, 32], strides = [1, 1]} : vector<2x128xf32> to vector<2x32xf32>
    %925 = math.tanh %924 : vector<2x32xf32>
    %926 = vector.extract_strided_slice %911 {offsets = [0, 96], sizes = [2, 32], strides = [1, 1]} : vector<2x128xf32> to vector<2x32xf32>
    %927 = arith.negf %926 : vector<2x32xf32>
    %928 = math.exp %927 : vector<2x32xf32>
    %cst_303 = arith.constant 1.000000e+00 : f32
    %929 = vector.broadcast %cst_303 : f32 to vector<2x32xf32>
    %930 = arith.addf %929, %928 : vector<2x32xf32>
    %931 = arith.divf %929, %930 : vector<2x32xf32>
    %932 = arith.mulf %923, %768 : vector<2x32xf32>
    %933 = arith.mulf %917, %925 : vector<2x32xf32>
    %934 = arith.addf %932, %933 : vector<2x32xf32>
    %935 = math.tanh %934 : vector<2x32xf32>
    %936 = arith.mulf %931, %935 : vector<2x32xf32>
    %c2_304 = arith.constant 2 : index
    %c0_305 = arith.constant 0 : index
    %c0_306 = arith.constant 0 : index
    %937 = vector.load %arg2[%c2_304, %c0_305, %c0_306] : memref<4x32x128xf32, #tpu.memory_space<vmem>>, vector<1x32x128xf32>
    %938 = vector.shape_cast %937 : vector<1x32x128xf32> to vector<32x128xf32>
    %cst_307 = arith.constant dense<0.000000e+00> : vector<2x128xf32>
    %939 = tpu.matmul %770, %938, %cst_307 {dimension_numbers = #tpu.dot_dimension_numbers<[1], [0], [0], [1], [0, 0, 1, 1], [], []>} : vector<2x32xf32>, vector<32x128xf32>, vector<2x128xf32> -> vector<2x128xf32>
    %c3_308 = arith.constant 3 : index
    %c0_309 = arith.constant 0 : index
    %c0_310 = arith.constant 0 : index
    %940 = vector.load %arg3[%c3_308, %c0_309, %c0_310] : memref<5x32x128xf32, #tpu.memory_space<vmem>>, vector<1x32x128xf32>
    %941 = vector.shape_cast %940 : vector<1x32x128xf32> to vector<32x128xf32>
    %cst_311 = arith.constant dense<0.000000e+00> : vector<2x128xf32>
    %942 = tpu.matmul %803, %941, %cst_311 {dimension_numbers = #tpu.dot_dimension_numbers<[1], [0], [0], [1], [0, 0, 1, 1], [], []>} : vector<2x32xf32>, vector<32x128xf32>, vector<2x128xf32> -> vector<2x128xf32>
    %943 = arith.addf %939, %942 : vector<2x128xf32>
    %944 = arith.addf %943, %18 : vector<2x128xf32>
    %945 = vector.extract_strided_slice %944 {offsets = [0, 0], sizes = [2, 32], strides = [1, 1]} : vector<2x128xf32> to vector<2x32xf32>
    %946 = arith.negf %945 : vector<2x32xf32>
    %947 = math.exp %946 : vector<2x32xf32>
    %cst_312 = arith.constant 1.000000e+00 : f32
    %948 = vector.broadcast %cst_312 : f32 to vector<2x32xf32>
    %949 = arith.addf %948, %947 : vector<2x32xf32>
    %950 = arith.divf %948, %949 : vector<2x32xf32>
    %951 = vector.extract_strided_slice %944 {offsets = [0, 32], sizes = [2, 32], strides = [1, 1]} : vector<2x128xf32> to vector<2x32xf32>
    %952 = arith.negf %951 : vector<2x32xf32>
    %953 = math.exp %952 : vector<2x32xf32>
    %cst_313 = arith.constant 1.000000e+00 : f32
    %954 = vector.broadcast %cst_313 : f32 to vector<2x32xf32>
    %955 = arith.addf %954, %953 : vector<2x32xf32>
    %956 = arith.divf %954, %955 : vector<2x32xf32>
    %957 = vector.extract_strided_slice %944 {offsets = [0, 64], sizes = [2, 32], strides = [1, 1]} : vector<2x128xf32> to vector<2x32xf32>
    %958 = math.tanh %957 : vector<2x32xf32>
    %959 = vector.extract_strided_slice %944 {offsets = [0, 96], sizes = [2, 32], strides = [1, 1]} : vector<2x128xf32> to vector<2x32xf32>
    %960 = arith.negf %959 : vector<2x32xf32>
    %961 = math.exp %960 : vector<2x32xf32>
    %cst_314 = arith.constant 1.000000e+00 : f32
    %962 = vector.broadcast %cst_314 : f32 to vector<2x32xf32>
    %963 = arith.addf %962, %961 : vector<2x32xf32>
    %964 = arith.divf %962, %963 : vector<2x32xf32>
    %965 = arith.mulf %956, %801 : vector<2x32xf32>
    %966 = arith.mulf %950, %958 : vector<2x32xf32>
    %967 = arith.addf %965, %966 : vector<2x32xf32>
    %968 = math.tanh %967 : vector<2x32xf32>
    %969 = arith.mulf %964, %968 : vector<2x32xf32>
    %c3_315 = arith.constant 3 : index
    %c0_316 = arith.constant 0 : index
    %c0_317 = arith.constant 0 : index
    %970 = vector.load %arg2[%c3_315, %c0_316, %c0_317] : memref<4x32x128xf32, #tpu.memory_space<vmem>>, vector<1x32x128xf32>
    %971 = vector.shape_cast %970 : vector<1x32x128xf32> to vector<32x128xf32>
    %cst_318 = arith.constant dense<0.000000e+00> : vector<2x128xf32>
    %972 = tpu.matmul %803, %971, %cst_318 {dimension_numbers = #tpu.dot_dimension_numbers<[1], [0], [0], [1], [0, 0, 1, 1], [], []>} : vector<2x32xf32>, vector<32x128xf32>, vector<2x128xf32> -> vector<2x128xf32>
    %c4_319 = arith.constant 4 : index
    %c0_320 = arith.constant 0 : index
    %c0_321 = arith.constant 0 : index
    %973 = vector.load %arg3[%c4_319, %c0_320, %c0_321] : memref<5x32x128xf32, #tpu.memory_space<vmem>>, vector<1x32x128xf32>
    %974 = vector.shape_cast %973 : vector<1x32x128xf32> to vector<32x128xf32>
    %cst_322 = arith.constant dense<0.000000e+00> : vector<2x128xf32>
    %975 = tpu.matmul %836, %974, %cst_322 {dimension_numbers = #tpu.dot_dimension_numbers<[1], [0], [0], [1], [0, 0, 1, 1], [], []>} : vector<2x32xf32>, vector<32x128xf32>, vector<2x128xf32> -> vector<2x128xf32>
    %976 = arith.addf %972, %975 : vector<2x128xf32>
    %977 = arith.addf %976, %22 : vector<2x128xf32>
    %978 = vector.extract_strided_slice %977 {offsets = [0, 0], sizes = [2, 32], strides = [1, 1]} : vector<2x128xf32> to vector<2x32xf32>
    %979 = arith.negf %978 : vector<2x32xf32>
    %980 = math.exp %979 : vector<2x32xf32>
    %cst_323 = arith.constant 1.000000e+00 : f32
    %981 = vector.broadcast %cst_323 : f32 to vector<2x32xf32>
    %982 = arith.addf %981, %980 : vector<2x32xf32>
    %983 = arith.divf %981, %982 : vector<2x32xf32>
    %984 = vector.extract_strided_slice %977 {offsets = [0, 32], sizes = [2, 32], strides = [1, 1]} : vector<2x128xf32> to vector<2x32xf32>
    %985 = arith.negf %984 : vector<2x32xf32>
    %986 = math.exp %985 : vector<2x32xf32>
    %cst_324 = arith.constant 1.000000e+00 : f32
    %987 = vector.broadcast %cst_324 : f32 to vector<2x32xf32>
    %988 = arith.addf %987, %986 : vector<2x32xf32>
    %989 = arith.divf %987, %988 : vector<2x32xf32>
    %990 = vector.extract_strided_slice %977 {offsets = [0, 64], sizes = [2, 32], strides = [1, 1]} : vector<2x128xf32> to vector<2x32xf32>
    %991 = math.tanh %990 : vector<2x32xf32>
    %992 = vector.extract_strided_slice %977 {offsets = [0, 96], sizes = [2, 32], strides = [1, 1]} : vector<2x128xf32> to vector<2x32xf32>
    %993 = arith.negf %992 : vector<2x32xf32>
    %994 = math.exp %993 : vector<2x32xf32>
    %cst_325 = arith.constant 1.000000e+00 : f32
    %995 = vector.broadcast %cst_325 : f32 to vector<2x32xf32>
    %996 = arith.addf %995, %994 : vector<2x32xf32>
    %997 = arith.divf %995, %996 : vector<2x32xf32>
    %998 = arith.mulf %989, %834 : vector<2x32xf32>
    %999 = arith.mulf %983, %991 : vector<2x32xf32>
    %1000 = arith.addf %998, %999 : vector<2x32xf32>
    %1001 = math.tanh %1000 : vector<2x32xf32>
    %1002 = arith.mulf %997, %1001 : vector<2x32xf32>
    %c3_326 = arith.constant 3 : index
    %c0_327 = arith.constant 0 : index
    %c0_328 = arith.constant 0 : index
    %1003 = vector.load %arg5[%c3_326, %c0_327, %c0_328] : memref<8x32x128xf32, #tpu.memory_space<vmem>>, vector<1x32x128xf32>
    %1004 = vector.shape_cast %1003 : vector<1x32x128xf32> to vector<32x128xf32>
    %cst_329 = arith.constant dense<0.000000e+00> : vector<2x128xf32>
    %1005 = tpu.matmul %1002, %1004, %cst_329 {dimension_numbers = #tpu.dot_dimension_numbers<[1], [0], [0], [1], [0, 0, 1, 1], [], []>} : vector<2x32xf32>, vector<32x128xf32>, vector<2x128xf32> -> vector<2x128xf32>
    %1006 = arith.addf %840, %1005 : vector<2x128xf32>
    %c0_330 = arith.constant 0 : index
    %c0_331 = arith.constant 0 : index
    %c0_332 = arith.constant 0 : index
    %1007 = vector.load %arg2[%c0_330, %c0_331, %c0_332] : memref<4x32x128xf32, #tpu.memory_space<vmem>>, vector<1x32x128xf32>
    %1008 = vector.shape_cast %1007 : vector<1x32x128xf32> to vector<32x128xf32>
    %cst_333 = arith.constant dense<0.000000e+00> : vector<2x128xf32>
    %1009 = tpu.matmul %870, %1008, %cst_333 {dimension_numbers = #tpu.dot_dimension_numbers<[1], [0], [0], [1], [0, 0, 1, 1], [], []>} : vector<2x32xf32>, vector<32x128xf32>, vector<2x128xf32> -> vector<2x128xf32>
    %c1_334 = arith.constant 1 : index
    %c0_335 = arith.constant 0 : index
    %c0_336 = arith.constant 0 : index
    %1010 = vector.load %arg3[%c1_334, %c0_335, %c0_336] : memref<5x32x128xf32, #tpu.memory_space<vmem>>, vector<1x32x128xf32>
    %1011 = vector.shape_cast %1010 : vector<1x32x128xf32> to vector<32x128xf32>
    %cst_337 = arith.constant dense<0.000000e+00> : vector<2x128xf32>
    %1012 = tpu.matmul %903, %1011, %cst_337 {dimension_numbers = #tpu.dot_dimension_numbers<[1], [0], [0], [1], [0, 0, 1, 1], [], []>} : vector<2x32xf32>, vector<32x128xf32>, vector<2x128xf32> -> vector<2x128xf32>
    %1013 = arith.addf %1009, %1012 : vector<2x128xf32>
    %1014 = arith.addf %1013, %10 : vector<2x128xf32>
    %1015 = vector.extract_strided_slice %1014 {offsets = [0, 0], sizes = [2, 32], strides = [1, 1]} : vector<2x128xf32> to vector<2x32xf32>
    %1016 = arith.negf %1015 : vector<2x32xf32>
    %1017 = math.exp %1016 : vector<2x32xf32>
    %cst_338 = arith.constant 1.000000e+00 : f32
    %1018 = vector.broadcast %cst_338 : f32 to vector<2x32xf32>
    %1019 = arith.addf %1018, %1017 : vector<2x32xf32>
    %1020 = arith.divf %1018, %1019 : vector<2x32xf32>
    %1021 = vector.extract_strided_slice %1014 {offsets = [0, 32], sizes = [2, 32], strides = [1, 1]} : vector<2x128xf32> to vector<2x32xf32>
    %1022 = arith.negf %1021 : vector<2x32xf32>
    %1023 = math.exp %1022 : vector<2x32xf32>
    %cst_339 = arith.constant 1.000000e+00 : f32
    %1024 = vector.broadcast %cst_339 : f32 to vector<2x32xf32>
    %1025 = arith.addf %1024, %1023 : vector<2x32xf32>
    %1026 = arith.divf %1024, %1025 : vector<2x32xf32>
    %1027 = vector.extract_strided_slice %1014 {offsets = [0, 64], sizes = [2, 32], strides = [1, 1]} : vector<2x128xf32> to vector<2x32xf32>
    %1028 = math.tanh %1027 : vector<2x32xf32>
    %1029 = vector.extract_strided_slice %1014 {offsets = [0, 96], sizes = [2, 32], strides = [1, 1]} : vector<2x128xf32> to vector<2x32xf32>
    %1030 = arith.negf %1029 : vector<2x32xf32>
    %1031 = math.exp %1030 : vector<2x32xf32>
    %cst_340 = arith.constant 1.000000e+00 : f32
    %1032 = vector.broadcast %cst_340 : f32 to vector<2x32xf32>
    %1033 = arith.addf %1032, %1031 : vector<2x32xf32>
    %1034 = arith.divf %1032, %1033 : vector<2x32xf32>
    %1035 = arith.mulf %1026, %901 : vector<2x32xf32>
    %1036 = arith.mulf %1020, %1028 : vector<2x32xf32>
    %1037 = arith.addf %1035, %1036 : vector<2x32xf32>
    %1038 = math.tanh %1037 : vector<2x32xf32>
    %1039 = arith.mulf %1034, %1038 : vector<2x32xf32>
    %c1_341 = arith.constant 1 : index
    %c0_342 = arith.constant 0 : index
    %c0_343 = arith.constant 0 : index
    %1040 = vector.load %arg2[%c1_341, %c0_342, %c0_343] : memref<4x32x128xf32, #tpu.memory_space<vmem>>, vector<1x32x128xf32>
    %1041 = vector.shape_cast %1040 : vector<1x32x128xf32> to vector<32x128xf32>
    %cst_344 = arith.constant dense<0.000000e+00> : vector<2x128xf32>
    %1042 = tpu.matmul %903, %1041, %cst_344 {dimension_numbers = #tpu.dot_dimension_numbers<[1], [0], [0], [1], [0, 0, 1, 1], [], []>} : vector<2x32xf32>, vector<32x128xf32>, vector<2x128xf32> -> vector<2x128xf32>
    %c2_345 = arith.constant 2 : index
    %c0_346 = arith.constant 0 : index
    %c0_347 = arith.constant 0 : index
    %1043 = vector.load %arg3[%c2_345, %c0_346, %c0_347] : memref<5x32x128xf32, #tpu.memory_space<vmem>>, vector<1x32x128xf32>
    %1044 = vector.shape_cast %1043 : vector<1x32x128xf32> to vector<32x128xf32>
    %cst_348 = arith.constant dense<0.000000e+00> : vector<2x128xf32>
    %1045 = tpu.matmul %936, %1044, %cst_348 {dimension_numbers = #tpu.dot_dimension_numbers<[1], [0], [0], [1], [0, 0, 1, 1], [], []>} : vector<2x32xf32>, vector<32x128xf32>, vector<2x128xf32> -> vector<2x128xf32>
    %1046 = arith.addf %1042, %1045 : vector<2x128xf32>
    %1047 = arith.addf %1046, %14 : vector<2x128xf32>
    %1048 = vector.extract_strided_slice %1047 {offsets = [0, 0], sizes = [2, 32], strides = [1, 1]} : vector<2x128xf32> to vector<2x32xf32>
    %1049 = arith.negf %1048 : vector<2x32xf32>
    %1050 = math.exp %1049 : vector<2x32xf32>
    %cst_349 = arith.constant 1.000000e+00 : f32
    %1051 = vector.broadcast %cst_349 : f32 to vector<2x32xf32>
    %1052 = arith.addf %1051, %1050 : vector<2x32xf32>
    %1053 = arith.divf %1051, %1052 : vector<2x32xf32>
    %1054 = vector.extract_strided_slice %1047 {offsets = [0, 32], sizes = [2, 32], strides = [1, 1]} : vector<2x128xf32> to vector<2x32xf32>
    %1055 = arith.negf %1054 : vector<2x32xf32>
    %1056 = math.exp %1055 : vector<2x32xf32>
    %cst_350 = arith.constant 1.000000e+00 : f32
    %1057 = vector.broadcast %cst_350 : f32 to vector<2x32xf32>
    %1058 = arith.addf %1057, %1056 : vector<2x32xf32>
    %1059 = arith.divf %1057, %1058 : vector<2x32xf32>
    %1060 = vector.extract_strided_slice %1047 {offsets = [0, 64], sizes = [2, 32], strides = [1, 1]} : vector<2x128xf32> to vector<2x32xf32>
    %1061 = math.tanh %1060 : vector<2x32xf32>
    %1062 = vector.extract_strided_slice %1047 {offsets = [0, 96], sizes = [2, 32], strides = [1, 1]} : vector<2x128xf32> to vector<2x32xf32>
    %1063 = arith.negf %1062 : vector<2x32xf32>
    %1064 = math.exp %1063 : vector<2x32xf32>
    %cst_351 = arith.constant 1.000000e+00 : f32
    %1065 = vector.broadcast %cst_351 : f32 to vector<2x32xf32>
    %1066 = arith.addf %1065, %1064 : vector<2x32xf32>
    %1067 = arith.divf %1065, %1066 : vector<2x32xf32>
    %1068 = arith.mulf %1059, %934 : vector<2x32xf32>
    %1069 = arith.mulf %1053, %1061 : vector<2x32xf32>
    %1070 = arith.addf %1068, %1069 : vector<2x32xf32>
    %1071 = math.tanh %1070 : vector<2x32xf32>
    %1072 = arith.mulf %1067, %1071 : vector<2x32xf32>
    %c2_352 = arith.constant 2 : index
    %c0_353 = arith.constant 0 : index
    %c0_354 = arith.constant 0 : index
    %1073 = vector.load %arg2[%c2_352, %c0_353, %c0_354] : memref<4x32x128xf32, #tpu.memory_space<vmem>>, vector<1x32x128xf32>
    %1074 = vector.shape_cast %1073 : vector<1x32x128xf32> to vector<32x128xf32>
    %cst_355 = arith.constant dense<0.000000e+00> : vector<2x128xf32>
    %1075 = tpu.matmul %936, %1074, %cst_355 {dimension_numbers = #tpu.dot_dimension_numbers<[1], [0], [0], [1], [0, 0, 1, 1], [], []>} : vector<2x32xf32>, vector<32x128xf32>, vector<2x128xf32> -> vector<2x128xf32>
    %c3_356 = arith.constant 3 : index
    %c0_357 = arith.constant 0 : index
    %c0_358 = arith.constant 0 : index
    %1076 = vector.load %arg3[%c3_356, %c0_357, %c0_358] : memref<5x32x128xf32, #tpu.memory_space<vmem>>, vector<1x32x128xf32>
    %1077 = vector.shape_cast %1076 : vector<1x32x128xf32> to vector<32x128xf32>
    %cst_359 = arith.constant dense<0.000000e+00> : vector<2x128xf32>
    %1078 = tpu.matmul %969, %1077, %cst_359 {dimension_numbers = #tpu.dot_dimension_numbers<[1], [0], [0], [1], [0, 0, 1, 1], [], []>} : vector<2x32xf32>, vector<32x128xf32>, vector<2x128xf32> -> vector<2x128xf32>
    %1079 = arith.addf %1075, %1078 : vector<2x128xf32>
    %1080 = arith.addf %1079, %18 : vector<2x128xf32>
    %1081 = vector.extract_strided_slice %1080 {offsets = [0, 0], sizes = [2, 32], strides = [1, 1]} : vector<2x128xf32> to vector<2x32xf32>
    %1082 = arith.negf %1081 : vector<2x32xf32>
    %1083 = math.exp %1082 : vector<2x32xf32>
    %cst_360 = arith.constant 1.000000e+00 : f32
    %1084 = vector.broadcast %cst_360 : f32 to vector<2x32xf32>
    %1085 = arith.addf %1084, %1083 : vector<2x32xf32>
    %1086 = arith.divf %1084, %1085 : vector<2x32xf32>
    %1087 = vector.extract_strided_slice %1080 {offsets = [0, 32], sizes = [2, 32], strides = [1, 1]} : vector<2x128xf32> to vector<2x32xf32>
    %1088 = arith.negf %1087 : vector<2x32xf32>
    %1089 = math.exp %1088 : vector<2x32xf32>
    %cst_361 = arith.constant 1.000000e+00 : f32
    %1090 = vector.broadcast %cst_361 : f32 to vector<2x32xf32>
    %1091 = arith.addf %1090, %1089 : vector<2x32xf32>
    %1092 = arith.divf %1090, %1091 : vector<2x32xf32>
    %1093 = vector.extract_strided_slice %1080 {offsets = [0, 64], sizes = [2, 32], strides = [1, 1]} : vector<2x128xf32> to vector<2x32xf32>
    %1094 = math.tanh %1093 : vector<2x32xf32>
    %1095 = vector.extract_strided_slice %1080 {offsets = [0, 96], sizes = [2, 32], strides = [1, 1]} : vector<2x128xf32> to vector<2x32xf32>
    %1096 = arith.negf %1095 : vector<2x32xf32>
    %1097 = math.exp %1096 : vector<2x32xf32>
    %cst_362 = arith.constant 1.000000e+00 : f32
    %1098 = vector.broadcast %cst_362 : f32 to vector<2x32xf32>
    %1099 = arith.addf %1098, %1097 : vector<2x32xf32>
    %1100 = arith.divf %1098, %1099 : vector<2x32xf32>
    %1101 = arith.mulf %1092, %967 : vector<2x32xf32>
    %1102 = arith.mulf %1086, %1094 : vector<2x32xf32>
    %1103 = arith.addf %1101, %1102 : vector<2x32xf32>
    %1104 = math.tanh %1103 : vector<2x32xf32>
    %1105 = arith.mulf %1100, %1104 : vector<2x32xf32>
    %c3_363 = arith.constant 3 : index
    %c0_364 = arith.constant 0 : index
    %c0_365 = arith.constant 0 : index
    %1106 = vector.load %arg2[%c3_363, %c0_364, %c0_365] : memref<4x32x128xf32, #tpu.memory_space<vmem>>, vector<1x32x128xf32>
    %1107 = vector.shape_cast %1106 : vector<1x32x128xf32> to vector<32x128xf32>
    %cst_366 = arith.constant dense<0.000000e+00> : vector<2x128xf32>
    %1108 = tpu.matmul %969, %1107, %cst_366 {dimension_numbers = #tpu.dot_dimension_numbers<[1], [0], [0], [1], [0, 0, 1, 1], [], []>} : vector<2x32xf32>, vector<32x128xf32>, vector<2x128xf32> -> vector<2x128xf32>
    %c4_367 = arith.constant 4 : index
    %c0_368 = arith.constant 0 : index
    %c0_369 = arith.constant 0 : index
    %1109 = vector.load %arg3[%c4_367, %c0_368, %c0_369] : memref<5x32x128xf32, #tpu.memory_space<vmem>>, vector<1x32x128xf32>
    %1110 = vector.shape_cast %1109 : vector<1x32x128xf32> to vector<32x128xf32>
    %cst_370 = arith.constant dense<0.000000e+00> : vector<2x128xf32>
    %1111 = tpu.matmul %1002, %1110, %cst_370 {dimension_numbers = #tpu.dot_dimension_numbers<[1], [0], [0], [1], [0, 0, 1, 1], [], []>} : vector<2x32xf32>, vector<32x128xf32>, vector<2x128xf32> -> vector<2x128xf32>
    %1112 = arith.addf %1108, %1111 : vector<2x128xf32>
    %1113 = arith.addf %1112, %22 : vector<2x128xf32>
    %1114 = vector.extract_strided_slice %1113 {offsets = [0, 0], sizes = [2, 32], strides = [1, 1]} : vector<2x128xf32> to vector<2x32xf32>
    %1115 = arith.negf %1114 : vector<2x32xf32>
    %1116 = math.exp %1115 : vector<2x32xf32>
    %cst_371 = arith.constant 1.000000e+00 : f32
    %1117 = vector.broadcast %cst_371 : f32 to vector<2x32xf32>
    %1118 = arith.addf %1117, %1116 : vector<2x32xf32>
    %1119 = arith.divf %1117, %1118 : vector<2x32xf32>
    %1120 = vector.extract_strided_slice %1113 {offsets = [0, 32], sizes = [2, 32], strides = [1, 1]} : vector<2x128xf32> to vector<2x32xf32>
    %1121 = arith.negf %1120 : vector<2x32xf32>
    %1122 = math.exp %1121 : vector<2x32xf32>
    %cst_372 = arith.constant 1.000000e+00 : f32
    %1123 = vector.broadcast %cst_372 : f32 to vector<2x32xf32>
    %1124 = arith.addf %1123, %1122 : vector<2x32xf32>
    %1125 = arith.divf %1123, %1124 : vector<2x32xf32>
    %1126 = vector.extract_strided_slice %1113 {offsets = [0, 64], sizes = [2, 32], strides = [1, 1]} : vector<2x128xf32> to vector<2x32xf32>
    %1127 = math.tanh %1126 : vector<2x32xf32>
    %1128 = vector.extract_strided_slice %1113 {offsets = [0, 96], sizes = [2, 32], strides = [1, 1]} : vector<2x128xf32> to vector<2x32xf32>
    %1129 = arith.negf %1128 : vector<2x32xf32>
    %1130 = math.exp %1129 : vector<2x32xf32>
    %cst_373 = arith.constant 1.000000e+00 : f32
    %1131 = vector.broadcast %cst_373 : f32 to vector<2x32xf32>
    %1132 = arith.addf %1131, %1130 : vector<2x32xf32>
    %1133 = arith.divf %1131, %1132 : vector<2x32xf32>
    %1134 = arith.mulf %1125, %1000 : vector<2x32xf32>
    %1135 = arith.mulf %1119, %1127 : vector<2x32xf32>
    %1136 = arith.addf %1134, %1135 : vector<2x32xf32>
    %1137 = math.tanh %1136 : vector<2x32xf32>
    %1138 = arith.mulf %1133, %1137 : vector<2x32xf32>
    %c4_374 = arith.constant 4 : index
    %c0_375 = arith.constant 0 : index
    %c0_376 = arith.constant 0 : index
    %1139 = vector.load %arg5[%c4_374, %c0_375, %c0_376] : memref<8x32x128xf32, #tpu.memory_space<vmem>>, vector<1x32x128xf32>
    %1140 = vector.shape_cast %1139 : vector<1x32x128xf32> to vector<32x128xf32>
    %cst_377 = arith.constant dense<0.000000e+00> : vector<2x128xf32>
    %1141 = tpu.matmul %1138, %1140, %cst_377 {dimension_numbers = #tpu.dot_dimension_numbers<[1], [0], [0], [1], [0, 0, 1, 1], [], []>} : vector<2x32xf32>, vector<32x128xf32>, vector<2x128xf32> -> vector<2x128xf32>
    %1142 = arith.addf %1006, %1141 : vector<2x128xf32>
    %c1_378 = arith.constant 1 : index
    %c0_379 = arith.constant 0 : index
    %c0_380 = arith.constant 0 : index
    %1143 = vector.load %arg2[%c1_378, %c0_379, %c0_380] : memref<4x32x128xf32, #tpu.memory_space<vmem>>, vector<1x32x128xf32>
    %1144 = vector.shape_cast %1143 : vector<1x32x128xf32> to vector<32x128xf32>
    %cst_381 = arith.constant dense<0.000000e+00> : vector<2x128xf32>
    %1145 = tpu.matmul %1039, %1144, %cst_381 {dimension_numbers = #tpu.dot_dimension_numbers<[1], [0], [0], [1], [0, 0, 1, 1], [], []>} : vector<2x32xf32>, vector<32x128xf32>, vector<2x128xf32> -> vector<2x128xf32>
    %c2_382 = arith.constant 2 : index
    %c0_383 = arith.constant 0 : index
    %c0_384 = arith.constant 0 : index
    %1146 = vector.load %arg3[%c2_382, %c0_383, %c0_384] : memref<5x32x128xf32, #tpu.memory_space<vmem>>, vector<1x32x128xf32>
    %1147 = vector.shape_cast %1146 : vector<1x32x128xf32> to vector<32x128xf32>
    %cst_385 = arith.constant dense<0.000000e+00> : vector<2x128xf32>
    %1148 = tpu.matmul %1072, %1147, %cst_385 {dimension_numbers = #tpu.dot_dimension_numbers<[1], [0], [0], [1], [0, 0, 1, 1], [], []>} : vector<2x32xf32>, vector<32x128xf32>, vector<2x128xf32> -> vector<2x128xf32>
    %1149 = arith.addf %1145, %1148 : vector<2x128xf32>
    %1150 = arith.addf %1149, %14 : vector<2x128xf32>
    %1151 = vector.extract_strided_slice %1150 {offsets = [0, 0], sizes = [2, 32], strides = [1, 1]} : vector<2x128xf32> to vector<2x32xf32>
    %1152 = arith.negf %1151 : vector<2x32xf32>
    %1153 = math.exp %1152 : vector<2x32xf32>
    %cst_386 = arith.constant 1.000000e+00 : f32
    %1154 = vector.broadcast %cst_386 : f32 to vector<2x32xf32>
    %1155 = arith.addf %1154, %1153 : vector<2x32xf32>
    %1156 = arith.divf %1154, %1155 : vector<2x32xf32>
    %1157 = vector.extract_strided_slice %1150 {offsets = [0, 32], sizes = [2, 32], strides = [1, 1]} : vector<2x128xf32> to vector<2x32xf32>
    %1158 = arith.negf %1157 : vector<2x32xf32>
    %1159 = math.exp %1158 : vector<2x32xf32>
    %cst_387 = arith.constant 1.000000e+00 : f32
    %1160 = vector.broadcast %cst_387 : f32 to vector<2x32xf32>
    %1161 = arith.addf %1160, %1159 : vector<2x32xf32>
    %1162 = arith.divf %1160, %1161 : vector<2x32xf32>
    %1163 = vector.extract_strided_slice %1150 {offsets = [0, 64], sizes = [2, 32], strides = [1, 1]} : vector<2x128xf32> to vector<2x32xf32>
    %1164 = math.tanh %1163 : vector<2x32xf32>
    %1165 = vector.extract_strided_slice %1150 {offsets = [0, 96], sizes = [2, 32], strides = [1, 1]} : vector<2x128xf32> to vector<2x32xf32>
    %1166 = arith.negf %1165 : vector<2x32xf32>
    %1167 = math.exp %1166 : vector<2x32xf32>
    %cst_388 = arith.constant 1.000000e+00 : f32
    %1168 = vector.broadcast %cst_388 : f32 to vector<2x32xf32>
    %1169 = arith.addf %1168, %1167 : vector<2x32xf32>
    %1170 = arith.divf %1168, %1169 : vector<2x32xf32>
    %1171 = arith.mulf %1162, %1070 : vector<2x32xf32>
    %1172 = arith.mulf %1156, %1164 : vector<2x32xf32>
    %1173 = arith.addf %1171, %1172 : vector<2x32xf32>
    %1174 = math.tanh %1173 : vector<2x32xf32>
    %1175 = arith.mulf %1170, %1174 : vector<2x32xf32>
    %c2_389 = arith.constant 2 : index
    %c0_390 = arith.constant 0 : index
    %c0_391 = arith.constant 0 : index
    %1176 = vector.load %arg2[%c2_389, %c0_390, %c0_391] : memref<4x32x128xf32, #tpu.memory_space<vmem>>, vector<1x32x128xf32>
    %1177 = vector.shape_cast %1176 : vector<1x32x128xf32> to vector<32x128xf32>
    %cst_392 = arith.constant dense<0.000000e+00> : vector<2x128xf32>
    %1178 = tpu.matmul %1072, %1177, %cst_392 {dimension_numbers = #tpu.dot_dimension_numbers<[1], [0], [0], [1], [0, 0, 1, 1], [], []>} : vector<2x32xf32>, vector<32x128xf32>, vector<2x128xf32> -> vector<2x128xf32>
    %c3_393 = arith.constant 3 : index
    %c0_394 = arith.constant 0 : index
    %c0_395 = arith.constant 0 : index
    %1179 = vector.load %arg3[%c3_393, %c0_394, %c0_395] : memref<5x32x128xf32, #tpu.memory_space<vmem>>, vector<1x32x128xf32>
    %1180 = vector.shape_cast %1179 : vector<1x32x128xf32> to vector<32x128xf32>
    %cst_396 = arith.constant dense<0.000000e+00> : vector<2x128xf32>
    %1181 = tpu.matmul %1105, %1180, %cst_396 {dimension_numbers = #tpu.dot_dimension_numbers<[1], [0], [0], [1], [0, 0, 1, 1], [], []>} : vector<2x32xf32>, vector<32x128xf32>, vector<2x128xf32> -> vector<2x128xf32>
    %1182 = arith.addf %1178, %1181 : vector<2x128xf32>
    %1183 = arith.addf %1182, %18 : vector<2x128xf32>
    %1184 = vector.extract_strided_slice %1183 {offsets = [0, 0], sizes = [2, 32], strides = [1, 1]} : vector<2x128xf32> to vector<2x32xf32>
    %1185 = arith.negf %1184 : vector<2x32xf32>
    %1186 = math.exp %1185 : vector<2x32xf32>
    %cst_397 = arith.constant 1.000000e+00 : f32
    %1187 = vector.broadcast %cst_397 : f32 to vector<2x32xf32>
    %1188 = arith.addf %1187, %1186 : vector<2x32xf32>
    %1189 = arith.divf %1187, %1188 : vector<2x32xf32>
    %1190 = vector.extract_strided_slice %1183 {offsets = [0, 32], sizes = [2, 32], strides = [1, 1]} : vector<2x128xf32> to vector<2x32xf32>
    %1191 = arith.negf %1190 : vector<2x32xf32>
    %1192 = math.exp %1191 : vector<2x32xf32>
    %cst_398 = arith.constant 1.000000e+00 : f32
    %1193 = vector.broadcast %cst_398 : f32 to vector<2x32xf32>
    %1194 = arith.addf %1193, %1192 : vector<2x32xf32>
    %1195 = arith.divf %1193, %1194 : vector<2x32xf32>
    %1196 = vector.extract_strided_slice %1183 {offsets = [0, 64], sizes = [2, 32], strides = [1, 1]} : vector<2x128xf32> to vector<2x32xf32>
    %1197 = math.tanh %1196 : vector<2x32xf32>
    %1198 = vector.extract_strided_slice %1183 {offsets = [0, 96], sizes = [2, 32], strides = [1, 1]} : vector<2x128xf32> to vector<2x32xf32>
    %1199 = arith.negf %1198 : vector<2x32xf32>
    %1200 = math.exp %1199 : vector<2x32xf32>
    %cst_399 = arith.constant 1.000000e+00 : f32
    %1201 = vector.broadcast %cst_399 : f32 to vector<2x32xf32>
    %1202 = arith.addf %1201, %1200 : vector<2x32xf32>
    %1203 = arith.divf %1201, %1202 : vector<2x32xf32>
    %1204 = arith.mulf %1195, %1103 : vector<2x32xf32>
    %1205 = arith.mulf %1189, %1197 : vector<2x32xf32>
    %1206 = arith.addf %1204, %1205 : vector<2x32xf32>
    %1207 = math.tanh %1206 : vector<2x32xf32>
    %1208 = arith.mulf %1203, %1207 : vector<2x32xf32>
    %c3_400 = arith.constant 3 : index
    %c0_401 = arith.constant 0 : index
    %c0_402 = arith.constant 0 : index
    %1209 = vector.load %arg2[%c3_400, %c0_401, %c0_402] : memref<4x32x128xf32, #tpu.memory_space<vmem>>, vector<1x32x128xf32>
    %1210 = vector.shape_cast %1209 : vector<1x32x128xf32> to vector<32x128xf32>
    %cst_403 = arith.constant dense<0.000000e+00> : vector<2x128xf32>
    %1211 = tpu.matmul %1105, %1210, %cst_403 {dimension_numbers = #tpu.dot_dimension_numbers<[1], [0], [0], [1], [0, 0, 1, 1], [], []>} : vector<2x32xf32>, vector<32x128xf32>, vector<2x128xf32> -> vector<2x128xf32>
    %c4_404 = arith.constant 4 : index
    %c0_405 = arith.constant 0 : index
    %c0_406 = arith.constant 0 : index
    %1212 = vector.load %arg3[%c4_404, %c0_405, %c0_406] : memref<5x32x128xf32, #tpu.memory_space<vmem>>, vector<1x32x128xf32>
    %1213 = vector.shape_cast %1212 : vector<1x32x128xf32> to vector<32x128xf32>
    %cst_407 = arith.constant dense<0.000000e+00> : vector<2x128xf32>
    %1214 = tpu.matmul %1138, %1213, %cst_407 {dimension_numbers = #tpu.dot_dimension_numbers<[1], [0], [0], [1], [0, 0, 1, 1], [], []>} : vector<2x32xf32>, vector<32x128xf32>, vector<2x128xf32> -> vector<2x128xf32>
    %1215 = arith.addf %1211, %1214 : vector<2x128xf32>
    %1216 = arith.addf %1215, %22 : vector<2x128xf32>
    %1217 = vector.extract_strided_slice %1216 {offsets = [0, 0], sizes = [2, 32], strides = [1, 1]} : vector<2x128xf32> to vector<2x32xf32>
    %1218 = arith.negf %1217 : vector<2x32xf32>
    %1219 = math.exp %1218 : vector<2x32xf32>
    %cst_408 = arith.constant 1.000000e+00 : f32
    %1220 = vector.broadcast %cst_408 : f32 to vector<2x32xf32>
    %1221 = arith.addf %1220, %1219 : vector<2x32xf32>
    %1222 = arith.divf %1220, %1221 : vector<2x32xf32>
    %1223 = vector.extract_strided_slice %1216 {offsets = [0, 32], sizes = [2, 32], strides = [1, 1]} : vector<2x128xf32> to vector<2x32xf32>
    %1224 = arith.negf %1223 : vector<2x32xf32>
    %1225 = math.exp %1224 : vector<2x32xf32>
    %cst_409 = arith.constant 1.000000e+00 : f32
    %1226 = vector.broadcast %cst_409 : f32 to vector<2x32xf32>
    %1227 = arith.addf %1226, %1225 : vector<2x32xf32>
    %1228 = arith.divf %1226, %1227 : vector<2x32xf32>
    %1229 = vector.extract_strided_slice %1216 {offsets = [0, 64], sizes = [2, 32], strides = [1, 1]} : vector<2x128xf32> to vector<2x32xf32>
    %1230 = math.tanh %1229 : vector<2x32xf32>
    %1231 = vector.extract_strided_slice %1216 {offsets = [0, 96], sizes = [2, 32], strides = [1, 1]} : vector<2x128xf32> to vector<2x32xf32>
    %1232 = arith.negf %1231 : vector<2x32xf32>
    %1233 = math.exp %1232 : vector<2x32xf32>
    %cst_410 = arith.constant 1.000000e+00 : f32
    %1234 = vector.broadcast %cst_410 : f32 to vector<2x32xf32>
    %1235 = arith.addf %1234, %1233 : vector<2x32xf32>
    %1236 = arith.divf %1234, %1235 : vector<2x32xf32>
    %1237 = arith.mulf %1228, %1136 : vector<2x32xf32>
    %1238 = arith.mulf %1222, %1230 : vector<2x32xf32>
    %1239 = arith.addf %1237, %1238 : vector<2x32xf32>
    %1240 = math.tanh %1239 : vector<2x32xf32>
    %1241 = arith.mulf %1236, %1240 : vector<2x32xf32>
    %c5 = arith.constant 5 : index
    %c0_411 = arith.constant 0 : index
    %c0_412 = arith.constant 0 : index
    %1242 = vector.load %arg5[%c5, %c0_411, %c0_412] : memref<8x32x128xf32, #tpu.memory_space<vmem>>, vector<1x32x128xf32>
    %1243 = vector.shape_cast %1242 : vector<1x32x128xf32> to vector<32x128xf32>
    %cst_413 = arith.constant dense<0.000000e+00> : vector<2x128xf32>
    %1244 = tpu.matmul %1241, %1243, %cst_413 {dimension_numbers = #tpu.dot_dimension_numbers<[1], [0], [0], [1], [0, 0, 1, 1], [], []>} : vector<2x32xf32>, vector<32x128xf32>, vector<2x128xf32> -> vector<2x128xf32>
    %1245 = arith.addf %1142, %1244 : vector<2x128xf32>
    %c2_414 = arith.constant 2 : index
    %c0_415 = arith.constant 0 : index
    %c0_416 = arith.constant 0 : index
    %1246 = vector.load %arg2[%c2_414, %c0_415, %c0_416] : memref<4x32x128xf32, #tpu.memory_space<vmem>>, vector<1x32x128xf32>
    %1247 = vector.shape_cast %1246 : vector<1x32x128xf32> to vector<32x128xf32>
    %cst_417 = arith.constant dense<0.000000e+00> : vector<2x128xf32>
    %1248 = tpu.matmul %1175, %1247, %cst_417 {dimension_numbers = #tpu.dot_dimension_numbers<[1], [0], [0], [1], [0, 0, 1, 1], [], []>} : vector<2x32xf32>, vector<32x128xf32>, vector<2x128xf32> -> vector<2x128xf32>
    %c3_418 = arith.constant 3 : index
    %c0_419 = arith.constant 0 : index
    %c0_420 = arith.constant 0 : index
    %1249 = vector.load %arg3[%c3_418, %c0_419, %c0_420] : memref<5x32x128xf32, #tpu.memory_space<vmem>>, vector<1x32x128xf32>
    %1250 = vector.shape_cast %1249 : vector<1x32x128xf32> to vector<32x128xf32>
    %cst_421 = arith.constant dense<0.000000e+00> : vector<2x128xf32>
    %1251 = tpu.matmul %1208, %1250, %cst_421 {dimension_numbers = #tpu.dot_dimension_numbers<[1], [0], [0], [1], [0, 0, 1, 1], [], []>} : vector<2x32xf32>, vector<32x128xf32>, vector<2x128xf32> -> vector<2x128xf32>
    %1252 = arith.addf %1248, %1251 : vector<2x128xf32>
    %1253 = arith.addf %1252, %18 : vector<2x128xf32>
    %1254 = vector.extract_strided_slice %1253 {offsets = [0, 0], sizes = [2, 32], strides = [1, 1]} : vector<2x128xf32> to vector<2x32xf32>
    %1255 = arith.negf %1254 : vector<2x32xf32>
    %1256 = math.exp %1255 : vector<2x32xf32>
    %cst_422 = arith.constant 1.000000e+00 : f32
    %1257 = vector.broadcast %cst_422 : f32 to vector<2x32xf32>
    %1258 = arith.addf %1257, %1256 : vector<2x32xf32>
    %1259 = arith.divf %1257, %1258 : vector<2x32xf32>
    %1260 = vector.extract_strided_slice %1253 {offsets = [0, 32], sizes = [2, 32], strides = [1, 1]} : vector<2x128xf32> to vector<2x32xf32>
    %1261 = arith.negf %1260 : vector<2x32xf32>
    %1262 = math.exp %1261 : vector<2x32xf32>
    %cst_423 = arith.constant 1.000000e+00 : f32
    %1263 = vector.broadcast %cst_423 : f32 to vector<2x32xf32>
    %1264 = arith.addf %1263, %1262 : vector<2x32xf32>
    %1265 = arith.divf %1263, %1264 : vector<2x32xf32>
    %1266 = vector.extract_strided_slice %1253 {offsets = [0, 64], sizes = [2, 32], strides = [1, 1]} : vector<2x128xf32> to vector<2x32xf32>
    %1267 = math.tanh %1266 : vector<2x32xf32>
    %1268 = vector.extract_strided_slice %1253 {offsets = [0, 96], sizes = [2, 32], strides = [1, 1]} : vector<2x128xf32> to vector<2x32xf32>
    %1269 = arith.negf %1268 : vector<2x32xf32>
    %1270 = math.exp %1269 : vector<2x32xf32>
    %cst_424 = arith.constant 1.000000e+00 : f32
    %1271 = vector.broadcast %cst_424 : f32 to vector<2x32xf32>
    %1272 = arith.addf %1271, %1270 : vector<2x32xf32>
    %1273 = arith.divf %1271, %1272 : vector<2x32xf32>
    %1274 = arith.mulf %1265, %1206 : vector<2x32xf32>
    %1275 = arith.mulf %1259, %1267 : vector<2x32xf32>
    %1276 = arith.addf %1274, %1275 : vector<2x32xf32>
    %1277 = math.tanh %1276 : vector<2x32xf32>
    %1278 = arith.mulf %1273, %1277 : vector<2x32xf32>
    %c3_425 = arith.constant 3 : index
    %c0_426 = arith.constant 0 : index
    %c0_427 = arith.constant 0 : index
    %1279 = vector.load %arg2[%c3_425, %c0_426, %c0_427] : memref<4x32x128xf32, #tpu.memory_space<vmem>>, vector<1x32x128xf32>
    %1280 = vector.shape_cast %1279 : vector<1x32x128xf32> to vector<32x128xf32>
    %cst_428 = arith.constant dense<0.000000e+00> : vector<2x128xf32>
    %1281 = tpu.matmul %1208, %1280, %cst_428 {dimension_numbers = #tpu.dot_dimension_numbers<[1], [0], [0], [1], [0, 0, 1, 1], [], []>} : vector<2x32xf32>, vector<32x128xf32>, vector<2x128xf32> -> vector<2x128xf32>
    %c4_429 = arith.constant 4 : index
    %c0_430 = arith.constant 0 : index
    %c0_431 = arith.constant 0 : index
    %1282 = vector.load %arg3[%c4_429, %c0_430, %c0_431] : memref<5x32x128xf32, #tpu.memory_space<vmem>>, vector<1x32x128xf32>
    %1283 = vector.shape_cast %1282 : vector<1x32x128xf32> to vector<32x128xf32>
    %cst_432 = arith.constant dense<0.000000e+00> : vector<2x128xf32>
    %1284 = tpu.matmul %1241, %1283, %cst_432 {dimension_numbers = #tpu.dot_dimension_numbers<[1], [0], [0], [1], [0, 0, 1, 1], [], []>} : vector<2x32xf32>, vector<32x128xf32>, vector<2x128xf32> -> vector<2x128xf32>
    %1285 = arith.addf %1281, %1284 : vector<2x128xf32>
    %1286 = arith.addf %1285, %22 : vector<2x128xf32>
    %1287 = vector.extract_strided_slice %1286 {offsets = [0, 0], sizes = [2, 32], strides = [1, 1]} : vector<2x128xf32> to vector<2x32xf32>
    %1288 = arith.negf %1287 : vector<2x32xf32>
    %1289 = math.exp %1288 : vector<2x32xf32>
    %cst_433 = arith.constant 1.000000e+00 : f32
    %1290 = vector.broadcast %cst_433 : f32 to vector<2x32xf32>
    %1291 = arith.addf %1290, %1289 : vector<2x32xf32>
    %1292 = arith.divf %1290, %1291 : vector<2x32xf32>
    %1293 = vector.extract_strided_slice %1286 {offsets = [0, 32], sizes = [2, 32], strides = [1, 1]} : vector<2x128xf32> to vector<2x32xf32>
    %1294 = arith.negf %1293 : vector<2x32xf32>
    %1295 = math.exp %1294 : vector<2x32xf32>
    %cst_434 = arith.constant 1.000000e+00 : f32
    %1296 = vector.broadcast %cst_434 : f32 to vector<2x32xf32>
    %1297 = arith.addf %1296, %1295 : vector<2x32xf32>
    %1298 = arith.divf %1296, %1297 : vector<2x32xf32>
    %1299 = vector.extract_strided_slice %1286 {offsets = [0, 64], sizes = [2, 32], strides = [1, 1]} : vector<2x128xf32> to vector<2x32xf32>
    %1300 = math.tanh %1299 : vector<2x32xf32>
    %1301 = vector.extract_strided_slice %1286 {offsets = [0, 96], sizes = [2, 32], strides = [1, 1]} : vector<2x128xf32> to vector<2x32xf32>
    %1302 = arith.negf %1301 : vector<2x32xf32>
    %1303 = math.exp %1302 : vector<2x32xf32>
    %cst_435 = arith.constant 1.000000e+00 : f32
    %1304 = vector.broadcast %cst_435 : f32 to vector<2x32xf32>
    %1305 = arith.addf %1304, %1303 : vector<2x32xf32>
    %1306 = arith.divf %1304, %1305 : vector<2x32xf32>
    %1307 = arith.mulf %1298, %1239 : vector<2x32xf32>
    %1308 = arith.mulf %1292, %1300 : vector<2x32xf32>
    %1309 = arith.addf %1307, %1308 : vector<2x32xf32>
    %1310 = math.tanh %1309 : vector<2x32xf32>
    %1311 = arith.mulf %1306, %1310 : vector<2x32xf32>
    %c6 = arith.constant 6 : index
    %c0_436 = arith.constant 0 : index
    %c0_437 = arith.constant 0 : index
    %1312 = vector.load %arg5[%c6, %c0_436, %c0_437] : memref<8x32x128xf32, #tpu.memory_space<vmem>>, vector<1x32x128xf32>
    %1313 = vector.shape_cast %1312 : vector<1x32x128xf32> to vector<32x128xf32>
    %cst_438 = arith.constant dense<0.000000e+00> : vector<2x128xf32>
    %1314 = tpu.matmul %1311, %1313, %cst_438 {dimension_numbers = #tpu.dot_dimension_numbers<[1], [0], [0], [1], [0, 0, 1, 1], [], []>} : vector<2x32xf32>, vector<32x128xf32>, vector<2x128xf32> -> vector<2x128xf32>
    %1315 = arith.addf %1245, %1314 : vector<2x128xf32>
    %c3_439 = arith.constant 3 : index
    %c0_440 = arith.constant 0 : index
    %c0_441 = arith.constant 0 : index
    %1316 = vector.load %arg2[%c3_439, %c0_440, %c0_441] : memref<4x32x128xf32, #tpu.memory_space<vmem>>, vector<1x32x128xf32>
    %1317 = vector.shape_cast %1316 : vector<1x32x128xf32> to vector<32x128xf32>
    %cst_442 = arith.constant dense<0.000000e+00> : vector<2x128xf32>
    %1318 = tpu.matmul %1278, %1317, %cst_442 {dimension_numbers = #tpu.dot_dimension_numbers<[1], [0], [0], [1], [0, 0, 1, 1], [], []>} : vector<2x32xf32>, vector<32x128xf32>, vector<2x128xf32> -> vector<2x128xf32>
    %c4_443 = arith.constant 4 : index
    %c0_444 = arith.constant 0 : index
    %c0_445 = arith.constant 0 : index
    %1319 = vector.load %arg3[%c4_443, %c0_444, %c0_445] : memref<5x32x128xf32, #tpu.memory_space<vmem>>, vector<1x32x128xf32>
    %1320 = vector.shape_cast %1319 : vector<1x32x128xf32> to vector<32x128xf32>
    %cst_446 = arith.constant dense<0.000000e+00> : vector<2x128xf32>
    %1321 = tpu.matmul %1311, %1320, %cst_446 {dimension_numbers = #tpu.dot_dimension_numbers<[1], [0], [0], [1], [0, 0, 1, 1], [], []>} : vector<2x32xf32>, vector<32x128xf32>, vector<2x128xf32> -> vector<2x128xf32>
    %1322 = arith.addf %1318, %1321 : vector<2x128xf32>
    %1323 = arith.addf %1322, %22 : vector<2x128xf32>
    %1324 = vector.extract_strided_slice %1323 {offsets = [0, 0], sizes = [2, 32], strides = [1, 1]} : vector<2x128xf32> to vector<2x32xf32>
    %1325 = arith.negf %1324 : vector<2x32xf32>
    %1326 = math.exp %1325 : vector<2x32xf32>
    %cst_447 = arith.constant 1.000000e+00 : f32
    %1327 = vector.broadcast %cst_447 : f32 to vector<2x32xf32>
    %1328 = arith.addf %1327, %1326 : vector<2x32xf32>
    %1329 = arith.divf %1327, %1328 : vector<2x32xf32>
    %1330 = vector.extract_strided_slice %1323 {offsets = [0, 32], sizes = [2, 32], strides = [1, 1]} : vector<2x128xf32> to vector<2x32xf32>
    %1331 = arith.negf %1330 : vector<2x32xf32>
    %1332 = math.exp %1331 : vector<2x32xf32>
    %cst_448 = arith.constant 1.000000e+00 : f32
    %1333 = vector.broadcast %cst_448 : f32 to vector<2x32xf32>
    %1334 = arith.addf %1333, %1332 : vector<2x32xf32>
    %1335 = arith.divf %1333, %1334 : vector<2x32xf32>
    %1336 = vector.extract_strided_slice %1323 {offsets = [0, 64], sizes = [2, 32], strides = [1, 1]} : vector<2x128xf32> to vector<2x32xf32>
    %1337 = math.tanh %1336 : vector<2x32xf32>
    %1338 = vector.extract_strided_slice %1323 {offsets = [0, 96], sizes = [2, 32], strides = [1, 1]} : vector<2x128xf32> to vector<2x32xf32>
    %1339 = arith.negf %1338 : vector<2x32xf32>
    %1340 = math.exp %1339 : vector<2x32xf32>
    %cst_449 = arith.constant 1.000000e+00 : f32
    %1341 = vector.broadcast %cst_449 : f32 to vector<2x32xf32>
    %1342 = arith.addf %1341, %1340 : vector<2x32xf32>
    %1343 = arith.divf %1341, %1342 : vector<2x32xf32>
    %1344 = arith.mulf %1335, %1309 : vector<2x32xf32>
    %1345 = arith.mulf %1329, %1337 : vector<2x32xf32>
    %1346 = arith.addf %1344, %1345 : vector<2x32xf32>
    %1347 = math.tanh %1346 : vector<2x32xf32>
    %1348 = arith.mulf %1343, %1347 : vector<2x32xf32>
    %c7 = arith.constant 7 : index
    %c0_450 = arith.constant 0 : index
    %c0_451 = arith.constant 0 : index
    %1349 = vector.load %arg5[%c7, %c0_450, %c0_451] : memref<8x32x128xf32, #tpu.memory_space<vmem>>, vector<1x32x128xf32>
    %1350 = vector.shape_cast %1349 : vector<1x32x128xf32> to vector<32x128xf32>
    %cst_452 = arith.constant dense<0.000000e+00> : vector<2x128xf32>
    %1351 = tpu.matmul %1348, %1350, %cst_452 {dimension_numbers = #tpu.dot_dimension_numbers<[1], [0], [0], [1], [0, 0, 1, 1], [], []>} : vector<2x32xf32>, vector<32x128xf32>, vector<2x128xf32> -> vector<2x128xf32>
    %1352 = arith.addf %1315, %1351 : vector<2x128xf32>
    %c0_453 = arith.constant 0 : index
    %c0_454 = arith.constant 0 : index
    %1353 = vector.load %arg6[%c0_453, %c0_454] : memref<1x128xf32, #tpu.memory_space<vmem>>, vector<1x128xf32>
    %1354 = vector.broadcast %1353 : vector<1x128xf32> to vector<2x128xf32>
    %1355 = arith.addf %1352, %1354 : vector<2x128xf32>
    %c0_455 = arith.constant 0 : index
    %c0_456 = arith.constant 0 : index
    %1356 = vector.load %arg7[%c0_455, %c0_456] : memref<2x128xf32, #tpu.memory_space<vmem>>, vector<2x128xf32>
    tpu.vector_store %arg7[%c0_455, %c0_456], %1355 {strides = array<i32>} : memref<2x128xf32, #tpu.memory_space<vmem>>, vector<2x128xf32>,
    return
  }
}

</mosaic_0001>

<bundles_post_ra>
// kernel: tpu_custom_call.1
= control target key start
LH: loop header
LB: loop body
LE: loop exit
PB: predicated region body
PF: predicated region fallthrough
CT: control target
= control target key end

     0   :  { %12 = vsyncpa [#allocation3], 0  ;;  %s10776_s0 = inlined_call_operand.hbm [shape: f32[16,32], index: 0, kind: input, shape index: {}]   ;;  %s10777_s1 = inlined_call_operand.hbm [shape: f32[32,128], index: 1, kind: input, shape index: {}]   ;;  %s10778_s2 = inlined_call_operand.hbm [shape: f32[4,32,128], index: 2, kind: input, shape index: {}]   ;;  %s10779_s3 = inlined_call_operand.hbm [shape: f32[5,32,128], index: 3, kind: input, shape index: {}]   ;;  %s10780_s4 = inlined_call_operand.vmem [shape: f32[5,1,128], index: 4, kind: input, shape index: {}]   ;;  %s10781_s5 = inlined_call_operand.hbm [shape: f32[8,32,128], index: 5, kind: input, shape index: {}]   ;;  %s10782_s6 = inlined_call_operand.vmem [shape: f32[1,128], index: 6, kind: input, shape index: {}]   ;;  %s10783_s7 = inlined_call_operand.hbm [shape: f32[2,128], index: 7, kind: output, shape index: {}]  }
   0x1   :  { %13 = vsyncpa [#allocation6], 0 }
   0x2   :  { %14 = vsyncpa [#allocation9], 0 }
   0x3   :  { %15 = vsyncpa [#allocation4], 0  ;;  %s9577_s24 = smov [#allocation5]   ;;  %s9578_s26 = smov [#allocation8]  }
   0x4   :  { %s33_s25 = sshll.u32 %s9577_s24, 4  ;;  %s57_s27 = sshll.u32 %s9578_s26, 4  ;;  %s34_s25 = int_to_ptr.vmem [resolvable:$true] %s33_s25  ;;  %s9630_s27 = int_to_ptr.vmem [resolvable:$true] %s57_s27 }
   0x5   :  { %s9437_s30 = scalar_lea.hbm %s10777_s1, 512 }
   0x6   :  { %p9438_p0 = scmp.ne.s32.totalorder %s10777_s1, %s9437_s30  ;;  %p9441_p1 = scmp.lt.u32.totalorder %s9437_s30, %s10777_s1 }
   0x8   :  { %p9443_p2 = pnand %p9441_p1, %p9438_p0 }
   0xa   :  { %9446 = shalt.err (!%p9443_p2)
}
   0xb   :  { %s9447_s12 = scalar_lea.vmem %s34_s25, 512  ;;  %p9452_p4 = scmp.lt.s32.totalorder %s34_s25, %s34_s25 }
   0xc   :  { %p9448_p3 = scmp.ne.s32.totalorder %s34_s25, %s9447_s12  ;;  %p9453_p5 = scmp.lt.s32.totalorder %s9447_s12, %s9447_s12 }
   0xe   :  { %p9454_p6 = por %p9453_p5, %p9452_p4 }
  0x10   :  { %p9455_p7 = pnand %p9454_p6, %p9448_p3 }
  0x12   :  { %9458 = shalt.err (!%p9455_p7)
}
  0x13   :  { %s9579_s13 = smov 128   ;;  %s9580_s14 = smov 8  }
  0x14   :  { %39 = dma.hbm_to_vmem [thread:$0]  %s10777_s1, 512, %s34_s25, [#allocation6], %s9579_s13, %s9579_s13, %s9580_s14  }
  0x15   :  { %s9459_s19 = scalar_lea.hbm %s10779_s3, 2560 }
  0x16   :  { %p9460_p8 = scmp.ne.s32.totalorder %s10779_s3, %s9459_s19  ;;  %p9463_p9 = scmp.lt.u32.totalorder %s9459_s19, %s10779_s3 }
  0x18   :  { %p9465_p10 = pnand %p9463_p9, %p9460_p8 }
  0x1a   :  { %9468 = shalt.err (!%p9465_p10)
}
  0x1b   :  { %s9469_s24 = scalar_lea.vmem %s9630_s27, 2560  ;;  %p9474_p12 = scmp.lt.s32.totalorder %s9630_s27, %s9630_s27 }
  0x1c   :  { %p9470_p11 = scmp.ne.s32.totalorder %s9630_s27, %s9469_s24  ;;  %p9475_p13 = scmp.lt.s32.totalorder %s9469_s24, %s9469_s24 }
  0x1e   :  { %p9476_p0 = por %p9475_p13, %p9474_p12 }
  0x20   :  { %p9477_p1 = pnand %p9476_p0, %p9470_p11 }
  0x22   :  { %9480 = shalt.err (!%p9477_p1)
}
  0x23   :  { %63 = dma.hbm_to_vmem [thread:$0]  %s10779_s3, 2560, %s9630_s27, [#allocation9], %s9579_s13, %s9579_s13, %s9580_s14  }
  0x24   :  { %s9581_s26 = smov [#allocation2]   ;;  %s9582_s29 = smov [#allocation7]  }
  0x25   :  { %s21_s28 = sshll.u32 %s9581_s26, 4  ;;  %s45_s30 = sshll.u32 %s9582_s29, 4  ;;  %s22_s28 = int_to_ptr.vmem [resolvable:$true] %s21_s28  ;;  %s9667_s30 = int_to_ptr.vmem [resolvable:$true] %s45_s30 }
  0x26   :  { %s9481_s10 = scalar_lea.hbm %s10776_s0, 256 }
  0x27   :  { %p9482_p2 = scmp.ne.s32.totalorder %s10776_s0, %s9481_s10  ;;  %p9485_p3 = scmp.lt.u32.totalorder %s9481_s10, %s10776_s0 }
  0x29   :  { %p9487_p4 = pnand %p9485_p3, %p9482_p2 }
  0x2b   :  { %9490 = shalt.err (!%p9487_p4)
}
  0x2c   :  { %s9491_s3 = scalar_lea.vmem %s22_s28, 256  ;;  %p9496_p6 = scmp.lt.s32.totalorder %s22_s28, %s22_s28 }
  0x2d   :  { %p9492_p5 = scmp.ne.s32.totalorder %s22_s28, %s9491_s3  ;;  %p9497_p7 = scmp.lt.s32.totalorder %s9491_s3, %s9491_s3 }
  0x2f   :  { %p9498_p8 = por %p9497_p7, %p9496_p6 }
  0x31   :  { %p9499_p9 = pnand %p9498_p8, %p9492_p5 }
  0x33   :  { %9502 = shalt.err (!%p9499_p9)
}
  0x34   :  { %27 = dma.hbm_to_vmem [thread:$0]  %s10776_s0, 256, %s22_s28, [#allocation3], %s9579_s13, %s9579_s13, %s9580_s14  }
  0x35   :  { %s9503_s20 = scalar_lea.hbm %s10778_s2, 2048 }
  0x36   :  { %p9504_p10 = scmp.ne.s32.totalorder %s10778_s2, %s9503_s20  ;;  %p9507_p11 = scmp.lt.u32.totalorder %s9503_s20, %s10778_s2 }
  0x38   :  { %p9509_p12 = pnand %p9507_p11, %p9504_p10 }
  0x3a   :  { %9512 = shalt.err (!%p9509_p12)
}
  0x3b   :  { %s9513_s1 = scalar_lea.vmem %s9667_s30, 2048  ;;  %p9518_p0 = scmp.lt.s32.totalorder %s9667_s30, %s9667_s30 }
  0x3c   :  { %p9514_p13 = scmp.ne.s32.totalorder %s9667_s30, %s9513_s1  ;;  %p9519_p1 = scmp.lt.s32.totalorder %s9513_s1, %s9513_s1 }
  0x3e   :  { %p9520_p2 = por %p9519_p1, %p9518_p0 }
  0x40   :  { %p9521_p3 = pnand %p9520_p2, %p9514_p13 }
  0x42   :  { %9524 = shalt.err (!%p9521_p3)
}
  0x43   :  { %51 = dma.hbm_to_vmem [thread:$0]  %s10778_s2, 2048, %s9667_s30, [#allocation6], %s9579_s13, %s9579_s13, %s9580_s14  }
  0x44   :  { %s9583_s26 = smov [#allocation10]   ;;  %s9525_s9 = scalar_lea.hbm %s10781_s5, 4096 }
  0x45   :  { %s71_s28 = sshll.u32 %s9583_s26, 4  ;;  %p9526_p4 = scmp.ne.s32.totalorder %s10781_s5, %s9525_s9  ;;  %s72_s28 = int_to_ptr.vmem [resolvable:$true] %s71_s28 }
  0x46   :  { %p9529_p5 = scmp.lt.u32.totalorder %s9525_s9, %s10781_s5 }
  0x48   :  { %p9531_p6 = pnand %p9529_p5, %p9526_p4 }
  0x4a   :  { %9534 = shalt.err (!%p9531_p6)
}
  0x4b   :  { %s9535_s16 = scalar_lea.vmem %s72_s28, 4096  ;;  %p9540_p8 = scmp.lt.s32.totalorder %s72_s28, %s72_s28 }
  0x4c   :  { %p9536_p7 = scmp.ne.s32.totalorder %s72_s28, %s9535_s16  ;;  %p9541_p9 = scmp.lt.s32.totalorder %s9535_s16, %s9535_s16 }
  0x4e   :  { %p9542_p10 = por %p9541_p9, %p9540_p8 }
  0x50   :  { %p9543_p11 = pnand %p9542_p10, %p9536_p7 }
  0x52   :  { %9546 = shalt.err (!%p9543_p11)
}
  0x53   :  { %77 = dma.hbm_to_vmem [thread:$0]  %s10781_s5, 4096, %s72_s28, [#allocation9], %s9579_s13, %s9579_s13, %s9580_s14  }
  0x54   :  { %9569 = dma.done.wait [#allocation3], 256  }
  0x55   :  { %9570 = vsyncadd [#allocation3], 4294967040 }
  0x56   :  { %9571 = dma.done.wait [#allocation6], 2560  }
  0x57   :  { %9572 = vsyncadd [#allocation6], 4294964736 }
  0x58   :  { %9573 = dma.done.wait [#allocation9], 6656  }
  0x59   :  { %9574 = vsyncadd [#allocation9], 4294960640  ;;  %v9584_v0 = vmov 0.0|0.0   ;;  %vm9585_vm0 = vmmov 0   ;;  %v9586_v1 = vmov 0.0   ;;  %v97_v2 = vld [vmem:[#allocation5] sm:$0xff] }
  0x5a   :  { %8616 = vmatprep.subr.bf16.mxu1 %v9584_v0  ;;  %7736 = vmatprep.mubr.msk.f32.mxu1 %vm9585_vm0, %v9586_v1  ;;  %v98_v3 = vld [vmem:[#allocation5 + $0x8] sm:$0xff]  ;;  %v222_v4 = vld [vmem:[#allocation8] sm:$0xff]  ;;  %vm108_vm1 = vcmask 261120   ;;  %v99_v7 = vld [vmem:[#allocation5 + $0x10] sm:$0xff]  ;;  %s9587_s14 = smov 64   ;;  %s9588_s3 = smov 32  }
  0x5b   :  { %v8608_v5 = vpack.c.bf16 %v98_v3, %v97_v2  ;;  %v223_v6 = vld [vmem:[#allocation8 + $0x8] sm:$0xff]  ;;  %v100_v8 = vld [vmem:[#allocation5 + $0x18] sm:$0xff]  ;;  %v95_v11 = vld [vmem:[#allocation2] sm:$0xff]  ;;  %s9589_s13 = smov [#allocation11]  }
  0x5c   :  { %v9722_v9 = vpack.c.bf16 %v223_v6, %v222_v4  ;;  %v8612_v10 = vpack.c.bf16 %v100_v8, %v99_v7  ;;  %v224_v12 = vld [vmem:[#allocation8 + $0x10] sm:$0xff]  ;;  %v225_v13 = vld [vmem:[#allocation8 + $0x18] sm:$0xff]  ;;  %7725 = vmatprep.mubr.msk.f32.mxu0 %vm108_vm1, %v95_v11  ;;  %v435_v35 = vld [vmem:[#allocation8 + $0x20] sm:$0xff]  ;;  %s7173_s27 = sshll.u32 %s9589_s13, 4  ;;  %s7174_s27 = int_to_ptr.vmem [resolvable:$true] %s7173_s27 }
  0x5d   :  { %8609 = vmatprep.subr.bf16.mxu0 %v8608_v5  ;;  %v9726_v14 = vpack.c.bf16 %v225_v13, %v224_v12  ;;  %v96_v15 = vld [vmem:[#allocation2 + $0x8] sm:$0xff]  ;;  %v7184_v16 = vld [vmem:[%s10780_s4] ss:$0 sm:$0xff]  ;;  %v436_v36 = vld [vmem:[#allocation8 + $0x28] sm:$0xff]  ;;  %p9552_p13 = scmp.lt.s32.totalorder %s7174_s27, %s7174_s27 }
  0x5e   :  { %8611 = vmatpush3.bf16.msra.mxu0 %v8608_v5  ;;  %8618 = vmatpush3.bf16.msra.mxu1 %v9722_v9  ;;  %v9756_v37 = vpack.c.bf16 %v436_v36, %v435_v35  ;;  %v437_v38 = vld [vmem:[#allocation8 + $0x30] sm:$0xff]  ;;  %v438_v39 = vld [vmem:[#allocation8 + $0x38] sm:$0xff]  ;;  %v430_v43 = vld [vmem:[#allocation7] sm:$0xff] }
  0x5f   :  { %8613 = vmatprep.subr.bf16.mxu0 %v8612_v10  ;;  %8619 = vmatprep.subr.bf16.mxu1 %v9584_v0  ;;  %v9760_v40 = vpack.c.bf16 %v438_v39, %v437_v38  ;;  %v431_v44 = vld [vmem:[#allocation7 + $0x8] sm:$0xff]  ;;  %v432_v46 = vld [vmem:[#allocation7 + $0x10] sm:$0xff]  ;;  %v433_v47 = vld [vmem:[#allocation7 + $0x18] sm:$0xff] }
  0x60   :  { %v9772_v45 = vpack.c.bf16 %v431_v44, %v430_v43  ;;  %v9776_v49 = vpack.c.bf16 %v433_v47, %v432_v46  ;;  %v9794_v56 = vld [vmem:[%s10780_s4 + $0x1] ss:$0 sm:$0xff]  ;;  %v883_v35 = vld [vmem:[#allocation7 + $0x28] sm:$0xff]  ;;  %v890_v39 = vld [vmem:[#allocation8 + $0x58] sm:$0xff] }
  0x61   :  { %v889_v38 = vld [vmem:[#allocation8 + $0x50] sm:$0xff]  ;;  %v885_v44 = vld [vmem:[#allocation7 + $0x38] sm:$0xff] }
  0x62   :  { %8615 = vmatpush3.bf16.msra.mxu0 %v8612_v10  ;;  %8621 = vmatpush3.bf16.msra.mxu1 %v9726_v14  ;;  %v884_v43 = vld [vmem:[#allocation7 + $0x30] sm:$0xff]  ;;  %v9825_v46 = vpack.c.bf16 %v890_v39, %v889_v38 }
  0x63   :  { %8622 = vmatprep.subr.bf16.mxu0 %v9584_v0  ;;  %8628 = vmatprep.subr.bf16.mxu1 %v9584_v0  ;;  %v9832_v47 = vpack.c.bf16 %v885_v44, %v884_v43 }
  0x65   :  { %7726 = vmatmul.mubr.msk.f32.vlgmr.msra.gmra.mrb[0].mxu0 %vm108_vm1, %v96_v15  ;;  %7737 = vmatmul.mubr.f32.vlgmr.msra.gmra.mrb[0].mxu1 %v9586_v1 }
  0x66   :  { %8624 = vmatpush3.bf16.msra.mxu0 %v9722_v9  ;;  %7747 = vmatprep.mubr.msk.f32.mxu0 %vm9585_vm0, %v9586_v1 }
  0x67   :  { %8625 = vmatprep.subr.bf16.mxu0 %v9584_v0  ;;  %7758 = vmatprep.mubr.msk.f32.mxu1 %vm9585_vm0, %v9586_v1 }
  0x68   :  { %8630 = vmatpush3.bf16.msra.mxu1 %v9756_v37 }
  0x69   :  { %8631 = vmatprep.subr.bf16.mxu1 %v9584_v0 }
  0x6a   :  { %8627 = vmatpush3.bf16.msra.mxu0 %v9726_v14 }
  0x6b   :  { %8634 = vmatprep.subr.bf16.mxu0 %v9584_v0 }
  0x6c   :  { %8633 = vmatpush3.bf16.msra.mxu1 %v9760_v40 }
  0x6d   :  { %8640 = vmatprep.subr.bf16.mxu1 %v9584_v0 }
  0x6f   :  { %7759 = vmatmul.mubr.f32.vlgmr.msra.gmra.mrb[2].mxu1 %v9586_v1 }
  0x70   :  { %8642 = vmatpush3.bf16.msra.mxu1 %v9722_v9  ;;  %7780 = vmatprep.mubr.msk.f32.mxu1 %vm9585_vm0, %v9586_v1 }
  0x71   :  { %8643 = vmatprep.subr.bf16.mxu1 %v9584_v0 }
  0x74   :  { %8645 = vmatpush3.bf16.msra.mxu1 %v9726_v14 }
  0x75   :  { %8652 = vmatprep.subr.bf16.mxu1 %v9584_v0 }
 0x138   :  { %v7727_v17 = vpop.f32.mrb[0].mxu0  ;;  %v295_v18 = vpop.f32.mrb[0].mxu1 }
 0x139   :  { %v9745_v19 = vadd.f32 %v7727_v17, %v7184_v16  ;;  %v181_v20 = vpop.f32.mrb[1].mxu0  ;;  %v7738_v21 = vpop.f32.mrb[1].mxu1 }
 0x13a   :  { %v9747_v22 = vadd.f32 %v7184_v16, %v181_v20 }
 0x13c   :  { %v299_v23 = vadd.f32 %v295_v18, %v9747_v22 }
 0x13e   :  { %9109 = vtanh.f32 %v299_v23  ;;  %v7195_v25 = vmul.f32 -1.442695, %v299_v23 }
 0x140   :  { %9111 = vpow2.f32 %v7195_v25 }
 0x142   :  { %v505_v50 = vpop.f32.mrb[2].mxu1 }
 0x143   :  { %v7760_v51 = vpop.f32.mrb[3].mxu1 }
 0x148   :  { %v9110_v24 = vpop.eup %9109 }
 0x149   :  { %309 = vrot.lane.b32.xlu0 %v9110_v24, %s9587_s14 }
 0x14a   :  { %v9112_v26 = vpop.eup %9111 }
 0x14b   :  { %v303_v27 = vadd.f32 1.0, %v9112_v26 }
 0x14d   :  { %9113 = vrcp.f32 %v303_v27 }
 0x157   :  { %v9114_v28 = vpop.eup %9113 }
 0x158   :  { %v307_v31 = vmul.f32 0.0, %v9114_v28 }
 0x1bb   :  { %v310_v29 = vpop.permute.xlu0 %309 }
 0x1bc   :  { %v312_v30 = vmul.f32 %v9114_v28, %v310_v29 }
 0x1be   :  { %314 = vrot.lane.b32.xlu0 %v312_v30, %s9588_s3 }
 0x230   :  { %v315_v32 = vpop.permute.xlu0 %314 }
 0x231   :  { %v9752_v33 = vadd.f32 %v315_v32, %v307_v31  ;;  %v887_v32 = vld [vmem:[#allocation8 + $0x40] sm:$0xff] }
 0x233   :  { %9115 = vtanh.f32 %v9752_v33  ;;  %v411_v15 = vrot.slane %v9752_v33, 6  ;;  %v888_v33 = vld [vmem:[#allocation8 + $0x48] sm:$0xff] }
 0x234   :  { %v9817_v36 = vpack.c.bf16 %v888_v33, %v887_v32 }
 0x23d   :  { %v9116_v34 = vpop.eup %9115 }
 0x23e   :  { %320 = vrot.lane.b32.xlu1 %v9116_v34, %s9587_s14  ;;  %v882_v34 = vld [vmem:[#allocation7 + $0x20] sm:$0xff] }
 0x2b0   :  { %v321_v41 = vpop.permute.xlu1 %320 }
 0x2b1   :  { %v323_v42 = vmul.f32 %v9114_v28, %v321_v41 }
 0x2b3   :  { %325 = vrot.lane.b32.xlu1 %v323_v42, %s9588_s3  ;;  %v9820_v42 = vpack.c.bf16 %v883_v35, %v882_v34 }
 0x325   :  { %v326_v48 = vpop.permute.xlu1 %325 }
 0x326   :  { %7748 = vmatmul.mubr.msk.f32.vlgmr.msra.gmra.mrb[2].mxu0 %vm108_vm1, %v326_v48 }
 0x327   :  { %8636 = vmatpush3.bf16.msra.mxu0 %v9772_v45  ;;  %7769 = vmatprep.mubr.msk.f32.mxu0 %vm9585_vm0, %v9586_v1 }
 0x328   :  { %8637 = vmatprep.subr.bf16.mxu0 %v9584_v0 }
 0x32b   :  { %8639 = vmatpush3.bf16.msra.mxu0 %v9776_v49 }
 0x32c   :  { %8646 = vmatprep.subr.bf16.mxu0 %v9584_v0 }
 0x32e   :  { %7770 = vmatmul.mubr.msk.f32.vlgmr.msra.gmra.mrb[4].mxu0 %vm108_vm1, %v326_v48 }
 0x32f   :  { %8648 = vmatpush3.bf16.msra.mxu0 %v9756_v37  ;;  %7791 = vmatprep.mubr.msk.f32.mxu0 %vm9585_vm0, %v9586_v1 }
 0x330   :  { %8649 = vmatprep.subr.bf16.mxu0 %v9584_v0 }
 0x333   :  { %8651 = vmatpush3.bf16.msra.mxu0 %v9760_v40 }
 0x334   :  { %8658 = vmatprep.subr.bf16.mxu0 %v9584_v0 }
 0x3f9   :  { %v395_v52 = vpop.f32.mrb[2].mxu0 }
 0x3fa   :  { %v400_v53 = vrot.slane %v395_v52, 6  ;;  %v7749_v54 = vpop.f32.mrb[3].mxu0 }
 0x3fc   :  { %v402_v55 = vadd.f32 %v400_v53, %v9747_v22 }
 0x3fe   :  { %9117 = vtanh.f32 %v402_v55  ;;  %v7197_v63 = vmul.f32 -1.442695, %v402_v55 }
 0x401   :  { %v575_v57 = vpop.f32.mrb[4].mxu0 }
 0x402   :  { %v576_v58 = vadd.f32 %v575_v57, %v505_v50  ;;  %v7771_v59 = vpop.f32.mrb[5].mxu0 }
 0x404   :  { %v579_v60 = vadd.f32 %v9794_v56, %v576_v58 }
 0x406   :  { %9119 = vtanh.f32 %v579_v60  ;;  %v7199_v2 = vmul.f32 -1.442695, %v579_v60 }
 0x407   :  { %9121 = vpow2.f32 %v7197_v63  ;;  %v9860_v63 = vld [vmem:[%s10780_s4 + $0x2] ss:$0 sm:$0xff] }
 0x408   :  { %v9118_v61 = vpop.eup %9117  ;;  %9123 = vpow2.f32 %v7199_v2 }
 0x409   :  { %415 = vrot.lane.b32.xlu0 %v9118_v61, %s9587_s14 }
 0x410   :  { %v9120_v62 = vpop.eup %9119 }
 0x411   :  { %589 = vrot.lane.b32.xlu1 %v9120_v62, %s9587_s14  ;;  %v9122_v3 = vpop.eup %9121 }
 0x412   :  { %v406_v4 = vadd.f32 1.0, %v9122_v3  ;;  %v9124_v5 = vpop.eup %9123 }
 0x413   :  { %v583_v6 = vadd.f32 1.0, %v9124_v5 }
 0x414   :  { %9125 = vrcp.f32 %v406_v4 }
 0x415   :  { %9127 = vrcp.f32 %v583_v6 }
 0x41e   :  { %v9126_v7 = vpop.eup %9125 }
 0x41f   :  { %v9128_v11 = vpop.eup %9127  ;;  %v413_v16 = vmul.f32 %v9126_v7, %v411_v15 }
 0x420   :  { %v587_v20 = vmul.f32 0.0, %v9128_v11 }
 0x47b   :  { %v416_v8 = vpop.permute.xlu0 %415 }
 0x47c   :  { %v418_v10 = vmul.f32 %v9126_v7, %v416_v8 }
 0x47e   :  { %420 = vrot.lane.b32.xlu0 %v418_v10, %s9588_s3 }
 0x483   :  { %v590_v12 = vpop.permute.xlu1 %589 }
 0x484   :  { %v592_v13 = vmul.f32 %v9128_v11, %v590_v12 }
 0x486   :  { %594 = vrot.lane.b32.xlu1 %v592_v13, %s9588_s3 }
 0x4f0   :  { %v421_v17 = vpop.permute.xlu0 %420 }
 0x4f1   :  { %v9802_v18 = vadd.f32 %v421_v17, %v413_v16 }
 0x4f3   :  { %9129 = vtanh.f32 %v9802_v18  ;;  %v692_v32 = vrot.slane %v9802_v18, 6 }
 0x4f8   :  { %v595_v21 = vpop.permute.xlu1 %594 }
 0x4f9   :  { %v9805_v23 = vadd.f32 %v595_v21, %v587_v20 }
 0x4fb   :  { %9131 = vtanh.f32 %v9805_v23 }
 0x4fd   :  { %v9130_v24 = vpop.eup %9129 }
 0x4fe   :  { %426 = vrot.lane.b32.xlu0 %v9130_v24, %s9587_s14 }
 0x505   :  { %v9132_v25 = vpop.eup %9131 }
 0x506   :  { %600 = vrot.lane.b32.xlu1 %v9132_v25, %s9587_s14 }
 0x570   :  { %v427_v26 = vpop.permute.xlu0 %426 }
 0x571   :  { %v429_v27 = vmul.f32 %v9126_v7, %v427_v26 }
 0x573   :  { %v605_v28 = vrot.slane %v429_v27, 2 }
 0x575   :  { %606 = vrot.lane.b32.xlu0 %v605_v28, %s9588_s3 }
 0x578   :  { %v601_v29 = vpop.permute.xlu1 %600 }
 0x579   :  { %v603_v30 = vmul.f32 %v9128_v11, %v601_v29 }
 0x57b   :  { %712 = vrot.lane.b32.xlu1 %v603_v30, %s9588_s3 }
 0x5e7   :  { %v607_v31 = vpop.permute.xlu0 %606 }
 0x5e8   :  { %7781 = vmatmul.mubr.msk.f32.vlgmr.msra.gmra.mrb[4].mxu1 %vm108_vm1, %v607_v31 }
 0x5e9   :  { %8654 = vmatpush3.bf16.msra.mxu1 %v9772_v45  ;;  %7802 = vmatprep.mubr.msk.f32.mxu1 %vm9585_vm0, %v9586_v1 }
 0x5ea   :  { %8655 = vmatprep.subr.bf16.mxu1 %v9584_v0 }
 0x5ed   :  { %8657 = vmatpush3.bf16.msra.mxu1 %v9776_v49  ;;  %v713_v41 = vpop.permute.xlu1 %712 }
 0x5ee   :  { %7792 = vmatmul.mubr.msk.f32.vlgmr.msra.gmra.mrb[6].mxu0 %vm108_vm1, %v713_v41  ;;  %8664 = vmatprep.subr.bf16.mxu1 %v9584_v0 }
 0x5ef   :  { %8660 = vmatpush3.bf16.msra.mxu0 %v9817_v36  ;;  %7813 = vmatprep.mubr.msk.f32.mxu0 %vm9585_vm0, %v9586_v1 }
 0x5f0   :  { %7803 = vmatmul.mubr.msk.f32.vlgmr.msra.gmra.mrb[6].mxu1 %vm108_vm1, %v607_v31  ;;  %8661 = vmatprep.subr.bf16.mxu0 %v9584_v0 }
 0x5f1   :  { %8666 = vmatpush3.bf16.msra.mxu1 %v9820_v42  ;;  %7824 = vmatprep.mubr.msk.f32.mxu1 %vm9585_vm0, %v9586_v1 }
 0x5f2   :  { %8667 = vmatprep.subr.bf16.mxu1 %v9584_v0 }
 0x5f3   :  { %8663 = vmatpush3.bf16.msra.mxu0 %v9825_v46 }
 0x5f4   :  { %8670 = vmatprep.subr.bf16.mxu0 %v9584_v0 }
 0x5f5   :  { %8669 = vmatpush3.bf16.msra.mxu1 %v9832_v47 }
 0x5f6   :  { %7814 = vmatmul.mubr.f32.vlgmr.msra.gmra.mrb[8].mxu0 %v9586_v1  ;;  %8676 = vmatprep.subr.bf16.mxu1 %v9584_v0 }
 0x5f7   :  { %8672 = vmatpush3.bf16.msra.mxu0 %v9722_v9  ;;  %7835 = vmatprep.mubr.msk.f32.mxu0 %vm9585_vm0, %v9586_v1 }
 0x5f8   :  { %7825 = vmatmul.mubr.msk.f32.vlgmr.msra.gmra.mrb[8].mxu1 %vm108_vm1, %v713_v41  ;;  %8673 = vmatprep.subr.bf16.mxu0 %v9584_v0 }
 0x5f9   :  { %8678 = vmatpush3.bf16.msra.mxu1 %v9756_v37  ;;  %7846 = vmatprep.mubr.msk.f32.mxu1 %vm9585_vm0, %v9586_v1 }
 0x5fa   :  { %8679 = vmatprep.subr.bf16.mxu1 %v9584_v0 }
 0x5fb   :  { %8675 = vmatpush3.bf16.msra.mxu0 %v9726_v14 }
 0x5fc   :  { %8682 = vmatprep.subr.bf16.mxu0 %v9584_v0 }
 0x5fd   :  { %8681 = vmatpush3.bf16.msra.mxu1 %v9760_v40 }
 0x5fe   :  { %8688 = vmatprep.subr.bf16.mxu1 %v9584_v0 }
 0x6bb   :  { %v676_v48 = vpop.f32.mrb[4].mxu1 }
 0x6bc   :  { %v681_v50 = vrot.slane %v676_v48, 4  ;;  %v7782_v51 = vpop.f32.mrb[5].mxu1 }
 0x6be   :  { %v683_v52 = vadd.f32 %v681_v50, %v9747_v22 }
 0x6c0   :  { %9133 = vtanh.f32 %v683_v52  ;;  %v7201_v8 = vmul.f32 -1.442695, %v683_v52 }
 0x6c1   :  { %v782_v53 = vpop.f32.mrb[6].mxu0 }
 0x6c2   :  { %v7793_v54 = vpop.f32.mrb[7].mxu0 }
 0x6c3   :  { %v852_v55 = vpop.f32.mrb[6].mxu1 }
 0x6c4   :  { %v853_v57 = vadd.f32 %v852_v55, %v782_v53  ;;  %v7804_v58 = vpop.f32.mrb[7].mxu1 }
 0x6c6   :  { %v856_v59 = vadd.f32 %v9794_v56, %v853_v57 }
 0x6c8   :  { %9135 = vtanh.f32 %v856_v59  ;;  %v7204_v10 = vmul.f32 -1.442695, %v856_v59 }
 0x6c9   :  { %v957_v60 = vpop.f32.mrb[8].mxu0 }
 0x6ca   :  { %v9134_v61 = vpop.eup %9133  ;;  %v7815_v62 = vpop.f32.mrb[9].mxu0 }
 0x6cb   :  { %v1027_v2 = vpop.f32.mrb[8].mxu1  ;;  %696 = vrot.lane.b32.xlu0 %v9134_v61, %s9587_s14  ;;  %v1509_v61 = vld [vmem:[#allocation8 + $0x60] sm:$0xff]  ;;  %v1510_v62 = vld [vmem:[#allocation8 + $0x68] sm:$0xff] }
 0x6cc   :  { %v1028_v3 = vadd.f32 %v1027_v2, %v957_v60  ;;  %v7826_v4 = vpop.f32.mrb[9].mxu1  ;;  %v1504_v2 = vld [vmem:[#allocation7 + $0x40] sm:$0xff] }
 0x6cd   :  { %v9904_v4 = vpack.c.bf16 %v1510_v62, %v1509_v61 }
 0x6ce   :  { %v1031_v5 = vadd.f32 %v9860_v63, %v1028_v3  ;;  %v1505_v3 = vld [vmem:[#allocation7 + $0x48] sm:$0xff] }
 0x6d0   :  { %9137 = vtanh.f32 %v1031_v5  ;;  %v7206_v12 = vmul.f32 -1.442695, %v1031_v5  ;;  %v1511_v5 = vld [vmem:[#allocation8 + $0x70] sm:$0xff] }
 0x6d1   :  { %9139 = vpow2.f32 %v7201_v8  ;;  %v9908_v8 = vpack.c.bf16 %v1505_v3, %v1504_v2 }
 0x6d2   :  { %v9136_v6 = vpop.eup %9135  ;;  %9141 = vpow2.f32 %v7204_v10  ;;  %v1506_v10 = vld [vmem:[#allocation7 + $0x50] sm:$0xff] }
 0x6d3   :  { %866 = vrot.lane.b32.xlu1 %v9136_v6, %s9587_s14  ;;  %9143 = vpow2.f32 %v7206_v12  ;;  %v1512_v6 = vld [vmem:[#allocation8 + $0x78] sm:$0xff] }
 0x6d4   :  { %v9913_v12 = vpack.c.bf16 %v1512_v6, %v1511_v5 }
 0x6da   :  { %v9138_v7 = vpop.eup %9137 }
 0x6db   :  { %1041 = vrot.lane.b32.xlu0 %v9138_v7, %s9587_s14  ;;  %v9140_v11 = vpop.eup %9139 }
 0x6dc   :  { %v687_v13 = vadd.f32 1.0, %v9140_v11  ;;  %v9142_v15 = vpop.eup %9141  ;;  %v1507_v11 = vld [vmem:[#allocation7 + $0x58] sm:$0xff] }
 0x6dd   :  { %v860_v16 = vadd.f32 1.0, %v9142_v15  ;;  %v9144_v17 = vpop.eup %9143 }
 0x6de   :  { %9145 = vrcp.f32 %v687_v13  ;;  %v1035_v25 = vadd.f32 1.0, %v9144_v17  ;;  %v9920_v13 = vpack.c.bf16 %v1507_v11, %v1506_v10 }
 0x6df   :  { %9147 = vrcp.f32 %v860_v16 }
 0x6e0   :  { %9149 = vrcp.f32 %v1035_v25 }
 0x6e8   :  { %v9146_v20 = vpop.eup %9145 }
 0x6e9   :  { %v9148_v26 = vpop.eup %9147  ;;  %v694_v33 = vmul.f32 %v9146_v20, %v692_v32 }
 0x6ea   :  { %v9150_v29 = vpop.eup %9149  ;;  %v864_v38 = vmul.f32 %v9148_v26, %v9805_v23 }
 0x6eb   :  { %v1039_v44 = vmul.f32 0.0, %v9150_v29 }
 0x73d   :  { %v697_v21 = vpop.permute.xlu0 %696 }
 0x73e   :  { %v699_v24 = vmul.f32 %v9146_v20, %v697_v21 }
 0x740   :  { %701 = vrot.lane.b32.xlu1 %v699_v24, %s9588_s3 }
 0x745   :  { %v867_v27 = vpop.permute.xlu1 %866 }
 0x746   :  { %v869_v28 = vmul.f32 %v9148_v26, %v867_v27 }
 0x748   :  { %871 = vrot.lane.b32.xlu0 %v869_v28, %s9588_s3 }
 0x74d   :  { %v1042_v30 = vpop.permute.xlu0 %1041 }
 0x74e   :  { %v1044_v31 = vmul.f32 %v9150_v29, %v1042_v30 }
 0x750   :  { %1046 = vrot.lane.b32.xlu1 %v1044_v31, %s9588_s3 }
 0x7b2   :  { %v702_v34 = vpop.permute.xlu1 %701 }
 0x7b3   :  { %v9870_v35 = vadd.f32 %v702_v34, %v694_v33 }
 0x7b5   :  { %9151 = vtanh.f32 %v9870_v35 }
 0x7ba   :  { %v872_v39 = vpop.permute.xlu0 %871 }
 0x7bb   :  { %v9874_v41 = vadd.f32 %v872_v39, %v864_v38 }
 0x7bd   :  { %9153 = vtanh.f32 %v9874_v41 }
 0x7bf   :  { %v9152_v43 = vpop.eup %9151 }
 0x7c0   :  { %707 = vrot.lane.b32.xlu0 %v9152_v43, %s9587_s14 }
 0x7c2   :  { %v1047_v48 = vpop.permute.xlu1 %1046 }
 0x7c3   :  { %v9878_v50 = vadd.f32 %v1047_v48, %v1039_v44  ;;  %v9951_v44 = vld [vmem:[%s10780_s4 + $0x3] ss:$0 sm:$0xff] }
 0x7c5   :  { %9155 = vtanh.f32 %v9878_v50 }
 0x7c7   :  { %v9154_v18 = vpop.eup %9153 }
 0x7c8   :  { %877 = vrot.lane.b32.xlu1 %v9154_v18, %s9587_s14 }
 0x7cf   :  { %v9156_v51 = vpop.eup %9155 }
 0x7d0   :  { %1052 = vrot.lane.b32.xlu0 %v9156_v51, %s9587_s14 }
 0x832   :  { %v708_v23 = vpop.permute.xlu0 %707 }
 0x833   :  { %v710_v52 = vmul.f32 %v9146_v20, %v708_v23 }
 0x835   :  { %v1057_v53 = vrot.slane %v710_v52, 4 }
 0x837   :  { %1058 = vrot.lane.b32.xlu1 %v1057_v53, %s9588_s3 }
 0x83a   :  { %v878_v54 = vpop.permute.xlu1 %877 }
 0x83b   :  { %v880_v55 = vmul.f32 %v9148_v26, %v878_v54 }
 0x83d   :  { %1164 = vrot.lane.b32.xlu0 %v880_v55, %s9588_s3 }
 0x842   :  { %v1053_v57 = vpop.permute.xlu0 %1052 }
 0x843   :  { %v1055_v58 = vmul.f32 %v9150_v29, %v1053_v57 }
 0x845   :  { %1334 = vrot.lane.b32.xlu1 %v1055_v58, %s9588_s3 }
 0x8a9   :  { %v1059_v59 = vpop.permute.xlu1 %1058 }
 0x8aa   :  { %7836 = vmatmul.mubr.msk.f32.vlgmr.msra.gmra.mrb[10].mxu0 %vm108_vm1, %v1059_v59 }
 0x8ab   :  { %8684 = vmatpush3.bf16.msra.mxu0 %v9772_v45  ;;  %7857 = vmatprep.mubr.msk.f32.mxu0 %vm9585_vm0, %v9586_v1 }
 0x8ac   :  { %8685 = vmatprep.subr.bf16.mxu0 %v9584_v0 }
 0x8af   :  { %8687 = vmatpush3.bf16.msra.mxu0 %v9776_v49  ;;  %v1165_v60 = vpop.permute.xlu0 %1164 }
 0x8b0   :  { %7847 = vmatmul.mubr.msk.f32.vlgmr.msra.gmra.mrb[10].mxu1 %vm108_vm1, %v1165_v60  ;;  %8694 = vmatprep.subr.bf16.mxu0 %v9584_v0 }
 0x8b1   :  { %8690 = vmatpush3.bf16.msra.mxu1 %v9817_v36  ;;  %7868 = vmatprep.mubr.msk.f32.mxu1 %vm9585_vm0, %v9586_v1 }
 0x8b2   :  { %7858 = vmatmul.mubr.msk.f32.vlgmr.msra.gmra.mrb[12].mxu0 %vm108_vm1, %v1059_v59  ;;  %8691 = vmatprep.subr.bf16.mxu1 %v9584_v0 }
 0x8b3   :  { %8696 = vmatpush3.bf16.msra.mxu0 %v9820_v42  ;;  %7879 = vmatprep.mubr.msk.f32.mxu0 %vm9585_vm0, %v9586_v1 }
 0x8b4   :  { %8697 = vmatprep.subr.bf16.mxu0 %v9584_v0 }
 0x8b5   :  { %8693 = vmatpush3.bf16.msra.mxu1 %v9825_v46 }
 0x8b6   :  { %8700 = vmatprep.subr.bf16.mxu1 %v9584_v0 }
 0x8b7   :  { %8699 = vmatpush3.bf16.msra.mxu0 %v9832_v47  ;;  %v1335_v7 = vpop.permute.xlu1 %1334 }
 0x8b8   :  { %7869 = vmatmul.mubr.msk.f32.vlgmr.msra.gmra.mrb[12].mxu1 %vm108_vm1, %v1335_v7  ;;  %8706 = vmatprep.subr.bf16.mxu0 %v9584_v0 }
 0x8b9   :  { %8702 = vmatpush3.bf16.msra.mxu1 %v9904_v4  ;;  %7890 = vmatprep.mubr.msk.f32.mxu1 %vm9585_vm0, %v9586_v1 }
 0x8ba   :  { %7880 = vmatmul.mubr.msk.f32.vlgmr.msra.gmra.mrb[14].mxu0 %vm108_vm1, %v1165_v60  ;;  %8703 = vmatprep.subr.bf16.mxu1 %v9584_v0 }
 0x8bb   :  { %8708 = vmatpush3.bf16.msra.mxu0 %v9908_v8  ;;  %7901 = vmatprep.mubr.msk.f32.mxu0 %vm9585_vm0, %v9586_v1 }
 0x8bc   :  { %8709 = vmatprep.subr.bf16.mxu0 %v9584_v0 }
 0x8bd   :  { %8705 = vmatpush3.bf16.msra.mxu1 %v9913_v12 }
 0x8be   :  { %8712 = vmatprep.subr.bf16.mxu1 %v9584_v0 }
 0x8bf   :  { %8711 = vmatpush3.bf16.msra.mxu0 %v9920_v13 }
 0x8c0   :  { %7891 = vmatmul.mubr.f32.vlgmr.msra.gmra.mrb[14].mxu1 %v9586_v1  ;;  %8718 = vmatprep.subr.bf16.mxu0 %v9584_v0 }
 0x8c1   :  { %8714 = vmatpush3.bf16.msra.mxu1 %v9722_v9  ;;  %7912 = vmatprep.mubr.msk.f32.mxu1 %vm9585_vm0, %v9586_v1 }
 0x8c2   :  { %7902 = vmatmul.mubr.msk.f32.vlgmr.msra.gmra.mrb[16].mxu0 %vm108_vm1, %v1335_v7  ;;  %8715 = vmatprep.subr.bf16.mxu1 %v9584_v0 }
 0x8c3   :  { %8720 = vmatpush3.bf16.msra.mxu0 %v9756_v37  ;;  %7923 = vmatprep.mubr.msk.f32.mxu0 %vm9585_vm0, %v9586_v1 }
 0x8c4   :  { %8721 = vmatprep.subr.bf16.mxu0 %v9584_v0 }
 0x8c5   :  { %8717 = vmatpush3.bf16.msra.mxu1 %v9726_v14 }
 0x8c6   :  { %8724 = vmatprep.subr.bf16.mxu1 %v9584_v0 }
 0x8c7   :  { %8723 = vmatpush3.bf16.msra.mxu0 %v9760_v40 }
 0x8c8   :  { %8730 = vmatprep.subr.bf16.mxu0 %v9584_v0 }
 0x97d   :  { %v1128_v15 = vpop.f32.mrb[10].mxu0 }
 0x97e   :  { %v1133_v16 = vrot.slane %v1128_v15, 2  ;;  %v7837_v17 = vpop.f32.mrb[11].mxu0 }
 0x980   :  { %v1135_v20 = vadd.f32 %v1133_v16, %v9747_v22 }
 0x982   :  { %9157 = vtanh.f32 %v1135_v20  ;;  %v7208_v54 = vmul.f32 -1.442695, %v1135_v20 }
 0x983   :  { %v1234_v21 = vpop.f32.mrb[10].mxu1 }
 0x984   :  { %v7848_v24 = vpop.f32.mrb[11].mxu1 }
 0x985   :  { %v1304_v25 = vpop.f32.mrb[12].mxu0 }
 0x986   :  { %v1305_v26 = vadd.f32 %v1304_v25, %v1234_v21  ;;  %v7859_v27 = vpop.f32.mrb[13].mxu0 }
 0x988   :  { %v1308_v28 = vadd.f32 %v9794_v56, %v1305_v26 }
 0x98a   :  { %9159 = vtanh.f32 %v1308_v28  ;;  %v7211_v55 = vmul.f32 -1.442695, %v1308_v28  ;;  %v1144_v28 = vrot.slane %v9870_v35, 6 }
 0x98b   :  { %v1404_v29 = vpop.f32.mrb[12].mxu1 }
 0x98c   :  { %v9158_v30 = vpop.eup %9157  ;;  %v7870_v31 = vpop.f32.mrb[13].mxu1 }
 0x98d   :  { %v1474_v32 = vpop.f32.mrb[14].mxu0  ;;  %1148 = vrot.lane.b32.xlu0 %v9158_v30, %s9587_s14 }
 0x98e   :  { %v1475_v33 = vadd.f32 %v1474_v32, %v1404_v29  ;;  %v7881_v34 = vpop.f32.mrb[15].mxu0 }
 0x990   :  { %v1478_v38 = vadd.f32 %v9860_v63, %v1475_v33 }
 0x992   :  { %9161 = vtanh.f32 %v1478_v38  ;;  %v7214_v58 = vmul.f32 -1.442695, %v1478_v38 }
 0x993   :  { %v1579_v22 = vpop.f32.mrb[14].mxu1 }
 0x994   :  { %v9160_v39 = vpop.eup %9159  ;;  %v7892_v43 = vpop.f32.mrb[15].mxu1 }
 0x995   :  { %1318 = vrot.lane.b32.xlu1 %v9160_v39, %s9587_s14  ;;  %v1649_v48 = vpop.f32.mrb[16].mxu0 }
 0x996   :  { %v1650_v18 = vadd.f32 %v1649_v48, %v1579_v22  ;;  %v7903_v51 = vpop.f32.mrb[17].mxu0 }
 0x998   :  { %v1653_v23 = vadd.f32 %v9951_v44, %v1650_v18 }
 0x99a   :  { %9163 = vtanh.f32 %v1653_v23  ;;  %v7216_v61 = vmul.f32 -1.442695, %v1653_v23 }
 0x99b   :  { %9165 = vpow2.f32 %v7208_v54 }
 0x99c   :  { %v9162_v52 = vpop.eup %9161  ;;  %9167 = vpow2.f32 %v7211_v55 }
 0x99d   :  { %1488 = vrot.lane.b32.xlu0 %v9162_v52, %s9587_s14  ;;  %9169 = vpow2.f32 %v7214_v58 }
 0x9a4   :  { %v9164_v53 = vpop.eup %9163 }
 0x9a5   :  { %1663 = vrot.lane.b32.xlu1 %v9164_v53, %s9587_s14  ;;  %v9166_v57 = vpop.eup %9165 }
 0x9a6   :  { %v1139_v59 = vadd.f32 1.0, %v9166_v57  ;;  %v9168_v60 = vpop.eup %9167 }
 0x9a7   :  { %v1312_v62 = vadd.f32 1.0, %v9168_v60  ;;  %v9170_v2 = vpop.eup %9169 }
 0x9a8   :  { %9171 = vrcp.f32 %v1139_v59  ;;  %v1482_v7 = vadd.f32 1.0, %v9170_v2 }
 0x9a9   :  { %9173 = vpow2.f32 %v7216_v61 }
 0x9aa   :  { %9175 = vrcp.f32 %v1312_v62 }
 0x9ab   :  { %9177 = vrcp.f32 %v1482_v7  ;;  %v2294_v7 = vld [vmem:[#allocation7 + $0x68] sm:$0xff] }
 0x9b2   :  { %v9172_v3 = vpop.eup %9171 }
 0x9b3   :  { %v9174_v10 = vpop.eup %9173  ;;  %v1146_v29 = vmul.f32 %v9172_v3, %v1144_v28 }
 0x9b4   :  { %v9176_v11 = vpop.eup %9175  ;;  %v1657_v17 = vadd.f32 1.0, %v9174_v10 }
 0x9b5   :  { %v9178_v20 = vpop.eup %9177  ;;  %v1316_v32 = vmul.f32 %v9176_v11, %v9874_v41 }
 0x9b6   :  { %9179 = vrcp.f32 %v1657_v17  ;;  %v1486_v22 = vmul.f32 %v9178_v20, %v9878_v50 }
 0x9c0   :  { %v9180_v25 = vpop.eup %9179 }
 0x9c1   :  { %v1661_v48 = vmul.f32 0.0, %v9180_v25 }
 0x9ff   :  { %v1149_v5 = vpop.permute.xlu0 %1148 }
 0xa00   :  { %v1151_v6 = vmul.f32 %v9172_v3, %v1149_v5  ;;  %v2299_v5 = vld [vmem:[#allocation8 + $0x88] sm:$0xff] }
 0xa02   :  { %1153 = vrot.lane.b32.xlu0 %v1151_v6, %s9588_s3  ;;  %v2293_v6 = vld [vmem:[#allocation7 + $0x60] sm:$0xff] }
 0xa03   :  { %v10019_v17 = vpack.c.bf16 %v2294_v7, %v2293_v6 }
 0xa07   :  { %v1319_v15 = vpop.permute.xlu1 %1318 }
 0xa08   :  { %v1321_v16 = vmul.f32 %v9176_v11, %v1319_v15  ;;  %v2301_v15 = vld [vmem:[#allocation8 + $0x98] sm:$0xff] }
 0xa0a   :  { %1323 = vrot.lane.b32.xlu1 %v1321_v16, %s9588_s3 }
 0xa0f   :  { %v1489_v21 = vpop.permute.xlu0 %1488 }
 0xa10   :  { %v1491_v24 = vmul.f32 %v9178_v20, %v1489_v21  ;;  %v2296_v21 = vld [vmem:[#allocation7 + $0x78] sm:$0xff] }
 0xa12   :  { %1493 = vrot.lane.b32.xlu0 %v1491_v24, %s9588_s3 }
 0xa17   :  { %v1664_v26 = vpop.permute.xlu1 %1663 }
 0xa18   :  { %v1666_v27 = vmul.f32 %v9180_v25, %v1664_v26 }
 0xa1a   :  { %1668 = vrot.lane.b32.xlu1 %v1666_v27, %s9588_s3 }
 0xa74   :  { %v1154_v30 = vpop.permute.xlu0 %1153 }
 0xa75   :  { %v9961_v31 = vadd.f32 %v1154_v30, %v1146_v29 }
 0xa77   :  { %9181 = vtanh.f32 %v9961_v31 }
 0xa7c   :  { %v1324_v33 = vpop.permute.xlu1 %1323 }
 0xa7d   :  { %v9965_v34 = vadd.f32 %v1324_v33, %v1316_v32 }
 0xa7f   :  { %9183 = vtanh.f32 %v9965_v34 }
 0xa81   :  { %v9182_v38 = vpop.eup %9181 }
 0xa82   :  { %1159 = vrot.lane.b32.xlu0 %v9182_v38, %s9587_s14 }
 0xa84   :  { %v1494_v39 = vpop.permute.xlu0 %1493 }
 0xa85   :  { %v9970_v35 = vadd.f32 %v1494_v39, %v1486_v22 }
 0xa87   :  { %9185 = vtanh.f32 %v9970_v35 }
 0xa89   :  { %v9184_v43 = vpop.eup %9183 }
 0xa8a   :  { %1329 = vrot.lane.b32.xlu1 %v9184_v43, %s9587_s14 }
 0xa8c   :  { %v1669_v41 = vpop.permute.xlu1 %1668 }
 0xa8d   :  { %v9974_v18 = vadd.f32 %v1669_v41, %v1661_v48 }
 0xa8f   :  { %9187 = vtanh.f32 %v9974_v18 }
 0xa91   :  { %v9186_v51 = vpop.eup %9185 }
 0xa92   :  { %1499 = vrot.lane.b32.xlu0 %v9186_v51, %s9587_s14 }
 0xa99   :  { %v9188_v23 = vpop.eup %9187 }
 0xa9a   :  { %1674 = vrot.lane.b32.xlu1 %v9188_v23, %s9587_s14 }
 0xaf4   :  { %v1160_v50 = vpop.permute.xlu0 %1159 }
 0xaf5   :  { %v1162_v52 = vmul.f32 %v9172_v3, %v1160_v50  ;;  %v2298_v3 = vld [vmem:[#allocation8 + $0x80] sm:$0xff] }
 0xaf6   :  { %v10015_v10 = vpack.c.bf16 %v2299_v5, %v2298_v3 }
 0xaf7   :  { %v1679_v53 = vrot.slane %v1162_v52, 6 }
 0xaf9   :  { %1680 = vrot.lane.b32.xlu0 %v1679_v53, %s9588_s3 }
 0xafc   :  { %v1330_v54 = vpop.permute.xlu1 %1329 }
 0xafd   :  { %v1332_v55 = vmul.f32 %v9176_v11, %v1330_v54  ;;  %v2300_v11 = vld [vmem:[#allocation8 + $0x90] sm:$0xff] }
 0xafe   :  { %v10024_v24 = vpack.c.bf16 %v2301_v15, %v2300_v11 }
 0xaff   :  { %1783 = vrot.lane.b32.xlu1 %v1332_v55, %s9588_s3 }
 0xb04   :  { %v1500_v57 = vpop.permute.xlu0 %1499 }
 0xb05   :  { %v1502_v58 = vmul.f32 %v9178_v20, %v1500_v57  ;;  %v2295_v20 = vld [vmem:[#allocation7 + $0x70] sm:$0xff] }
 0xb07   :  { %1953 = vrot.lane.b32.xlu0 %v1502_v58, %s9588_s3 }
 0xb0c   :  { %v1675_v59 = vpop.permute.xlu1 %1674 }
 0xb0d   :  { %v1677_v60 = vmul.f32 %v9180_v25, %v1675_v59  ;;  %v10031_v25 = vpack.c.bf16 %v2296_v21, %v2295_v20 }
 0xb0f   :  { %2123 = vrot.lane.b32.xlu1 %v1677_v60, %s9588_s3 }
 0xb6b   :  { %v1681_v61 = vpop.permute.xlu0 %1680 }
 0xb6c   :  { %7913 = vmatmul.mubr.msk.f32.vlgmr.msra.gmra.mrb[16].mxu1 %vm108_vm1, %v1681_v61 }
 0xb6d   :  { %8726 = vmatpush3.bf16.msra.mxu1 %v9772_v45  ;;  %7934 = vmatprep.mubr.msk.f32.mxu1 %vm9585_vm0, %v9586_v1 }
 0xb6e   :  { %8727 = vmatprep.subr.bf16.mxu1 %v9584_v0 }
 0xb71   :  { %8729 = vmatpush3.bf16.msra.mxu1 %v9776_v49  ;;  %v1784_v62 = vpop.permute.xlu1 %1783 }
 0xb72   :  { %7924 = vmatmul.mubr.msk.f32.vlgmr.msra.gmra.mrb[18].mxu0 %vm108_vm1, %v1784_v62  ;;  %8736 = vmatprep.subr.bf16.mxu1 %v9584_v0 }
 0xb73   :  { %8732 = vmatpush3.bf16.msra.mxu0 %v9817_v36  ;;  %7945 = vmatprep.mubr.msk.f32.mxu0 %vm9585_vm0, %v9586_v1 }
 0xb74   :  { %7935 = vmatmul.mubr.msk.f32.vlgmr.msra.gmra.mrb[18].mxu1 %vm108_vm1, %v1681_v61  ;;  %8733 = vmatprep.subr.bf16.mxu0 %v9584_v0 }
 0xb75   :  { %8738 = vmatpush3.bf16.msra.mxu1 %v9820_v42  ;;  %7956 = vmatprep.mubr.msk.f32.mxu1 %vm9585_vm0, %v9586_v1 }
 0xb76   :  { %8739 = vmatprep.subr.bf16.mxu1 %v9584_v0 }
 0xb77   :  { %8735 = vmatpush3.bf16.msra.mxu0 %v9825_v46 }
 0xb78   :  { %8742 = vmatprep.subr.bf16.mxu0 %v9584_v0 }
 0xb79   :  { %8741 = vmatpush3.bf16.msra.mxu1 %v9832_v47  ;;  %v1954_v2 = vpop.permute.xlu0 %1953 }
 0xb7a   :  { %7946 = vmatmul.mubr.msk.f32.vlgmr.msra.gmra.mrb[20].mxu0 %vm108_vm1, %v1954_v2  ;;  %8748 = vmatprep.subr.bf16.mxu1 %v9584_v0 }
 0xb7b   :  { %8744 = vmatpush3.bf16.msra.mxu0 %v9904_v4  ;;  %7967 = vmatprep.mubr.msk.f32.mxu0 %vm9585_vm0, %v9586_v1 }
 0xb7c   :  { %7957 = vmatmul.mubr.msk.f32.vlgmr.msra.gmra.mrb[20].mxu1 %vm108_vm1, %v1784_v62  ;;  %8745 = vmatprep.subr.bf16.mxu0 %v9584_v0  ;;  %v10063_v62 = vld [vmem:[%s10780_s4 + $0x4] ss:$0 sm:$0xff] }
 0xb7d   :  { %8750 = vmatpush3.bf16.msra.mxu1 %v9908_v8  ;;  %7978 = vmatprep.mubr.msk.f32.mxu1 %vm9585_vm0, %v9586_v1 }
 0xb7e   :  { %8751 = vmatprep.subr.bf16.mxu1 %v9584_v0 }
 0xb7f   :  { %8747 = vmatpush3.bf16.msra.mxu0 %v9913_v12 }
 0xb80   :  { %8754 = vmatprep.subr.bf16.mxu0 %v9584_v0 }
 0xb81   :  { %8753 = vmatpush3.bf16.msra.mxu1 %v9920_v13  ;;  %v2124_v16 = vpop.permute.xlu1 %2123 }
 0xb82   :  { %7968 = vmatmul.mubr.msk.f32.vlgmr.msra.gmra.mrb[22].mxu0 %vm108_vm1, %v2124_v16  ;;  %8760 = vmatprep.subr.bf16.mxu1 %v9584_v0 }
 0xb83   :  { %8756 = vmatpush3.bf16.msra.mxu0 %v10015_v10  ;;  %7989 = vmatprep.mubr.msk.f32.mxu0 %vm9585_vm0, %v9586_v1 }
 0xb84   :  { %7979 = vmatmul.mubr.msk.f32.vlgmr.msra.gmra.mrb[22].mxu1 %vm108_vm1, %v1954_v2  ;;  %8757 = vmatprep.subr.bf16.mxu0 %v9584_v0 }
 0xb85   :  { %8762 = vmatpush3.bf16.msra.mxu1 %v10019_v17  ;;  %8000 = vmatprep.mubr.msk.f32.mxu1 %vm9585_vm0, %v9586_v1 }
 0xb86   :  { %8763 = vmatprep.subr.bf16.mxu1 %v9584_v0 }
 0xb87   :  { %8759 = vmatpush3.bf16.msra.mxu0 %v10024_v24 }
 0xb88   :  { %8766 = vmatprep.subr.bf16.mxu0 %v9584_v0 }
 0xb89   :  { %8765 = vmatpush3.bf16.msra.mxu1 %v10031_v25 }
 0xb8a   :  { %7990 = vmatmul.mubr.f32.vlgmr.msra.gmra.mrb[24].mxu0 %v9586_v1  ;;  %8772 = vmatprep.subr.bf16.mxu1 %v9584_v0 }
 0xb8b   :  { %8768 = vmatpush3.bf16.msra.mxu0 %v9722_v9  ;;  %8011 = vmatprep.mubr.msk.f32.mxu0 %vm9585_vm0, %v9586_v1 }
 0xb8c   :  { %8001 = vmatmul.mubr.msk.f32.vlgmr.msra.gmra.mrb[24].mxu1 %vm108_vm1, %v2124_v16  ;;  %8769 = vmatprep.subr.bf16.mxu0 %v9584_v0 }
 0xb8d   :  { %8774 = vmatpush3.bf16.msra.mxu1 %v9756_v37  ;;  %8022 = vmatprep.mubr.msk.f32.mxu1 %vm9585_vm0, %v9586_v1 }
 0xb8e   :  { %8775 = vmatprep.subr.bf16.mxu1 %v9584_v0 }
 0xb8f   :  { %8771 = vmatpush3.bf16.msra.mxu0 %v9726_v14 }
 0xb90   :  { %8778 = vmatprep.subr.bf16.mxu0 %v9584_v0 }
 0xb91   :  { %8777 = vmatpush3.bf16.msra.mxu1 %v9760_v40 }
 0xb92   :  { %8784 = vmatprep.subr.bf16.mxu1 %v9584_v0 }
 0xc3f   :  { %v1750_v26 = vpop.f32.mrb[16].mxu1 }
 0xc40   :  { %v1754_v27 = vadd.f32 %v1750_v26, %v9745_v19  ;;  %v7914_v28 = vpop.f32.mrb[17].mxu1 }
 0xc42   :  { %9189 = vtanh.f32 %v1754_v27  ;;  %v7218_v11 = vmul.f32 -1.442695, %v1754_v27 }
 0xc45   :  { %v1853_v29 = vpop.f32.mrb[18].mxu0 }
 0xc46   :  { %v7925_v30 = vpop.f32.mrb[19].mxu0 }
 0xc47   :  { %v1923_v32 = vpop.f32.mrb[18].mxu1 }
 0xc48   :  { %v1924_v33 = vadd.f32 %v1923_v32, %v1853_v29  ;;  %v7936_v38 = vpop.f32.mrb[19].mxu1 }
 0xc4a   :  { %v1927_v22 = vadd.f32 %v9794_v56, %v1924_v33 }
 0xc4c   :  { %v9190_v39 = vpop.eup %9189  ;;  %9191 = vtanh.f32 %v1927_v22  ;;  %v7221_v15 = vmul.f32 -1.442695, %v1927_v22 }
 0xc4d   :  { %v2023_v43 = vpop.f32.mrb[20].mxu0  ;;  %1767 = vrot.lane.b32.xlu0 %v9190_v39, %s9587_s14 }
 0xc4e   :  { %v7947_v48 = vpop.f32.mrb[21].mxu0 }
 0xc4f   :  { %v2093_v41 = vpop.f32.mrb[20].mxu1 }
 0xc50   :  { %v2094_v51 = vadd.f32 %v2093_v41, %v2023_v43  ;;  %v7958_v23 = vpop.f32.mrb[21].mxu1 }
 0xc52   :  { %v2097_v50 = vadd.f32 %v9860_v63, %v2094_v51 }
 0xc54   :  { %9193 = vtanh.f32 %v2097_v50  ;;  %v7224_v21 = vmul.f32 -1.442695, %v2097_v50 }
 0xc55   :  { %v2193_v52 = vpop.f32.mrb[22].mxu0 }
 0xc56   :  { %v9192_v53 = vpop.eup %9191  ;;  %v7969_v54 = vpop.f32.mrb[23].mxu0 }
 0xc57   :  { %v2263_v55 = vpop.f32.mrb[22].mxu1  ;;  %1937 = vrot.lane.b32.xlu1 %v9192_v53, %s9587_s14 }
 0xc58   :  { %v2264_v57 = vadd.f32 %v2263_v55, %v2193_v52  ;;  %v7980_v56 = vpop.f32.mrb[23].mxu1 }
 0xc5a   :  { %v2267_v58 = vadd.f32 %v9951_v44, %v2264_v57 }
 0xc5c   :  { %9195 = vtanh.f32 %v2267_v58  ;;  %v7227_v28 = vmul.f32 -1.442695, %v2267_v58 }
 0xc5d   :  { %v2368_v59 = vpop.f32.mrb[24].mxu0 }
 0xc5e   :  { %v9194_v60 = vpop.eup %9193  ;;  %v7991_v61 = vpop.f32.mrb[25].mxu0 }
 0xc5f   :  { %v2438_v63 = vpop.f32.mrb[24].mxu1  ;;  %2107 = vrot.lane.b32.xlu0 %v9194_v60, %s9587_s14  ;;  %v1763_v61 = vrot.slane %v9961_v31, 6 }
 0xc60   :  { %v2439_v2 = vadd.f32 %v2438_v63, %v2368_v59  ;;  %v8002_v3 = vpop.f32.mrb[25].mxu1 }
 0xc62   :  { %v2442_v5 = vadd.f32 %v10063_v62, %v2439_v2 }
 0xc64   :  { %9197 = vtanh.f32 %v2442_v5  ;;  %v7229_v27 = vmul.f32 -1.442695, %v2442_v5 }
 0xc65   :  { %9199 = vpow2.f32 %v7218_v11 }
 0xc66   :  { %v9196_v6 = vpop.eup %9195  ;;  %9201 = vpow2.f32 %v7221_v15 }
 0xc67   :  { %2277 = vrot.lane.b32.xlu1 %v9196_v6, %s9587_s14 }
 0xc6e   :  { %v9198_v7 = vpop.eup %9197 }
 0xc6f   :  { %2452 = vrot.lane.b32.xlu0 %v9198_v7, %s9587_s14  ;;  %v9200_v16 = vpop.eup %9199 }
 0xc70   :  { %v1758_v20 = vadd.f32 1.0, %v9200_v16  ;;  %v9202_v26 = vpop.eup %9201 }
 0xc71   :  { %v1931_v29 = vadd.f32 1.0, %v9202_v26 }
 0xc72   :  { %9203 = vrcp.f32 %v1758_v20 }
 0xc73   :  { %9205 = vpow2.f32 %v7224_v21 }
 0xc74   :  { %9207 = vpow2.f32 %v7227_v28 }
 0xc75   :  { %9209 = vrcp.f32 %v1931_v29 }
 0xc76   :  { %9211 = vpow2.f32 %v7229_v27 }
 0xc7c   :  { %v10069_v30 = vpop.eup %9203 }
 0xc7d   :  { %v9206_v33 = vpop.eup %9205  ;;  %v1765_v63 = vmul.f32 %v10069_v30, %v1763_v61 }
 0xc7e   :  { %v2101_v22 = vadd.f32 1.0, %v9206_v33  ;;  %v9208_v39 = vpop.eup %9207 }
 0xc7f   :  { %v9210_v43 = vpop.eup %9209  ;;  %v2271_v51 = vadd.f32 1.0, %v9208_v39 }
 0xc80   :  { %9213 = vrcp.f32 %v2101_v22  ;;  %v9212_v23 = vpop.eup %9211  ;;  %v1935_v5 = vmul.f32 %v9210_v43, %v9965_v34 }
 0xc81   :  { %9215 = vrcp.f32 %v2271_v51  ;;  %v2446_v54 = vadd.f32 1.0, %v9212_v23 }
 0xc83   :  { %9217 = vrcp.f32 %v2446_v54 }
 0xc8a   :  { %v9214_v50 = vpop.eup %9213 }
 0xc8b   :  { %v9216_v55 = vpop.eup %9215  ;;  %v2105_v15 = vmul.f32 %v9214_v50, %v9970_v35 }
 0xc8c   :  { %v2275_v34 = vmul.f32 %v9216_v55, %v9974_v18 }
 0xc8d   :  { %v9218_v58 = vpop.eup %9217 }
 0xc8e   :  { %v2450_v29 = vmul.f32 0.0, %v9218_v58 }
 0xcbf   :  { %v1768_v32 = vpop.permute.xlu0 %1767 }
 0xcc0   :  { %v1770_v38 = vmul.f32 %v10069_v30, %v1768_v32 }
 0xcc2   :  { %1772 = vrot.lane.b32.xlu1 %v1770_v38, %s9588_s3 }
 0xcc9   :  { %v1938_v48 = vpop.permute.xlu1 %1937 }
 0xcca   :  { %v1940_v41 = vmul.f32 %v9210_v43, %v1938_v48 }
 0xccc   :  { %1942 = vrot.lane.b32.xlu0 %v1940_v41, %s9588_s3 }
 0xcd1   :  { %v2108_v52 = vpop.permute.xlu0 %2107 }
 0xcd2   :  { %v2110_v53 = vmul.f32 %v9214_v50, %v2108_v52 }
 0xcd4   :  { %2112 = vrot.lane.b32.xlu1 %v2110_v53, %s9588_s3 }
 0xcd9   :  { %v2278_v57 = vpop.permute.xlu1 %2277 }
 0xcda   :  { %v2280_v56 = vmul.f32 %v9216_v55, %v2278_v57  ;;  %v2468_v57 = vld [vmem:[#allocation10 + $0x8] sm:$0xff] }
 0xcdc   :  { %2282 = vrot.lane.b32.xlu0 %v2280_v56, %s9588_s3 }
 0xce1   :  { %v2453_v59 = vpop.permute.xlu0 %2452 }
 0xce2   :  { %v2455_v60 = vmul.f32 %v9218_v58, %v2453_v59  ;;  %v2470_v59 = vld [vmem:[#allocation10 + $0x18] sm:$0xff] }
 0xce4   :  { %2457 = vrot.lane.b32.xlu1 %v2455_v60, %s9588_s3 }
 0xd34   :  { %v1773_v2 = vpop.permute.xlu1 %1772 }
 0xd35   :  { %v10079_v3 = vadd.f32 %v1773_v2, %v1765_v63 }
 0xd37   :  { %9219 = vtanh.f32 %v10079_v3 }
 0xd3e   :  { %v1943_v6 = vpop.permute.xlu0 %1942 }
 0xd3f   :  { %v10083_v7 = vadd.f32 %v1943_v6, %v1935_v5 }
 0xd41   :  { %v9220_v11 = vpop.eup %9219  ;;  %9221 = vtanh.f32 %v10083_v7 }
 0xd42   :  { %1778 = vrot.lane.b32.xlu0 %v9220_v11, %s9587_s14 }
 0xd46   :  { %v2113_v31 = vpop.permute.xlu1 %2112 }
 0xd47   :  { %v10088_v16 = vadd.f32 %v2113_v31, %v2105_v15 }
 0xd49   :  { %9223 = vtanh.f32 %v10088_v16 }
 0xd4b   :  { %v9222_v20 = vpop.eup %9221 }
 0xd4c   :  { %1948 = vrot.lane.b32.xlu1 %v9222_v20, %s9587_s14 }
 0xd4e   :  { %v2283_v21 = vpop.permute.xlu0 %2282 }
 0xd4f   :  { %v10093_v26 = vadd.f32 %v2283_v21, %v2275_v34 }
 0xd51   :  { %9225 = vtanh.f32 %v10093_v26 }
 0xd53   :  { %v9224_v28 = vpop.eup %9223 }
 0xd54   :  { %2118 = vrot.lane.b32.xlu0 %v9224_v28, %s9587_s14 }
 0xd56   :  { %v2458_v35 = vpop.permute.xlu1 %2457 }
 0xd57   :  { %v10097_v32 = vadd.f32 %v2458_v35, %v2450_v29 }
 0xd59   :  { %9227 = vtanh.f32 %v10097_v32 }
 0xd5b   :  { %v9226_v33 = vpop.eup %9225 }
 0xd5c   :  { %2288 = vrot.lane.b32.xlu1 %v9226_v33, %s9587_s14 }
 0xd63   :  { %v9228_v38 = vpop.eup %9227 }
 0xd64   :  { %2463 = vrot.lane.b32.xlu0 %v9228_v38, %s9587_s14 }
 0xdb4   :  { %v1779_v18 = vpop.permute.xlu0 %1778 }
 0xdb5   :  { %v1781_v27 = vmul.f32 %v10069_v30, %v1779_v18  ;;  %v10177_v18 = vld [vmem:[%s10780_s4 + $0x2] ss:$0 sm:$0xff] }
 0xdb7   :  { %2472 = vrot.lane.b32.xlu1 %v1781_v27, %s9588_s3 }
 0xdbe   :  { %v1949_v22 = vpop.permute.xlu1 %1948 }
 0xdbf   :  { %v1951_v39 = vmul.f32 %v9210_v43, %v1949_v22 }
 0xdc1   :  { %2578 = vrot.lane.b32.xlu0 %v1951_v39, %s9588_s3 }
 0xdc6   :  { %v2119_v48 = vpop.permute.xlu0 %2118 }
 0xdc7   :  { %v2121_v41 = vmul.f32 %v9214_v50, %v2119_v48 }
 0xdc9   :  { %2748 = vrot.lane.b32.xlu1 %v2121_v41, %s9588_s3 }
 0xdce   :  { %v2289_v51 = vpop.permute.xlu1 %2288 }
 0xdcf   :  { %v2291_v23 = vmul.f32 %v9216_v55, %v2289_v51  ;;  %v2467_v55 = vld [vmem:[#allocation10] sm:$0xff] }
 0xdd0   :  { %v8827_v56 = vpack.c.bf16 %v2468_v57, %v2467_v55  ;;  %v10185_v55 = vld [vmem:[%s10780_s4 + $0x1] ss:$0 sm:$0xff] }
 0xdd1   :  { %2918 = vrot.lane.b32.xlu0 %v2291_v23, %s9588_s3 }
 0xdd6   :  { %v2464_v52 = vpop.permute.xlu0 %2463 }
 0xdd7   :  { %v2466_v53 = vmul.f32 %v9218_v58, %v2464_v52  ;;  %v2469_v58 = vld [vmem:[#allocation10 + $0x10] sm:$0xff] }
 0xdd8   :  { %v8830_v61 = vpack.c.bf16 %v2470_v59, %v2469_v58 }
 0xdd9   :  { %3088 = vrot.lane.b32.xlu1 %v2466_v53, %s9588_s3 }
 0xe29   :  { %v2473_v54 = vpop.permute.xlu1 %2472 }
 0xe2a   :  { %8012 = vmatmul.mubr.msk.f32.vlgmr.msra.gmra.mrb[26].mxu0 %vm108_vm1, %v2473_v54 }
 0xe2b   :  { %8780 = vmatpush3.bf16.msra.mxu0 %v9772_v45  ;;  %8033 = vmatprep.mubr.msk.f32.mxu0 %vm9585_vm0, %v9586_v1 }
 0xe2c   :  { %8781 = vmatprep.subr.bf16.mxu0 %v9584_v0 }
 0xe2f   :  { %8783 = vmatpush3.bf16.msra.mxu0 %v9776_v49 }
 0xe30   :  { %8790 = vmatprep.subr.bf16.mxu0 %v9584_v0 }
 0xe32   :  { %8034 = vmatmul.mubr.msk.f32.vlgmr.msra.gmra.mrb[28].mxu0 %vm108_vm1, %v2473_v54 }
 0xe33   :  { %8792 = vmatpush3.bf16.msra.mxu0 %v9820_v42  ;;  %v2579_v30 = vpop.permute.xlu0 %2578  ;;  %8055 = vmatprep.mubr.msk.f32.mxu0 %vm9585_vm0, %v9586_v1 }
 0xe34   :  { %8023 = vmatmul.mubr.msk.f32.vlgmr.msra.gmra.mrb[26].mxu1 %vm108_vm1, %v2579_v30  ;;  %8793 = vmatprep.subr.bf16.mxu0 %v9584_v0 }
 0xe35   :  { %8786 = vmatpush3.bf16.msra.mxu1 %v9817_v36  ;;  %8044 = vmatprep.mubr.msk.f32.mxu1 %vm9585_vm0, %v9586_v1 }
 0xe36   :  { %8787 = vmatprep.subr.bf16.mxu1 %v9584_v0 }
 0xe37   :  { %8795 = vmatpush3.bf16.msra.mxu0 %v9832_v47 }
 0xe38   :  { %8802 = vmatprep.subr.bf16.mxu0 %v9584_v0 }
 0xe39   :  { %8789 = vmatpush3.bf16.msra.mxu1 %v9825_v46 }
 0xe3a   :  { %8056 = vmatmul.mubr.msk.f32.vlgmr.msra.gmra.mrb[30].mxu0 %vm108_vm1, %v2579_v30  ;;  %8796 = vmatprep.subr.bf16.mxu1 %v9584_v0 }
 0xe3b   :  { %v2749_v43 = vpop.permute.xlu1 %2748  ;;  %8804 = vmatpush3.bf16.msra.mxu0 %v9908_v8  ;;  %8077 = vmatprep.mubr.msk.f32.mxu0 %vm9585_vm0, %v9586_v1 }
 0xe3c   :  { %8045 = vmatmul.mubr.msk.f32.vlgmr.msra.gmra.mrb[28].mxu1 %vm108_vm1, %v2749_v43  ;;  %8805 = vmatprep.subr.bf16.mxu0 %v9584_v0 }
 0xe3d   :  { %8798 = vmatpush3.bf16.msra.mxu1 %v9904_v4  ;;  %8066 = vmatprep.mubr.msk.f32.mxu1 %vm9585_vm0, %v9586_v1 }
 0xe3e   :  { %8799 = vmatprep.subr.bf16.mxu1 %v9584_v0 }
 0xe3f   :  { %8807 = vmatpush3.bf16.msra.mxu0 %v9920_v13 }
 0xe40   :  { %8814 = vmatprep.subr.bf16.mxu0 %v9584_v0 }
 0xe41   :  { %8801 = vmatpush3.bf16.msra.mxu1 %v9913_v12 }
 0xe42   :  { %8078 = vmatmul.mubr.msk.f32.vlgmr.msra.gmra.mrb[32].mxu0 %vm108_vm1, %v2749_v43  ;;  %8808 = vmatprep.subr.bf16.mxu1 %v9584_v0 }
 0xe43   :  { %8816 = vmatpush3.bf16.msra.mxu0 %v10019_v17  ;;  %v2919_v50 = vpop.permute.xlu0 %2918  ;;  %8099 = vmatprep.mubr.msk.f32.mxu0 %vm9585_vm0, %v9586_v1 }
 0xe44   :  { %8067 = vmatmul.mubr.msk.f32.vlgmr.msra.gmra.mrb[30].mxu1 %vm108_vm1, %v2919_v50  ;;  %8817 = vmatprep.subr.bf16.mxu0 %v9584_v0 }
 0xe45   :  { %8810 = vmatpush3.bf16.msra.mxu1 %v10015_v10  ;;  %8088 = vmatprep.mubr.msk.f32.mxu1 %vm9585_vm0, %v9586_v1 }
 0xe46   :  { %8811 = vmatprep.subr.bf16.mxu1 %v9584_v0 }
 0xe47   :  { %8819 = vmatpush3.bf16.msra.mxu0 %v10031_v25 }
 0xe48   :  { %8826 = vmatprep.subr.bf16.mxu0 %v9584_v0 }
 0xe49   :  { %8813 = vmatpush3.bf16.msra.mxu1 %v10024_v24 }
 0xe4a   :  { %8100 = vmatmul.mubr.msk.f32.vlgmr.msra.gmra.mrb[34].mxu0 %vm108_vm1, %v2919_v50  ;;  %8820 = vmatprep.subr.bf16.mxu1 %v9584_v0 }
 0xe4b   :  { %v3089_v60 = vpop.permute.xlu1 %3088  ;;  %8828 = vmatpush3.bf16.msra.mxu0 %v8827_v56  ;;  %8121 = vmatprep.mubr.msk.f32.mxu0 %vm9585_vm0, %v9586_v1 }
 0xe4c   :  { %8089 = vmatmul.mubr.msk.f32.vlgmr.msra.gmra.mrb[32].mxu1 %vm108_vm1, %v3089_v60  ;;  %8829 = vmatprep.subr.bf16.mxu0 %v9584_v0 }
 0xe4d   :  { %8110 = vmatprep.mubr.msk.f32.mxu1 %vm9585_vm0, %v9586_v1 }
 0xe4f   :  { %8831 = vmatpush3.bf16.msra.mxu0 %v8830_v61 }
 0xe50   :  { %8838 = vmatprep.subr.bf16.mxu0 %v9584_v0 }
 0xe52   :  { %8122 = vmatmul.mubr.msk.f32.vlgmr.msra.gmra.mrb[36].mxu0 %vm108_vm1, %v3089_v60 }
 0xe53   :  { %8840 = vmatpush3.bf16.msra.mxu0 %v9756_v37  ;;  %8143 = vmatprep.mubr.msk.f32.mxu0 %vm9585_vm0, %v9586_v1 }
 0xe54   :  { %8841 = vmatprep.subr.bf16.mxu0 %v9584_v0 }
 0xe57   :  { %8843 = vmatpush3.bf16.msra.mxu0 %v9760_v40 }
 0xe58   :  { %8850 = vmatprep.subr.bf16.mxu0 %v9584_v0 }
 0xefd   :  { %v2542_v63 = vpop.f32.mrb[26].mxu0 }
 0xefe   :  { %v2547_v2 = vrot.slane %v2542_v63, 6  ;;  %v8013_v5 = vpop.f32.mrb[27].mxu0 }
 0xf00   :  { %v2549_v6 = vadd.f32 %v2547_v2, %v9745_v19 }
 0xf02   :  { %9229 = vtanh.f32 %v2549_v6  ;;  %v7231_v2 = vmul.f32 -1.442695, %v2549_v6 }
 0xf05   :  { %v2718_v11 = vpop.f32.mrb[28].mxu0 }
 0xf06   :  { %v8035_v15 = vpop.f32.mrb[29].mxu0 }
 0xf07   :  { %v2648_v31 = vpop.f32.mrb[26].mxu1 }
 0xf08   :  { %v2719_v20 = vadd.f32 %v2718_v11, %v2648_v31  ;;  %v8024_v34 = vpop.f32.mrb[27].mxu1 }
 0xf0a   :  { %v2722_v57 = vadd.f32 %v10185_v55, %v2719_v20 }
 0xf0c   :  { %v9230_v21 = vpop.eup %9229 }
 0xf0d   :  { %v2888_v28 = vpop.f32.mrb[30].mxu0  ;;  %2562 = vrot.lane.b32.xlu1 %v9230_v21, %s9587_s14 }
 0xf0e   :  { %v8057_v29 = vpop.f32.mrb[31].mxu0 }
 0xf0f   :  { %v2818_v35 = vpop.f32.mrb[28].mxu1  ;;  %v7234_v29 = vmul.f32 -1.442695, %v2722_v57 }
 0xf10   :  { %v2889_v33 = vadd.f32 %v2888_v28, %v2818_v35  ;;  %v8046_v38 = vpop.f32.mrb[29].mxu1 }
 0xf12   :  { %v2892_v27 = vadd.f32 %v10177_v18, %v2889_v33 }
 0xf14   :  { %9231 = vtanh.f32 %v2892_v27  ;;  %v7237_v15 = vmul.f32 -1.442695, %v2892_v27 }
 0xf15   :  { %v3058_v22 = vpop.f32.mrb[32].mxu0 }
 0xf16   :  { %v8079_v39 = vpop.f32.mrb[33].mxu0 }
 0xf17   :  { %v2988_v48 = vpop.f32.mrb[30].mxu1 }
 0xf18   :  { %v3059_v41 = vadd.f32 %v3058_v22, %v2988_v48  ;;  %v8068_v51 = vpop.f32.mrb[31].mxu1 }
 0xf1a   :  { %v3062_v59 = vadd.f32 %v9951_v44, %v3059_v41 }
 0xf1c   :  { %v7240_v6 = vmul.f32 -1.442695, %v3062_v59 }
 0xf1d   :  { %v3228_v23 = vpop.f32.mrb[34].mxu0 }
 0xf1e   :  { %v9232_v52 = vpop.eup %9231  ;;  %v8101_v53 = vpop.f32.mrb[35].mxu0 }
 0xf1f   :  { %v3158_v54 = vpop.f32.mrb[32].mxu1  ;;  %2902 = vrot.lane.b32.xlu1 %v9232_v52, %s9587_s14 }
 0xf20   :  { %v3229_v30 = vadd.f32 %v3228_v23, %v3158_v54  ;;  %v8090_v43 = vpop.f32.mrb[33].mxu1 }
 0xf22   :  { %v3232_v50 = vadd.f32 %v10063_v62, %v3229_v30 }
 0xf24   :  { %9233 = vtanh.f32 %v3232_v50  ;;  %v7243_v21 = vmul.f32 -1.442695, %v3232_v50 }
 0xf25   :  { %v10188_v56 = vpop.f32.mrb[36].mxu0  ;;  %9235 = vtanh.f32 %v2722_v57 }
 0xf26   :  { %v8123_v58 = vpop.f32.mrb[37].mxu0  ;;  %9237 = vtanh.f32 %v3062_v59  ;;  %v2558_v59 = vrot.slane %v10079_v3, 6 }
 0xf27   :  { %9239 = vpow2.f32 %v7231_v2 }
 0xf2e   :  { %v9234_v60 = vpop.eup %9233 }
 0xf2f   :  { %3242 = vrot.lane.b32.xlu0 %v9234_v60, %s9587_s14  ;;  %v9236_v61 = vpop.eup %9235 }
 0xf30   :  { %v9238_v63 = vpop.eup %9237 }
 0xf31   :  { %v9240_v5 = vpop.eup %9239 }
 0xf32   :  { %v2553_v11 = vadd.f32 1.0, %v9240_v5 }
 0xf33   :  { %2732 = vrot.lane.b32.xlu0 %v9236_v61, %s9587_s14 }
 0xf34   :  { %9241 = vrcp.f32 %v2553_v11 }
 0xf35   :  { %9243 = vpow2.f32 %v7237_v15 }
 0xf36   :  { %9245 = vpow2.f32 %v7243_v21 }
 0xf37   :  { %3072 = vrot.lane.b32.xlu0 %v9238_v63, %s9587_s14 }
 0xf3e   :  { %v10194_v31 = vpop.eup %9241 }
 0xf3f   :  { %v9244_v20 = vpop.eup %9243  ;;  %v2560_v60 = vmul.f32 %v10194_v31, %v2558_v59 }
 0xf40   :  { %v2896_v28 = vadd.f32 1.0, %v9244_v20  ;;  %v9246_v35 = vpop.eup %9245 }
 0xf41   :  { %v3236_v22 = vadd.f32 1.0, %v9246_v35 }
 0xf42   :  { %9247 = vrcp.f32 %v2896_v28 }
 0xf43   :  { %9249 = vpow2.f32 %v7234_v29 }
 0xf44   :  { %9251 = vpow2.f32 %v7240_v6 }
 0xf45   :  { %9253 = vrcp.f32 %v3236_v22 }
 0xf4c   :  { %v10198_v33 = vpop.eup %9247 }
 0xf4d   :  { %v9250_v39 = vpop.eup %9249  ;;  %v2900_v5 = vmul.f32 %v10198_v33, %v10088_v16 }
 0xf4e   :  { %v2726_v48 = vadd.f32 1.0, %v9250_v39  ;;  %v9252_v41 = vpop.eup %9251 }
 0xf4f   :  { %v3066_v51 = vadd.f32 1.0, %v9252_v41  ;;  %v9254_v23 = vpop.eup %9253  ;;  %v3260_v41 = vld [vmem:[#allocation10 + $0x30] sm:$0xff] }
 0xf50   :  { %9255 = vrcp.f32 %v2726_v48  ;;  %v3240_v3 = vmul.f32 %v9254_v23, %v10097_v32  ;;  %v3259_v48 = vld [vmem:[#allocation10 + $0x28] sm:$0xff] }
 0xf51   :  { %9257 = vrcp.f32 %v3066_v51 }
 0xf5a   :  { %v9256_v54 = vpop.eup %9255 }
 0xf5b   :  { %v9258_v50 = vpop.eup %9257  ;;  %v2730_v21 = vmul.f32 %v9256_v54, %v10083_v7 }
 0xf5c   :  { %v3070_v16 = vmul.f32 %v9258_v50, %v10093_v26  ;;  %v3258_v26 = vld [vmem:[#allocation10 + $0x20] sm:$0xff] }
 0xf5d   :  { %v8821_v51 = vpack.c.bf16 %v3259_v48, %v3258_v26 }
 0xf5f   :  { %8822 = vmatpush3.bf16.msra.mxu1 %v8821_v51 }
 0xf60   :  { %8823 = vmatprep.subr.bf16.mxu1 %v9584_v0 }
 0xf7f   :  { %v2563_v44 = vpop.permute.xlu1 %2562 }
 0xf80   :  { %v2565_v34 = vmul.f32 %v10194_v31, %v2563_v44 }
 0xf82   :  { %2567 = vrot.lane.b32.xlu0 %v2565_v34, %s9588_s3 }
 0xf91   :  { %v2903_v38 = vpop.permute.xlu1 %2902 }
 0xf92   :  { %v2905_v27 = vmul.f32 %v10198_v33, %v2903_v38 }
 0xf94   :  { %2907 = vrot.lane.b32.xlu0 %v2905_v27, %s9588_s3 }
 0xfa1   :  { %v3243_v52 = vpop.permute.xlu0 %3242 }
 0xfa2   :  { %v3245_v53 = vmul.f32 %v9254_v23, %v3243_v52  ;;  %v3261_v52 = vld [vmem:[#allocation10 + $0x38] sm:$0xff] }
 0xfa4   :  { %3247 = vrot.lane.b32.xlu1 %v3245_v53, %s9588_s3  ;;  %v8824_v53 = vpack.c.bf16 %v3261_v52, %v3260_v41 }
 0xfa5   :  { %v2733_v30 = vpop.permute.xlu0 %2732 }
 0xfa6   :  { %v2735_v43 = vmul.f32 %v9256_v54, %v2733_v30  ;;  %8825 = vmatpush3.bf16.msra.mxu1 %v8824_v53 }
 0xfa7   :  { %8832 = vmatprep.subr.bf16.mxu1 %v9584_v0 }
 0xfa8   :  { %2737 = vrot.lane.b32.xlu1 %v2735_v43, %s9588_s3 }
 0xfa9   :  { %v3073_v57 = vpop.permute.xlu0 %3072 }
 0xfaa   :  { %v3075_v58 = vmul.f32 %v9258_v50, %v3073_v57 }
 0xfac   :  { %3077 = vrot.lane.b32.xlu1 %v3075_v58, %s9588_s3 }
 0xff4   :  { %v2568_v61 = vpop.permute.xlu0 %2567 }
 0xff5   :  { %v10207_v63 = vadd.f32 %v2568_v61, %v2560_v60 }
 0xff7   :  { %9259 = vtanh.f32 %v10207_v63 }
0x1001   :  { %v9260_v2 = vpop.eup %9259 }
0x1002   :  { %2573 = vrot.lane.b32.xlu1 %v9260_v2, %s9587_s14 }
0x1006   :  { %v2908_v11 = vpop.permute.xlu0 %2907 }
0x1007   :  { %v10213_v15 = vadd.f32 %v2908_v11, %v2900_v5 }
0x1009   :  { %9261 = vtanh.f32 %v10213_v15 }
0x1013   :  { %v9262_v44 = vpop.eup %9261 }
0x1014   :  { %2913 = vrot.lane.b32.xlu1 %v9262_v44, %s9587_s14 }
0x1016   :  { %v3248_v20 = vpop.permute.xlu1 %3247 }
0x1017   :  { %v10218_v34 = vadd.f32 %v3248_v20, %v3240_v3 }
0x1019   :  { %9263 = vtanh.f32 %v10218_v34 }
0x101a   :  { %v2738_v28 = vpop.permute.xlu1 %2737 }
0x101b   :  { %v10222_v29 = vadd.f32 %v2738_v28, %v2730_v21 }
0x101d   :  { %9265 = vtanh.f32 %v10222_v29 }
0x101e   :  { %v3078_v6 = vpop.permute.xlu1 %3077 }
0x101f   :  { %v10226_v35 = vadd.f32 %v3078_v6, %v3070_v16 }
0x1021   :  { %9267 = vtanh.f32 %v10226_v35 }
0x1023   :  { %v9264_v32 = vpop.eup %9263 }
0x1024   :  { %3253 = vrot.lane.b32.xlu0 %v9264_v32, %s9587_s14 }
0x1027   :  { %v9266_v38 = vpop.eup %9265 }
0x1028   :  { %2743 = vrot.lane.b32.xlu0 %v9266_v38, %s9587_s14 }
0x102b   :  { %v9268_v27 = vpop.eup %9267 }
0x102c   :  { %3083 = vrot.lane.b32.xlu0 %v9268_v27, %s9587_s14 }
0x1074   :  { %v2574_v7 = vpop.permute.xlu1 %2573 }
0x1075   :  { %v2576_v22 = vmul.f32 %v10194_v31, %v2574_v7 }
0x1077   :  { %v3408_v39 = vrot.slane %v2576_v22, 2 }
0x1079   :  { %3409 = vrot.lane.b32.xlu0 %v3408_v39, %s9588_s3 }
0x1086   :  { %v2914_v30 = vpop.permute.xlu1 %2913 }
0x1087   :  { %v2916_v43 = vmul.f32 %v10198_v33, %v2914_v30 }
0x1089   :  { %3685 = vrot.lane.b32.xlu0 %v2916_v43, %s9588_s3 }
0x1096   :  { %v3254_v31 = vpop.permute.xlu0 %3253 }
0x1097   :  { %v3256_v57 = vmul.f32 %v9254_v23, %v3254_v31 }
0x1099   :  { %3263 = vrot.lane.b32.xlu1 %v3256_v57, %s9588_s3  ;;  %v10317_v57 = vld [vmem:[%s10780_s4 + $0x3] ss:$0 sm:$0xff] }
0x109a   :  { %v2744_v58 = vpop.permute.xlu0 %2743 }
0x109b   :  { %v2746_v59 = vmul.f32 %v9256_v54, %v2744_v58 }
0x109d   :  { %3515 = vrot.lane.b32.xlu1 %v2746_v59, %s9588_s3 }
0x109e   :  { %v3084_v60 = vpop.permute.xlu0 %3083 }
0x109f   :  { %v3086_v61 = vmul.f32 %v9258_v50, %v3084_v60 }
0x10a1   :  { %3855 = vrot.lane.b32.xlu1 %v3086_v61, %s9588_s3 }
0x10eb   :  { %v3410_v23 = vpop.permute.xlu0 %3409 }
0x10fb   :  { %v3686_v54 = vpop.permute.xlu0 %3685 }
0x110b   :  { %v3264_v2 = vpop.permute.xlu1 %3263 }
0x110c   :  { %8111 = vmatmul.mubr.msk.f32.vlgmr.msra.gmra.mrb[34].mxu1 %vm108_vm1, %v3264_v2 }
0x110d   :  { %8834 = vmatpush3.bf16.msra.mxu1 %v9722_v9  ;;  %8132 = vmatprep.mubr.msk.f32.mxu1 %vm9585_vm0, %v9586_v1 }
0x110e   :  { %8835 = vmatprep.subr.bf16.mxu1 %v9584_v0 }
0x110f   :  { %v3516_v33 = vpop.permute.xlu1 %3515 }
0x1110   :  { %8144 = vmatmul.mubr.msk.f32.vlgmr.msra.gmra.mrb[38].mxu0 %vm108_vm1, %v3516_v33 }
0x1111   :  { %8837 = vmatpush3.bf16.msra.mxu1 %v9726_v14  ;;  %8852 = vmatpush3.bf16.msra.mxu0 %v9817_v36 }
0x1112   :  { %8844 = vmatprep.subr.bf16.mxu1 %v9584_v0  ;;  %8853 = vmatprep.subr.bf16.mxu0 %v9584_v0 }
0x1113   :  { %8165 = vmatprep.mubr.msk.f32.mxu0 %vm9585_vm0, %v9586_v1  ;;  %v3856_v50 = vpop.permute.xlu1 %3855 }
0x1114   :  { %8133 = vmatmul.mubr.msk.f32.vlgmr.msra.gmra.mrb[36].mxu1 %vm108_vm1, %v3410_v23 }
0x1115   :  { %8846 = vmatpush3.bf16.msra.mxu1 %v9772_v45  ;;  %8855 = vmatpush3.bf16.msra.mxu0 %v9825_v46 }
0x1116   :  { %8847 = vmatprep.subr.bf16.mxu1 %v9584_v0  ;;  %8862 = vmatprep.subr.bf16.mxu0 %v9584_v0 }
0x1117   :  { %8154 = vmatprep.mubr.msk.f32.mxu1 %vm9585_vm0, %v9586_v1 }
0x1118   :  { %8166 = vmatmul.mubr.msk.f32.vlgmr.msra.gmra.mrb[40].mxu0 %vm108_vm1, %v3686_v54 }
0x1119   :  { %8849 = vmatpush3.bf16.msra.mxu1 %v9776_v49  ;;  %8864 = vmatpush3.bf16.msra.mxu0 %v9904_v4 }
0x111a   :  { %8856 = vmatprep.subr.bf16.mxu1 %v9584_v0  ;;  %8865 = vmatprep.subr.bf16.mxu0 %v9584_v0 }
0x111b   :  { %8187 = vmatprep.mubr.msk.f32.mxu0 %vm9585_vm0, %v9586_v1 }
0x111c   :  { %8155 = vmatmul.mubr.msk.f32.vlgmr.msra.gmra.mrb[38].mxu1 %vm108_vm1, %v3410_v23 }
0x111d   :  { %8858 = vmatpush3.bf16.msra.mxu1 %v9820_v42  ;;  %8867 = vmatpush3.bf16.msra.mxu0 %v9913_v12 }
0x111e   :  { %8859 = vmatprep.subr.bf16.mxu1 %v9584_v0  ;;  %8874 = vmatprep.subr.bf16.mxu0 %v9584_v0 }
0x111f   :  { %8176 = vmatprep.mubr.msk.f32.mxu1 %vm9585_vm0, %v9586_v1 }
0x1120   :  { %8188 = vmatmul.mubr.msk.f32.vlgmr.msra.gmra.mrb[42].mxu0 %vm108_vm1, %v3856_v50 }
0x1121   :  { %8861 = vmatpush3.bf16.msra.mxu1 %v9832_v47  ;;  %8876 = vmatpush3.bf16.msra.mxu0 %v10015_v10 }
0x1122   :  { %8868 = vmatprep.subr.bf16.mxu1 %v9584_v0  ;;  %8877 = vmatprep.subr.bf16.mxu0 %v9584_v0 }
0x1123   :  { %8209 = vmatprep.mubr.msk.f32.mxu0 %vm9585_vm0, %v9586_v1 }
0x1124   :  { %8177 = vmatmul.mubr.msk.f32.vlgmr.msra.gmra.mrb[40].mxu1 %vm108_vm1, %v3516_v33 }
0x1125   :  { %8870 = vmatpush3.bf16.msra.mxu1 %v9908_v8  ;;  %8879 = vmatpush3.bf16.msra.mxu0 %v10024_v24 }
0x1126   :  { %8871 = vmatprep.subr.bf16.mxu1 %v9584_v0  ;;  %8198 = vmatprep.mubr.msk.f32.mxu1 %vm9585_vm0, %v9586_v1 }
0x1127   :  { %8886 = vmatprep.subr.bf16.mxu0 %v9584_v0 }
0x1128   :  { %8210 = vmatmul.mubr.msk.f32.vlgmr.msra.gmra.mrb[44].mxu0 %vm108_vm1, %v3264_v2 }
0x1129   :  { %8873 = vmatpush3.bf16.msra.mxu1 %v9920_v13  ;;  %8231 = vmatprep.mubr.msk.f32.mxu0 %vm9585_vm0, %v9586_v1 }
0x112a   :  { %8880 = vmatprep.subr.bf16.mxu1 %v9584_v0 }
0x112c   :  { %8199 = vmatmul.mubr.msk.f32.vlgmr.msra.gmra.mrb[42].mxu1 %vm108_vm1, %v3686_v54 }
0x112d   :  { %8882 = vmatpush3.bf16.msra.mxu1 %v10019_v17  ;;  %8220 = vmatprep.mubr.msk.f32.mxu1 %vm9585_vm0, %v9586_v1 }
0x112e   :  { %8883 = vmatprep.subr.bf16.mxu1 %v9584_v0 }
0x1131   :  { %8885 = vmatpush3.bf16.msra.mxu1 %v10031_v25 }
0x1132   :  { %8892 = vmatprep.subr.bf16.mxu1 %v9584_v0 }
0x1134   :  { %8221 = vmatmul.mubr.msk.f32.vlgmr.msra.gmra.mrb[44].mxu1 %vm108_vm1, %v3856_v50 }
0x1135   :  { %8894 = vmatpush3.bf16.msra.mxu1 %v9722_v9  ;;  %8242 = vmatprep.mubr.msk.f32.mxu1 %vm9585_vm0, %v9586_v1 }
0x1136   :  { %8895 = vmatprep.subr.bf16.mxu1 %v9584_v0 }
0x1139   :  { %8897 = vmatpush3.bf16.msra.mxu1 %v9726_v14 }
0x113a   :  { %8904 = vmatprep.subr.bf16.mxu1 %v9584_v0 }
0x11df   :  { %v3333_v5 = vpop.f32.mrb[34].mxu1 }
0x11e0   :  { %v10308_v11 = vadd.f32 %v10188_v56, %v3333_v5  ;;  %v8112_v44 = vpop.f32.mrb[35].mxu1 }
0x11e3   :  { %v3585_v3 = vpop.f32.mrb[38].mxu0 }
0x11e4   :  { %v8145_v20 = vpop.f32.mrb[39].mxu0 }
0x11e7   :  { %v3479_v21 = vpop.f32.mrb[36].mxu1 }
0x11e8   :  { %v3484_v28 = vrot.slane %v3479_v21, 4  ;;  %v8134_v16 = vpop.f32.mrb[37].mxu1 }
0x11ea   :  { %v3486_v9 = vadd.f32 %v3484_v28, %v9745_v19 }
0x11eb   :  { %v3755_v6 = vpop.f32.mrb[40].mxu0 }
0x11ec   :  { %9269 = vtanh.f32 %v3486_v9  ;;  %v8167_v32 = vpop.f32.mrb[41].mxu0  ;;  %v7247_v5 = vmul.f32 -1.442695, %v3486_v9 }
0x11ef   :  { %v3655_v38 = vpop.f32.mrb[38].mxu1 }
0x11f0   :  { %v3656_v27 = vadd.f32 %v3655_v38, %v3585_v3  ;;  %v8156_v14 = vpop.f32.mrb[39].mxu1 }
0x11f2   :  { %v3659_v7 = vadd.f32 %v10185_v55, %v3656_v27 }
0x11f3   :  { %v3925_v22 = vpop.f32.mrb[42].mxu0 }
0x11f4   :  { %9271 = vtanh.f32 %v3659_v7  ;;  %v8189_v56 = vpop.f32.mrb[43].mxu0  ;;  %v7250_v44 = vmul.f32 -1.442695, %v3659_v7 }
0x11f6   :  { %v9270_v39 = vpop.eup %9269 }
0x11f7   :  { %3499 = vrot.lane.b32.xlu0 %v9270_v39, %s9587_s14  ;;  %v3825_v26 = vpop.f32.mrb[40].mxu1 }
0x11f8   :  { %v3826_v48 = vadd.f32 %v3825_v26, %v3755_v6  ;;  %v8178_v41 = vpop.f32.mrb[41].mxu1 }
0x11fa   :  { %v3829_v33 = vadd.f32 %v10177_v18, %v3826_v48 }
0x11fb   :  { %v4090_v51 = vpop.f32.mrb[44].mxu0 }
0x11fc   :  { %v8211_v52 = vpop.f32.mrb[45].mxu0  ;;  %v7253_v9 = vmul.f32 -1.442695, %v3829_v33 }
0x11fe   :  { %v9272_v53 = vpop.eup %9271 }
0x11ff   :  { %v3995_v30 = vpop.f32.mrb[42].mxu1  ;;  %3669 = vrot.lane.b32.xlu0 %v9272_v53, %s9587_s14 }
0x1200   :  { %v3996_v43 = vadd.f32 %v3995_v30, %v3925_v22  ;;  %v8200_v31 = vpop.f32.mrb[43].mxu1 }
0x1202   :  { %v3999_v58 = vadd.f32 %v10317_v57, %v3996_v43 }
0x1204   :  { %9273 = vtanh.f32 %v3999_v58  ;;  %v7256_v21 = vmul.f32 -1.442695, %v3999_v58 }
0x1207   :  { %v4160_v59 = vpop.f32.mrb[44].mxu1 }
0x1208   :  { %v4161_v60 = vadd.f32 %v4160_v59, %v4090_v51  ;;  %v8222_v61 = vpop.f32.mrb[45].mxu1 }
0x1209   :  { %v3495_v61 = vrot.slane %v10207_v63, 6 }
0x120a   :  { %v4164_v2 = vadd.f32 %v10063_v62, %v4161_v60 }
0x120c   :  { %9275 = vtanh.f32 %v4164_v2  ;;  %v7259_v32 = vmul.f32 -1.442695, %v4164_v2 }
0x120d   :  { %9277 = vtanh.f32 %v3829_v33 }
0x120e   :  { %v9274_v23 = vpop.eup %9273  ;;  %9279 = vpow2.f32 %v7247_v5 }
0x120f   :  { %4009 = vrot.lane.b32.xlu0 %v9274_v23, %s9587_s14  ;;  %9281 = vpow2.f32 %v7250_v44 }
0x1216   :  { %v9276_v54 = vpop.eup %9275 }
0x1217   :  { %4174 = vrot.lane.b32.xlu1 %v9276_v54, %s9587_s14  ;;  %v9278_v50 = vpop.eup %9277 }
0x1218   :  { %v9280_v3 = vpop.eup %9279 }
0x1219   :  { %v3490_v20 = vadd.f32 1.0, %v9280_v3  ;;  %v9282_v62 = vpop.eup %9281 }
0x121a   :  { %v3663_v28 = vadd.f32 1.0, %v9282_v62 }
0x121b   :  { %3839 = vrot.lane.b32.xlu1 %v9278_v50, %s9587_s14  ;;  %9283 = vrcp.f32 %v3490_v20 }
0x121c   :  { %9285 = vpow2.f32 %v7256_v21 }
0x121d   :  { %9287 = vrcp.f32 %v3663_v28 }
0x121e   :  { %9289 = vpow2.f32 %v7259_v32 }
0x121f   :  { %9291 = vpow2.f32 %v7253_v9 }
0x1225   :  { %v10325_v16 = vpop.eup %9283 }
0x1226   :  { %v9286_v27 = vpop.eup %9285  ;;  %v3497_v2 = vmul.f32 %v10325_v16, %v3495_v61 }
0x1227   :  { %v10329_v14 = vpop.eup %9287  ;;  %v4003_v56 = vadd.f32 1.0, %v9286_v27 }
0x1228   :  { %v9290_v39 = vpop.eup %9289  ;;  %v3667_v54 = vmul.f32 %v10329_v14, %v10222_v29 }
0x1229   :  { %9293 = vrcp.f32 %v4003_v56  ;;  %v4168_v26 = vadd.f32 1.0, %v9290_v39  ;;  %v9292_v48 = vpop.eup %9291  ;;  %v4192_v56 = vld [vmem:[#allocation10 + $0x50] sm:$0xff] }
0x122a   :  { %v3833_v41 = vadd.f32 1.0, %v9292_v48 }
0x122b   :  { %9295 = vrcp.f32 %v4168_v26  ;;  %v4193_v26 = vld [vmem:[#allocation10 + $0x58] sm:$0xff] }
0x122c   :  { %9297 = vrcp.f32 %v3833_v41  ;;  %v8890_v41 = vpack.c.bf16 %v4193_v26, %v4192_v56 }
0x1233   :  { %v10333_v51 = vpop.eup %9293 }
0x1234   :  { %v4007_v63 = vmul.f32 %v10333_v51, %v10226_v35 }
0x1235   :  { %v9296_v30 = vpop.eup %9295 }
0x1236   :  { %v9298_v58 = vpop.eup %9297  ;;  %v4172_v29 = vmul.f32 %v9296_v30, %v10218_v34 }
0x1269   :  { %v3500_v6 = vpop.permute.xlu0 %3499 }
0x126a   :  { %v3502_v38 = vmul.f32 %v10325_v16, %v3500_v6  ;;  %v3837_v6 = vmul.f32 %v9298_v58, %v10213_v15 }
0x126c   :  { %3504 = vrot.lane.b32.xlu1 %v3502_v38, %s9588_s3 }
0x1271   :  { %v3670_v7 = vpop.permute.xlu0 %3669 }
0x1272   :  { %v3672_v22 = vmul.f32 %v10329_v14, %v3670_v7  ;;  %v4190_v7 = vld [vmem:[#allocation10 + $0x40] sm:$0xff] }
0x1274   :  { %3674 = vrot.lane.b32.xlu1 %v3672_v22, %s9588_s3  ;;  %v4191_v22 = vld [vmem:[#allocation10 + $0x48] sm:$0xff] }
0x1275   :  { %v8887_v39 = vpack.c.bf16 %v4191_v22, %v4190_v7 }
0x1277   :  { %8888 = vmatpush3.bf16.msra.mxu0 %v8887_v39 }
0x1278   :  { %8889 = vmatprep.subr.bf16.mxu0 %v9584_v0 }
0x127b   :  { %8891 = vmatpush3.bf16.msra.mxu0 %v8890_v41 }
0x127c   :  { %8898 = vmatprep.subr.bf16.mxu0 %v9584_v0 }
0x1281   :  { %v4010_v52 = vpop.permute.xlu0 %4009 }
0x1282   :  { %v4012_v53 = vmul.f32 %v10333_v51, %v4010_v52 }
0x1284   :  { %4014 = vrot.lane.b32.xlu1 %v4012_v53, %s9588_s3 }
0x1289   :  { %v4175_v43 = vpop.permute.xlu1 %4174 }
0x128a   :  { %v4177_v31 = vmul.f32 %v9296_v30, %v4175_v43 }
0x128c   :  { %4179 = vrot.lane.b32.xlu0 %v4177_v31, %s9588_s3 }
0x128d   :  { %v3840_v59 = vpop.permute.xlu1 %3839 }
0x128e   :  { %v3842_v60 = vmul.f32 %v9298_v58, %v3840_v59 }
0x1290   :  { %3844 = vrot.lane.b32.xlu0 %v3842_v60, %s9588_s3 }
0x12de   :  { %v3505_v33 = vpop.permute.xlu1 %3504 }
0x12df   :  { %v10341_v23 = vadd.f32 %v3505_v33, %v3497_v2 }
0x12e1   :  { %9299 = vtanh.f32 %v10341_v23 }
0x12e6   :  { %v3675_v50 = vpop.permute.xlu1 %3674 }
0x12e7   :  { %v10346_v5 = vadd.f32 %v3675_v50, %v3667_v54 }
0x12e9   :  { %9301 = vtanh.f32 %v10346_v5 }
0x12eb   :  { %v9300_v44 = vpop.eup %9299 }
0x12ec   :  { %3510 = vrot.lane.b32.xlu0 %v9300_v44, %s9587_s14 }
0x12f3   :  { %v9302_v3 = vpop.eup %9301 }
0x12f4   :  { %3680 = vrot.lane.b32.xlu0 %v9302_v3, %s9587_s14 }
0x12f6   :  { %v4015_v20 = vpop.permute.xlu1 %4014 }
0x12f7   :  { %v10353_v62 = vadd.f32 %v4015_v20, %v4007_v63 }
0x12f9   :  { %9303 = vtanh.f32 %v10353_v62 }
0x12fe   :  { %v4180_v21 = vpop.permute.xlu0 %4179 }
0x12ff   :  { %v10357_v28 = vadd.f32 %v4180_v21, %v4172_v29 }
0x1301   :  { %9305 = vtanh.f32 %v10357_v28 }
0x1302   :  { %v3845_v32 = vpop.permute.xlu0 %3844 }
0x1303   :  { %v9304_v38 = vpop.eup %9303  ;;  %v10361_v9 = vadd.f32 %v3845_v32, %v3837_v6 }
0x1304   :  { %4020 = vrot.lane.b32.xlu0 %v9304_v38, %s9587_s14 }
0x1305   :  { %9307 = vtanh.f32 %v10361_v9 }
0x130b   :  { %v9306_v35 = vpop.eup %9305 }
0x130c   :  { %4185 = vrot.lane.b32.xlu1 %v9306_v35, %s9587_s14 }
0x130f   :  { %v9308_v27 = vpop.eup %9307 }
0x1310   :  { %3850 = vrot.lane.b32.xlu1 %v9308_v27, %s9587_s14 }
0x135e   :  { %v3511_v34 = vpop.permute.xlu0 %3510 }
0x135f   :  { %v3513_v15 = vmul.f32 %v10325_v16, %v3511_v34 }
0x1361   :  { %v4271_v48 = vrot.slane %v3513_v15, 4 }
0x1363   :  { %4272 = vrot.lane.b32.xlu0 %v4271_v48, %s9588_s3 }
0x1366   :  { %v3681_v43 = vpop.permute.xlu0 %3680 }
0x1367   :  { %v3683_v16 = vmul.f32 %v10329_v14, %v3681_v43 }
0x1376   :  { %v4021_v60 = vpop.permute.xlu0 %4020 }
0x1377   :  { %v4023_v61 = vmul.f32 %v10333_v51, %v4021_v60 }
0x137e   :  { %v4186_v52 = vpop.permute.xlu1 %4185 }
0x137f   :  { %v4188_v53 = vmul.f32 %v9296_v30, %v4186_v52 }
0x1381   :  { %4195 = vrot.lane.b32.xlu1 %v4188_v53, %s9588_s3 }
0x1382   :  { %v3851_v31 = vpop.permute.xlu1 %3850 }
0x1383   :  { %v3853_v59 = vmul.f32 %v9298_v58, %v3851_v31  ;;  %v10453_v31 = vld [vmem:[%s10780_s4 + $0x4] ss:$0 sm:$0xff] }
0x1385   :  { %4378 = vrot.lane.b32.xlu1 %v3683_v16, %s9588_s3  ;;  %4548 = vrot.lane.b32.xlu0 %v3853_v59, %s9588_s3 }
0x1389   :  { %4718 = vrot.lane.b32.xlu1 %v4023_v61, %s9588_s3 }
0x13d5   :  { %v4273_v2 = vpop.permute.xlu0 %4272 }
0x13d6   :  { %8243 = vmatmul.mubr.msk.f32.vlgmr.msra.gmra.mrb[46].mxu1 %vm108_vm1, %v4273_v2 }
0x13d7   :  { %8906 = vmatpush3.bf16.msra.mxu1 %v9772_v45  ;;  %8264 = vmatprep.mubr.msk.f32.mxu1 %vm9585_vm0, %v9586_v1 }
0x13d8   :  { %8907 = vmatprep.subr.bf16.mxu1 %v9584_v0 }
0x13db   :  { %8909 = vmatpush3.bf16.msra.mxu1 %v9776_v49 }
0x13dc   :  { %8916 = vmatprep.subr.bf16.mxu1 %v9584_v0 }
0x13de   :  { %8265 = vmatmul.mubr.msk.f32.vlgmr.msra.gmra.mrb[48].mxu1 %vm108_vm1, %v4273_v2 }
0x13df   :  { %8918 = vmatpush3.bf16.msra.mxu1 %v9820_v42  ;;  %8286 = vmatprep.mubr.msk.f32.mxu1 %vm9585_vm0, %v9586_v1 }
0x13e0   :  { %8919 = vmatprep.subr.bf16.mxu1 %v9584_v0 }
0x13e3   :  { %8921 = vmatpush3.bf16.msra.mxu1 %v9832_v47 }
0x13e4   :  { %8928 = vmatprep.subr.bf16.mxu1 %v9584_v0 }
0x13f3   :  { %v4196_v14 = vpop.permute.xlu1 %4195 }
0x13f4   :  { %8232 = vmatmul.mubr.msk.f32.vlgmr.msra.gmra.mrb[46].mxu0 %vm108_vm1, %v4196_v14 }
0x13f5   :  { %8900 = vmatpush3.bf16.msra.mxu0 %v9756_v37  ;;  %8253 = vmatprep.mubr.msk.f32.mxu0 %vm9585_vm0, %v9586_v1 }
0x13f6   :  { %8901 = vmatprep.subr.bf16.mxu0 %v9584_v0 }
0x13f7   :  { %v4379_v51 = vpop.permute.xlu1 %4378  ;;  %v4549_v30 = vpop.permute.xlu0 %4548 }
0x13f8   :  { %8287 = vmatmul.mubr.msk.f32.vlgmr.msra.gmra.mrb[50].mxu1 %vm108_vm1, %v4379_v51 }
0x13f9   :  { %8903 = vmatpush3.bf16.msra.mxu0 %v9760_v40  ;;  %8930 = vmatpush3.bf16.msra.mxu1 %v9908_v8 }
0x13fa   :  { %8910 = vmatprep.subr.bf16.mxu0 %v9584_v0  ;;  %8931 = vmatprep.subr.bf16.mxu1 %v9584_v0 }
0x13fb   :  { %8308 = vmatprep.mubr.msk.f32.mxu1 %vm9585_vm0, %v9586_v1  ;;  %v4719_v58 = vpop.permute.xlu1 %4718 }
0x13fc   :  { %8254 = vmatmul.mubr.msk.f32.vlgmr.msra.gmra.mrb[48].mxu0 %vm108_vm1, %v4379_v51 }
0x13fd   :  { %8912 = vmatpush3.bf16.msra.mxu0 %v9817_v36  ;;  %8933 = vmatpush3.bf16.msra.mxu1 %v9920_v13 }
0x13fe   :  { %8913 = vmatprep.subr.bf16.mxu0 %v9584_v0  ;;  %8940 = vmatprep.subr.bf16.mxu1 %v9584_v0 }
0x13ff   :  { %8275 = vmatprep.mubr.msk.f32.mxu0 %vm9585_vm0, %v9586_v1 }
0x1400   :  { %8309 = vmatmul.mubr.msk.f32.vlgmr.msra.gmra.mrb[52].mxu1 %vm108_vm1, %v4549_v30 }
0x1401   :  { %8915 = vmatpush3.bf16.msra.mxu0 %v9825_v46  ;;  %8942 = vmatpush3.bf16.msra.mxu1 %v10019_v17 }
0x1402   :  { %8922 = vmatprep.subr.bf16.mxu0 %v9584_v0  ;;  %8943 = vmatprep.subr.bf16.mxu1 %v9584_v0 }
0x1403   :  { %8330 = vmatprep.mubr.msk.f32.mxu1 %vm9585_vm0, %v9586_v1 }
0x1404   :  { %8276 = vmatmul.mubr.msk.f32.vlgmr.msra.gmra.mrb[50].mxu0 %vm108_vm1, %v4549_v30 }
0x1405   :  { %8924 = vmatpush3.bf16.msra.mxu0 %v9904_v4  ;;  %8945 = vmatpush3.bf16.msra.mxu1 %v10031_v25 }
0x1406   :  { %8925 = vmatprep.subr.bf16.mxu0 %v9584_v0  ;;  %8297 = vmatprep.mubr.msk.f32.mxu0 %vm9585_vm0, %v9586_v1 }
0x1407   :  { %8952 = vmatprep.subr.bf16.mxu1 %v9584_v0 }
0x1408   :  { %8331 = vmatmul.mubr.msk.f32.vlgmr.msra.gmra.mrb[54].mxu1 %vm108_vm1, %v4719_v58 }
0x1409   :  { %8927 = vmatpush3.bf16.msra.mxu0 %v9913_v12  ;;  %8954 = vmatpush3.bf16.msra.mxu1 %v9756_v37 }
0x140a   :  { %8934 = vmatprep.subr.bf16.mxu0 %v9584_v0  ;;  %8955 = vmatprep.subr.bf16.mxu1 %v9584_v0 }
0x140b   :  { %8352 = vmatprep.mubr.msk.f32.mxu1 %vm9585_vm0, %v9586_v1 }
0x140c   :  { %8298 = vmatmul.mubr.msk.f32.vlgmr.msra.gmra.mrb[52].mxu0 %vm108_vm1, %v4719_v58 }
0x140d   :  { %8936 = vmatpush3.bf16.msra.mxu0 %v10015_v10  ;;  %8319 = vmatprep.mubr.msk.f32.mxu0 %vm9585_vm0, %v9586_v1 }
0x140e   :  { %8937 = vmatprep.subr.bf16.mxu0 %v9584_v0  ;;  %8957 = vmatpush3.bf16.msra.mxu1 %v9760_v40 }
0x140f   :  { %8964 = vmatprep.subr.bf16.mxu1 %v9584_v0 }
0x1411   :  { %8939 = vmatpush3.bf16.msra.mxu0 %v10024_v24 }
0x1412   :  { %8946 = vmatprep.subr.bf16.mxu0 %v9584_v0 }
0x1414   :  { %8320 = vmatmul.mubr.msk.f32.vlgmr.msra.gmra.mrb[54].mxu0 %vm108_vm1, %v4196_v14 }
0x1415   :  { %8341 = vmatprep.mubr.msk.f32.mxu0 %vm9585_vm0, %v9586_v1 }
0x14a9   :  { %v4342_v37 = vpop.f32.mrb[46].mxu1 }
0x14aa   :  { %v4347_v33 = vrot.slane %v4342_v37, 2  ;;  %v8244_v54 = vpop.f32.mrb[47].mxu1 }
0x14ac   :  { %v4349_v50 = vadd.f32 %v4347_v33, %v9745_v19 }
0x14ae   :  { %9309 = vtanh.f32 %v4349_v50  ;;  %v7262_v14 = vmul.f32 -1.442695, %v4349_v50 }
0x14b1   :  { %v4518_v44 = vpop.f32.mrb[48].mxu1 }
0x14b2   :  { %v8266_v3 = vpop.f32.mrb[49].mxu1 }
0x14b8   :  { %v9310_v40 = vpop.eup %9309 }
0x14b9   :  { %4362 = vrot.lane.b32.xlu1 %v9310_v40, %s9587_s14 }
0x14c7   :  { %v4265_v63 = vpop.f32.mrb[46].mxu0 }
0x14c8   :  { %v10446_v20 = vadd.f32 %v4265_v63, %v10308_v11  ;;  %v8233_v29 = vpop.f32.mrb[47].mxu0 }
0x14cb   :  { %v4688_v21 = vpop.f32.mrb[50].mxu1 }
0x14cc   :  { %v8288_v6 = vpop.f32.mrb[51].mxu1 }
0x14cf   :  { %v4448_v32 = vpop.f32.mrb[48].mxu0 }
0x14d0   :  { %v4519_v38 = vadd.f32 %v4518_v44, %v4448_v32  ;;  %v8255_v35 = vpop.f32.mrb[49].mxu0 }
0x14d3   :  { %v4858_v27 = vpop.f32.mrb[52].mxu1 }
0x14d4   :  { %v8310_v34 = vpop.f32.mrb[53].mxu1 }
0x14d7   :  { %v4618_v7 = vpop.f32.mrb[50].mxu0 }
0x14d8   :  { %v4689_v19 = vadd.f32 %v4688_v21, %v4618_v7  ;;  %v8277_v22 = vpop.f32.mrb[51].mxu0 }
0x14da   :  { %v4692_v56 = vadd.f32 %v10177_v18, %v4689_v19  ;;  %v4522_v18 = vadd.f32 %v10185_v55, %v4519_v38 }
0x14db   :  { %v5023_v15 = vpop.f32.mrb[54].mxu1 }
0x14dc   :  { %9311 = vtanh.f32 %v4692_v56  ;;  %v8332_v39 = vpop.f32.mrb[55].mxu1  ;;  %v7268_v33 = vmul.f32 -1.442695, %v4692_v56  ;;  %v7265_v40 = vmul.f32 -1.442695, %v4522_v18 }
0x14df   :  { %v4788_v26 = vpop.f32.mrb[52].mxu0 }
0x14e0   :  { %v4859_v48 = vadd.f32 %v4858_v27, %v4788_v26  ;;  %v8299_v11 = vpop.f32.mrb[53].mxu0 }
0x14e2   :  { %v4862_v59 = vadd.f32 %v10317_v57, %v4859_v48 }
0x14e4   :  { %v7271_v50 = vmul.f32 -1.442695, %v4862_v59 }
0x14e6   :  { %v9312_v41 = vpop.eup %9311 }
0x14e7   :  { %4702 = vrot.lane.b32.xlu1 %v9312_v41, %s9587_s14  ;;  %v4953_v52 = vpop.f32.mrb[54].mxu0  ;;  %v4358_v41 = vrot.slane %v10341_v23, 6 }
0x14e8   :  { %v5024_v53 = vadd.f32 %v5023_v15, %v4953_v52  ;;  %v8321_v43 = vpop.f32.mrb[55].mxu0 }
0x14ea   :  { %v5027_v16 = vadd.f32 %v10453_v31, %v5024_v53 }
0x14ec   :  { %9313 = vtanh.f32 %v5027_v16  ;;  %v7274_v44 = vmul.f32 -1.442695, %v5027_v16 }
0x14ed   :  { %9315 = vtanh.f32 %v4522_v18 }
0x14ee   :  { %9317 = vtanh.f32 %v4862_v59 }
0x14ef   :  { %9319 = vpow2.f32 %v7262_v14 }
0x14f6   :  { %v9314_v60 = vpop.eup %9313 }
0x14f7   :  { %5037 = vrot.lane.b32.xlu0 %v9314_v60, %s9587_s14  ;;  %v9316_v61 = vpop.eup %9315 }
0x14f8   :  { %v9318_v2 = vpop.eup %9317 }
0x14f9   :  { %v9320_v51 = vpop.eup %9319 }
0x14fa   :  { %v4353_v30 = vadd.f32 1.0, %v9320_v51 }
0x14fb   :  { %4532 = vrot.lane.b32.xlu0 %v9316_v61, %s9587_s14 }
0x14fc   :  { %9321 = vrcp.f32 %v4353_v30 }
0x14fd   :  { %9323 = vpow2.f32 %v7268_v33 }
0x14fe   :  { %9325 = vpow2.f32 %v7274_v44  ;;  %v5055_v44 = vld [vmem:[#allocation10 + $0x70] sm:$0xff] }
0x14ff   :  { %4872 = vrot.lane.b32.xlu0 %v9318_v2, %s9587_s14 }
0x1506   :  { %v10461_v55 = vpop.eup %9321 }
0x1507   :  { %v9324_v54 = vpop.eup %9323  ;;  %v4360_v52 = vmul.f32 %v10461_v55, %v4358_v41 }
0x1508   :  { %v4696_v3 = vadd.f32 1.0, %v9324_v54  ;;  %v9326_v63 = vpop.eup %9325  ;;  %v5054_v54 = vld [vmem:[#allocation10 + $0x68] sm:$0xff] }
0x1509   :  { %v5031_v32 = vadd.f32 1.0, %v9326_v63 }
0x150a   :  { %9327 = vrcp.f32 %v4696_v3 }
0x150b   :  { %9329 = vpow2.f32 %v7265_v40  ;;  %v5056_v40 = vld [vmem:[#allocation10 + $0x78] sm:$0xff] }
0x150c   :  { %9331 = vpow2.f32 %v7271_v50 }
0x150d   :  { %9333 = vrcp.f32 %v5031_v32 }
0x1514   :  { %v10465_v29 = vpop.eup %9327 }
0x1515   :  { %v9330_v38 = vpop.eup %9329  ;;  %v4700_v18 = vmul.f32 %v10465_v29, %v10361_v9 }
0x1516   :  { %v4526_v35 = vadd.f32 1.0, %v9330_v38  ;;  %v9332_v27 = vpop.eup %9331 }
0x1517   :  { %v4866_v34 = vadd.f32 1.0, %v9332_v27  ;;  %v9334_v7 = vpop.eup %9333 }
0x1518   :  { %9335 = vrcp.f32 %v4526_v35  ;;  %v5035_v23 = vmul.f32 %v9334_v7, %v10357_v28  ;;  %v5053_v28 = vld [vmem:[#allocation10 + $0x60] sm:$0xff] }
0x1519   :  { %9337 = vrcp.f32 %v4866_v34  ;;  %v8947_v3 = vpack.c.bf16 %v5054_v54, %v5053_v28 }
0x151b   :  { %8948 = vmatpush3.bf16.msra.mxu0 %v8947_v3 }
0x151c   :  { %8949 = vmatprep.subr.bf16.mxu0 %v9584_v0 }
0x1522   :  { %v9336_v56 = vpop.eup %9335 }
0x1523   :  { %v9338_v26 = vpop.eup %9337  ;;  %v4530_v51 = vmul.f32 %v9336_v56, %v10346_v5  ;;  %v8950_v5 = vpack.c.bf16 %v5056_v40, %v5055_v44 }
0x1524   :  { %v4870_v9 = vmul.f32 %v9338_v26, %v10353_v62 }
0x1525   :  { %8951 = vmatpush3.bf16.msra.mxu0 %v8950_v5 }
0x1526   :  { %8958 = vmatprep.subr.bf16.mxu0 %v9584_v0 }
0x152b   :  { %v4363_v58 = vpop.permute.xlu1 %4362 }
0x152c   :  { %v4365_v37 = vmul.f32 %v10461_v55, %v4363_v58 }
0x152e   :  { %4367 = vrot.lane.b32.xlu0 %v4365_v37, %s9588_s3 }
0x1559   :  { %v4703_v21 = vpop.permute.xlu1 %4702 }
0x155a   :  { %v4705_v6 = vmul.f32 %v10465_v29, %v4703_v21 }
0x155c   :  { %4707 = vrot.lane.b32.xlu0 %v4705_v6, %s9588_s3 }
0x1569   :  { %v5038_v19 = vpop.permute.xlu0 %5037 }
0x156a   :  { %v5040_v22 = vmul.f32 %v9334_v7, %v5038_v19 }
0x156c   :  { %5042 = vrot.lane.b32.xlu1 %v5040_v22, %s9588_s3 }
0x156d   :  { %v4533_v15 = vpop.permute.xlu0 %4532 }
0x156e   :  { %v4535_v39 = vmul.f32 %v9336_v56, %v4533_v15 }
0x1570   :  { %4537 = vrot.lane.b32.xlu1 %v4535_v39, %s9588_s3 }
0x1571   :  { %v4873_v48 = vpop.permute.xlu0 %4872 }
0x1572   :  { %v4875_v11 = vmul.f32 %v9338_v26, %v4873_v48 }
0x1574   :  { %4877 = vrot.lane.b32.xlu1 %v4875_v11, %s9588_s3 }
0x15a0   :  { %v4368_v53 = vpop.permute.xlu0 %4367 }
0x15a1   :  { %v4370_v43 = vadd.f32 %v4368_v53, %v4360_v52 }
0x15a3   :  { %9339 = vtanh.f32 %v4370_v43 }
0x15ad   :  { %v9340_v16 = vpop.eup %9339 }
0x15ae   :  { %4373 = vrot.lane.b32.xlu1 %v9340_v16, %s9587_s14 }
0x15ce   :  { %v4708_v59 = vpop.permute.xlu0 %4707 }
0x15cf   :  { %v10477_v60 = vadd.f32 %v4708_v59, %v4700_v18 }
0x15d1   :  { %9341 = vtanh.f32 %v10477_v60 }
0x15db   :  { %v9342_v61 = vpop.eup %9341 }
0x15dc   :  { %4713 = vrot.lane.b32.xlu1 %v9342_v61, %s9587_s14 }
0x15de   :  { %v5043_v2 = vpop.permute.xlu1 %5042 }
0x15df   :  { %v10482_v14 = vadd.f32 %v5043_v2, %v5035_v23 }
0x15e1   :  { %9343 = vtanh.f32 %v10482_v14 }
0x15e2   :  { %v4538_v30 = vpop.permute.xlu1 %4537 }
0x15e3   :  { %v10486_v58 = vadd.f32 %v4538_v30, %v4530_v51 }
0x15e5   :  { %9345 = vtanh.f32 %v10486_v58 }
0x15e6   :  { %v4878_v37 = vpop.permute.xlu1 %4877 }
0x15e7   :  { %v10490_v33 = vadd.f32 %v4878_v37, %v4870_v9 }
0x15e9   :  { %9347 = vtanh.f32 %v10490_v33 }
0x15eb   :  { %v9344_v50 = vpop.eup %9343 }
0x15ec   :  { %5048 = vrot.lane.b32.xlu0 %v9344_v50, %s9587_s14 }
0x15ef   :  { %v9346_v63 = vpop.eup %9345 }
0x15f0   :  { %4543 = vrot.lane.b32.xlu0 %v9346_v63, %s9587_s14  ;;  %v10576_v63 = vld [vmem:[%s10780_s4 + $0x2] ss:$0 sm:$0xff] }
0x15f3   :  { %v9348_v62 = vpop.eup %9347 }
0x15f4   :  { %4883 = vrot.lane.b32.xlu0 %v9348_v62, %s9587_s14 }
0x1620   :  { %v4374_v21 = vpop.permute.xlu1 %4373 }
0x1621   :  { %v4376_v32 = vmul.f32 %v10461_v55, %v4374_v21 }
0x1623   :  { %v5209_v27 = vrot.slane %v4376_v32, 6 }
0x164e   :  { %v4714_v19 = vpop.permute.xlu1 %4713 }
0x164f   :  { %v4716_v15 = vmul.f32 %v10465_v29, %v4714_v19 }
0x165e   :  { %v5049_v6 = vpop.permute.xlu0 %5048 }
0x165f   :  { %v5051_v38 = vmul.f32 %v9334_v7, %v5049_v6 }
0x1661   :  { %5058 = vrot.lane.b32.xlu1 %v5051_v38, %s9588_s3 }
0x1662   :  { %v4544_v35 = vpop.permute.xlu0 %4543 }
0x1663   :  { %v4546_v34 = vmul.f32 %v9336_v56, %v4544_v35 }
0x1665   :  { %5210 = vrot.lane.b32.xlu1 %v5209_v27, %s9588_s3  ;;  %5134 = vrot.lane.b32.xlu0 %v4546_v34, %s9588_s3 }
0x1666   :  { %v4884_v22 = vpop.permute.xlu0 %4883 }
0x1667   :  { %v4886_v39 = vmul.f32 %v9338_v26, %v4884_v22 }
0x1669   :  { %5310 = vrot.lane.b32.xlu0 %v4716_v15, %s9588_s3  ;;  %5480 = vrot.lane.b32.xlu1 %v4886_v39, %s9588_s3 }
0x16d3   :  { %v5059_v55 = vpop.permute.xlu1 %5058 }
0x16d4   :  { %8342 = vmatmul.mubr.msk.f32.vlgmr.msra.gmra.mrb[56].mxu0 %vm108_vm1, %v5059_v55 }
0x16d5   :  { %8960 = vmatpush3.bf16.msra.mxu0 %v9772_v45  ;;  %8363 = vmatprep.mubr.msk.f32.mxu0 %vm9585_vm0, %v9586_v1 }
0x16d6   :  { %8961 = vmatprep.subr.bf16.mxu0 %v9584_v0 }
0x16d7   :  { %v5135_v7 = vpop.permute.xlu0 %5134  ;;  %v5211_v29 = vpop.permute.xlu1 %5210 }
0x16d8   :  { %8353 = vmatmul.mubr.msk.f32.vlgmr.msra.gmra.mrb[56].mxu1 %vm108_vm1, %v5135_v7 }
0x16d9   :  { %8963 = vmatpush3.bf16.msra.mxu0 %v9776_v49  ;;  %8966 = vmatpush3.bf16.msra.mxu1 %v9817_v36 }
0x16da   :  { %8970 = vmatprep.subr.bf16.mxu0 %v9584_v0  ;;  %8967 = vmatprep.subr.bf16.mxu1 %v9584_v0 }
0x16db   :  { %8374 = vmatprep.mubr.msk.f32.mxu1 %vm9585_vm0, %v9586_v1  ;;  %v5311_v45 = vpop.permute.xlu0 %5310  ;;  %v5481_v49 = vpop.permute.xlu1 %5480 }
0x16dc   :  { %8364 = vmatmul.mubr.msk.f32.vlgmr.msra.gmra.mrb[58].mxu0 %vm108_vm1, %v5211_v29 }
0x16dd   :  { %8969 = vmatpush3.bf16.msra.mxu1 %v9825_v46  ;;  %8972 = vmatpush3.bf16.msra.mxu0 %v9820_v42 }
0x16de   :  { %8973 = vmatprep.subr.bf16.mxu0 %v9584_v0  ;;  %8976 = vmatprep.subr.bf16.mxu1 %v9584_v0 }
0x16df   :  { %8385 = vmatprep.mubr.msk.f32.mxu0 %vm9585_vm0, %v9586_v1 }
0x16e0   :  { %8375 = vmatmul.mubr.msk.f32.vlgmr.msra.gmra.mrb[58].mxu1 %vm108_vm1, %v5311_v45 }
0x16e1   :  { %8975 = vmatpush3.bf16.msra.mxu0 %v9832_v47  ;;  %8978 = vmatpush3.bf16.msra.mxu1 %v9904_v4 }
0x16e2   :  { %8979 = vmatprep.subr.bf16.mxu1 %v9584_v0  ;;  %8982 = vmatprep.subr.bf16.mxu0 %v9584_v0 }
0x16e3   :  { %8396 = vmatprep.mubr.msk.f32.mxu1 %vm9585_vm0, %v9586_v1 }
0x16e4   :  { %8386 = vmatmul.mubr.msk.f32.vlgmr.msra.gmra.mrb[60].mxu0 %vm108_vm1, %v5135_v7 }
0x16e5   :  { %8981 = vmatpush3.bf16.msra.mxu1 %v9913_v12  ;;  %8984 = vmatpush3.bf16.msra.mxu0 %v9908_v8 }
0x16e6   :  { %8985 = vmatprep.subr.bf16.mxu0 %v9584_v0  ;;  %8988 = vmatprep.subr.bf16.mxu1 %v9584_v0 }
0x16e7   :  { %8407 = vmatprep.mubr.msk.f32.mxu0 %vm9585_vm0, %v9586_v1 }
0x16e8   :  { %8397 = vmatmul.mubr.msk.f32.vlgmr.msra.gmra.mrb[60].mxu1 %vm108_vm1, %v5481_v49 }
0x16e9   :  { %8987 = vmatpush3.bf16.msra.mxu0 %v9920_v13  ;;  %8990 = vmatpush3.bf16.msra.mxu1 %v10015_v10 }
0x16ea   :  { %8991 = vmatprep.subr.bf16.mxu1 %v9584_v0  ;;  %8994 = vmatprep.subr.bf16.mxu0 %v9584_v0 }
0x16eb   :  { %8418 = vmatprep.mubr.msk.f32.mxu1 %vm9585_vm0, %v9586_v1 }
0x16ec   :  { %8408 = vmatmul.mubr.msk.f32.vlgmr.msra.gmra.mrb[62].mxu0 %vm108_vm1, %v5311_v45 }
0x16ed   :  { %8993 = vmatpush3.bf16.msra.mxu1 %v10024_v24  ;;  %8996 = vmatpush3.bf16.msra.mxu0 %v10019_v17 }
0x16ee   :  { %8997 = vmatprep.subr.bf16.mxu0 %v9584_v0  ;;  %8429 = vmatprep.mubr.msk.f32.mxu0 %vm9585_vm0, %v9586_v1 }
0x16ef   :  { %9000 = vmatprep.subr.bf16.mxu1 %v9584_v0 }
0x16f0   :  { %8419 = vmatmul.mubr.msk.f32.vlgmr.msra.gmra.mrb[62].mxu1 %vm108_vm1, %v5059_v55 }
0x16f1   :  { %8999 = vmatpush3.bf16.msra.mxu0 %v10031_v25  ;;  %8440 = vmatprep.mubr.msk.f32.mxu1 %vm9585_vm0, %v9586_v1 }
0x16f2   :  { %9006 = vmatprep.subr.bf16.mxu0 %v9584_v0 }
0x16f4   :  { %8430 = vmatmul.mubr.msk.f32.vlgmr.msra.gmra.mrb[64].mxu0 %vm108_vm1, %v5481_v49 }
0x16f5   :  { %9008 = vmatpush3.bf16.msra.mxu0 %v9817_v36  ;;  %8451 = vmatprep.mubr.msk.f32.mxu0 %vm9585_vm0, %v9586_v1  ;;  %v9433_v36 = vld [vmem:[%s10780_s4 + $0x1] ss:$0 sm:$0xff] }
0x16f6   :  { %9009 = vmatprep.subr.bf16.mxu0 %v9584_v0 }
0x16f9   :  { %9011 = vmatpush3.bf16.msra.mxu0 %v9825_v46 }
0x16fa   :  { %9018 = vmatprep.subr.bf16.mxu0 %v9584_v0 }
0x17a7   :  { %v5128_v56 = vpop.f32.mrb[56].mxu0 }
0x17a8   :  { %v10565_v26 = vadd.f32 %v5128_v56, %v10446_v20  ;;  %v8343_v48 = vpop.f32.mrb[57].mxu0 }
0x17ab   :  { %v5204_v11 = vpop.f32.mrb[56].mxu1 }
0x17ac   :  { %v8354_v41 = vpop.f32.mrb[57].mxu1 }
0x17af   :  { %v5280_v52 = vpop.f32.mrb[58].mxu0 }
0x17b0   :  { %v5281_v53 = vadd.f32 %v5280_v52, %v5204_v11  ;;  %v8365_v43 = vpop.f32.mrb[59].mxu0 }
0x17b2   :  { %v5284_v16 = vadd.f32 %v9433_v36, %v5281_v53 }
0x17b3   :  { %v5380_v18 = vpop.f32.mrb[58].mxu1 }
0x17b4   :  { %9349 = vtanh.f32 %v5284_v16  ;;  %v8376_v46 = vpop.f32.mrb[59].mxu1  ;;  %v7278_v32 = vmul.f32 -1.442695, %v5284_v16 }
0x17b7   :  { %v5450_v59 = vpop.f32.mrb[60].mxu0 }
0x17b8   :  { %v5451_v61 = vadd.f32 %v5450_v59, %v5380_v18  ;;  %v8387_v23 = vpop.f32.mrb[61].mxu0 }
0x17ba   :  { %v5454_v62 = vadd.f32 %v10576_v63, %v5451_v61 }
0x17bb   :  { %v5550_v2 = vpop.f32.mrb[60].mxu1 }
0x17bc   :  { %v8398_v20 = vpop.f32.mrb[61].mxu1  ;;  %v7281_v19 = vmul.f32 -1.442695, %v5454_v62 }
0x17be   :  { %v9350_v51 = vpop.eup %9349 }
0x17bf   :  { %5294 = vrot.lane.b32.xlu1 %v9350_v51, %s9587_s14  ;;  %v5620_v30 = vpop.f32.mrb[62].mxu0 }
0x17c0   :  { %v5621_v9 = vadd.f32 %v5620_v30, %v5550_v2  ;;  %v8409_v37 = vpop.f32.mrb[63].mxu0 }
0x17c2   :  { %v5624_v28 = vadd.f32 %v10317_v57, %v5621_v9 }
0x17c3   :  { %v5715_v54 = vpop.f32.mrb[62].mxu1 }
0x17c4   :  { %9351 = vtanh.f32 %v5624_v28  ;;  %v8420_v44 = vpop.f32.mrb[63].mxu1  ;;  %v7284_v35 = vmul.f32 -1.442695, %v5624_v28 }
0x17c7   :  { %v5785_v3 = vpop.f32.mrb[64].mxu0 }
0x17c8   :  { %v5786_v40 = vadd.f32 %v5785_v3, %v5715_v54  ;;  %v8431_v50 = vpop.f32.mrb[65].mxu0  ;;  %v5816_v3 = vld [vmem:[#allocation10 + $0x88] sm:$0xff] }
0x17ca   :  { %v5789_v5 = vadd.f32 %v10453_v31, %v5786_v40  ;;  %v5817_v40 = vld [vmem:[#allocation10 + $0x90] sm:$0xff] }
0x17cc   :  { %9353 = vtanh.f32 %v5789_v5  ;;  %v7287_v34 = vmul.f32 -1.442695, %v5789_v5 }
0x17cd   :  { %9355 = vtanh.f32 %v5454_v62 }
0x17ce   :  { %v9352_v21 = vpop.eup %9351  ;;  %9357 = vpow2.f32 %v7278_v32 }
0x17cf   :  { %5634 = vrot.lane.b32.xlu1 %v9352_v21, %s9587_s14  ;;  %9359 = vpow2.f32 %v7284_v35 }
0x17d6   :  { %v9354_v57 = vpop.eup %9353 }
0x17d7   :  { %5799 = vrot.lane.b32.xlu0 %v9354_v57, %s9587_s14  ;;  %v9356_v6 = vpop.eup %9355 }
0x17d8   :  { %v9358_v38 = vpop.eup %9357 }
0x17d9   :  { %v5288_v27 = vadd.f32 1.0, %v9358_v38  ;;  %v9360_v22 = vpop.eup %9359 }
0x17da   :  { %v5628_v7 = vadd.f32 1.0, %v9360_v22 }
0x17db   :  { %5464 = vrot.lane.b32.xlu0 %v9356_v6, %s9587_s14  ;;  %9361 = vrcp.f32 %v5288_v27 }
0x17dc   :  { %9363 = vpow2.f32 %v7287_v34 }
0x17dd   :  { %9365 = vpow2.f32 %v7281_v19 }
0x17de   :  { %9367 = vrcp.f32 %v5628_v7 }
0x17e5   :  { %v10582_v15 = vpop.eup %9361 }
0x17e6   :  { %v9364_v29 = vpop.eup %9363  ;;  %v5292_v46 = vmul.f32 %v10582_v15, %v10486_v58 }
0x17e7   :  { %v5793_v45 = vadd.f32 1.0, %v9364_v29  ;;  %v9366_v49 = vpop.eup %9365 }
0x17e8   :  { %v5458_v56 = vadd.f32 1.0, %v9366_v49  ;;  %v9368_v48 = vpop.eup %9367 }
0x17e9   :  { %9369 = vrcp.f32 %v5793_v45  ;;  %v5632_v2 = vmul.f32 %v9368_v48, %v10490_v33  ;;  %v5815_v33 = vld [vmem:[#allocation10 + $0x80] sm:$0xff] }
0x17ea   :  { %9371 = vrcp.f32 %v5458_v56  ;;  %v9001_v50 = vpack.c.bf16 %v5816_v3, %v5815_v33 }
0x17ec   :  { %9002 = vmatpush3.bf16.msra.mxu1 %v9001_v50 }
0x17ed   :  { %9003 = vmatprep.subr.bf16.mxu1 %v9584_v0 }
0x17f3   :  { %v9370_v52 = vpop.eup %9369 }
0x17f4   :  { %v9372_v36 = vpop.eup %9371  ;;  %v5797_v30 = vmul.f32 %v9370_v52, %v10482_v14  ;;  %v5818_v14 = vld [vmem:[#allocation10 + $0x98] sm:$0xff] }
0x17f5   :  { %v5462_v58 = vmul.f32 %v9372_v36, %v10477_v60  ;;  %v9004_v62 = vpack.c.bf16 %v5818_v14, %v5817_v40 }
0x17f7   :  { %9005 = vmatpush3.bf16.msra.mxu1 %v9004_v62 }
0x17f8   :  { %9012 = vmatprep.subr.bf16.mxu1 %v9584_v0 }
0x1831   :  { %v5295_v39 = vpop.permute.xlu1 %5294 }
0x1832   :  { %v5297_v55 = vmul.f32 %v10582_v15, %v5295_v39 }
0x1834   :  { %5299 = vrot.lane.b32.xlu1 %v5297_v55, %s9588_s3 }
0x1841   :  { %v5635_v11 = vpop.permute.xlu1 %5634 }
0x1842   :  { %v5637_v41 = vmul.f32 %v9368_v48, %v5635_v11 }
0x1844   :  { %5639 = vrot.lane.b32.xlu1 %v5637_v41, %s9588_s3 }
0x1849   :  { %v5800_v53 = vpop.permute.xlu0 %5799 }
0x184a   :  { %v5802_v43 = vmul.f32 %v9370_v52, %v5800_v53 }
0x184c   :  { %5804 = vrot.lane.b32.xlu0 %v5802_v43, %s9588_s3 }
0x184d   :  { %v5465_v16 = vpop.permute.xlu0 %5464 }
0x184e   :  { %v5467_v18 = vmul.f32 %v9372_v36, %v5465_v16 }
0x1850   :  { %5469 = vrot.lane.b32.xlu0 %v5467_v18, %s9588_s3 }
0x18a6   :  { %v5300_v59 = vpop.permute.xlu1 %5299 }
0x18a7   :  { %v5302_v61 = vadd.f32 %v5300_v59, %v5292_v46 }
0x18a9   :  { %9373 = vtanh.f32 %v5302_v61 }
0x18b3   :  { %v9374_v23 = vpop.eup %9373 }
0x18b4   :  { %5305 = vrot.lane.b32.xlu1 %v9374_v23, %s9587_s14 }
0x18b6   :  { %v5640_v20 = vpop.permute.xlu1 %5639 }
0x18b7   :  { %v10593_v51 = vadd.f32 %v5640_v20, %v5632_v2 }
0x18b9   :  { %9375 = vtanh.f32 %v10593_v51 }
0x18be   :  { %v5805_v9 = vpop.permute.xlu0 %5804 }
0x18bf   :  { %v10597_v37 = vadd.f32 %v5805_v9, %v5797_v30 }
0x18c1   :  { %9377 = vtanh.f32 %v10597_v37 }
0x18c2   :  { %v5470_v28 = vpop.permute.xlu0 %5469 }
0x18c3   :  { %v9376_v54 = vpop.eup %9375  ;;  %v10601_v44 = vadd.f32 %v5470_v28, %v5462_v58 }
0x18c4   :  { %5645 = vrot.lane.b32.xlu1 %v9376_v54, %s9587_s14 }
0x18c5   :  { %9379 = vtanh.f32 %v10601_v44 }
0x18cb   :  { %v9378_v5 = vpop.eup %9377 }
0x18cc   :  { %5810 = vrot.lane.b32.xlu0 %v9378_v5, %s9587_s14 }
0x18cf   :  { %v9380_v60 = vpop.eup %9379 }
0x18d0   :  { %5475 = vrot.lane.b32.xlu0 %v9380_v60, %s9587_s14 }
0x1926   :  { %v5306_v6 = vpop.permute.xlu1 %5305 }
0x1927   :  { %v5308_v38 = vmul.f32 %v10582_v15, %v5306_v6 }
0x1936   :  { %v5646_v27 = vpop.permute.xlu1 %5645 }
0x1937   :  { %v5648_v34 = vmul.f32 %v9368_v48, %v5646_v27 }
0x193e   :  { %v5811_v21 = vpop.permute.xlu0 %5810 }
0x193f   :  { %v5813_v57 = vmul.f32 %v9370_v52, %v5811_v21 }
0x1941   :  { %5820 = vrot.lane.b32.xlu0 %v5813_v57, %s9588_s3 }
0x1942   :  { %v5476_v32 = vpop.permute.xlu0 %5475 }
0x1943   :  { %v5478_v35 = vmul.f32 %v9372_v36, %v5476_v32 }
0x1945   :  { %5971 = vrot.lane.b32.xlu0 %v5308_v38, %s9588_s3  ;;  %5896 = vrot.lane.b32.xlu1 %v5478_v35, %s9588_s3 }
0x1949   :  { %6071 = vrot.lane.b32.xlu1 %v5648_v34, %s9588_s3 }
0x19b3   :  { %v5821_v19 = vpop.permute.xlu0 %5820 }
0x19b4   :  { %8441 = vmatmul.mubr.msk.f32.vlgmr.msra.gmra.mrb[64].mxu1 %vm108_vm1, %v5821_v19 }
0x19b5   :  { %9014 = vmatpush3.bf16.msra.mxu1 %v9820_v42  ;;  %8462 = vmatprep.mubr.msk.f32.mxu1 %vm9585_vm0, %v9586_v1 }
0x19b6   :  { %9015 = vmatprep.subr.bf16.mxu1 %v9584_v0 }
0x19b7   :  { %v5897_v22 = vpop.permute.xlu1 %5896  ;;  %v5972_v15 = vpop.permute.xlu0 %5971 }
0x19b8   :  { %8452 = vmatmul.mubr.msk.f32.vlgmr.msra.gmra.mrb[66].mxu0 %vm108_vm1, %v5897_v22 }
0x19b9   :  { %9017 = vmatpush3.bf16.msra.mxu1 %v9832_v47  ;;  %9020 = vmatpush3.bf16.msra.mxu0 %v9904_v4 }
0x19ba   :  { %9021 = vmatprep.subr.bf16.mxu0 %v9584_v0  ;;  %9024 = vmatprep.subr.bf16.mxu1 %v9584_v0 }
0x19bb   :  { %8473 = vmatprep.mubr.msk.f32.mxu0 %vm9585_vm0, %v9586_v1  ;;  %v6072_v42 = vpop.permute.xlu1 %6071 }
0x19bc   :  { %8463 = vmatmul.mubr.msk.f32.vlgmr.msra.gmra.mrb[66].mxu1 %vm108_vm1, %v5972_v15 }
0x19bd   :  { %9023 = vmatpush3.bf16.msra.mxu0 %v9913_v12  ;;  %9026 = vmatpush3.bf16.msra.mxu1 %v9908_v8 }
0x19be   :  { %9027 = vmatprep.subr.bf16.mxu1 %v9584_v0  ;;  %9030 = vmatprep.subr.bf16.mxu0 %v9584_v0 }
0x19bf   :  { %8484 = vmatprep.mubr.msk.f32.mxu1 %vm9585_vm0, %v9586_v1 }
0x19c0   :  { %8474 = vmatmul.mubr.msk.f32.vlgmr.msra.gmra.mrb[68].mxu0 %vm108_vm1, %v6072_v42 }
0x19c1   :  { %9029 = vmatpush3.bf16.msra.mxu1 %v9920_v13  ;;  %9032 = vmatpush3.bf16.msra.mxu0 %v10015_v10 }
0x19c2   :  { %9033 = vmatprep.subr.bf16.mxu0 %v9584_v0  ;;  %9036 = vmatprep.subr.bf16.mxu1 %v9584_v0 }
0x19c3   :  { %8495 = vmatprep.mubr.msk.f32.mxu0 %vm9585_vm0, %v9586_v1 }
0x19c4   :  { %8485 = vmatmul.mubr.msk.f32.vlgmr.msra.gmra.mrb[68].mxu1 %vm108_vm1, %v5897_v22 }
0x19c5   :  { %9035 = vmatpush3.bf16.msra.mxu0 %v10024_v24  ;;  %9038 = vmatpush3.bf16.msra.mxu1 %v10019_v17 }
0x19c6   :  { %9039 = vmatprep.subr.bf16.mxu1 %v9584_v0  ;;  %8506 = vmatprep.mubr.msk.f32.mxu1 %vm9585_vm0, %v9586_v1 }
0x19c7   :  { %9042 = vmatprep.subr.bf16.mxu0 %v9584_v0 }
0x19c8   :  { %8496 = vmatmul.mubr.msk.f32.vlgmr.msra.gmra.mrb[70].mxu0 %vm108_vm1, %v5821_v19 }
0x19c9   :  { %9041 = vmatpush3.bf16.msra.mxu1 %v10031_v25  ;;  %8517 = vmatprep.mubr.msk.f32.mxu0 %vm9585_vm0, %v9586_v1 }
0x19ca   :  { %9048 = vmatprep.subr.bf16.mxu1 %v9584_v0 }
0x19cc   :  { %8507 = vmatmul.mubr.msk.f32.vlgmr.msra.gmra.mrb[70].mxu1 %vm108_vm1, %v6072_v42 }
0x19cd   :  { %9050 = vmatpush3.bf16.msra.mxu1 %v9904_v4  ;;  %8528 = vmatprep.mubr.msk.f32.mxu1 %vm9585_vm0, %v9586_v1 }
0x19ce   :  { %9051 = vmatprep.subr.bf16.mxu1 %v9584_v0 }
0x19d1   :  { %9053 = vmatpush3.bf16.msra.mxu1 %v9913_v12 }
0x19d2   :  { %9060 = vmatprep.subr.bf16.mxu1 %v9584_v0 }
0x1a87   :  { %v5890_v47 = vpop.f32.mrb[64].mxu1 }
0x1a88   :  { %v10660_v39 = vadd.f32 %v5890_v47, %v10565_v26  ;;  %v8442_v55 = vpop.f32.mrb[65].mxu1 }
0x1a89   :  { %v6407_v55 = vld [vmem:[#allocation10 + $0xa8] sm:$0xff] }
0x1a8b   :  { %v5966_v7 = vpop.f32.mrb[66].mxu0 }
0x1a8c   :  { %v8453_v29 = vpop.f32.mrb[67].mxu0 }
0x1a8f   :  { %v6041_v45 = vpop.f32.mrb[66].mxu1 }
0x1a90   :  { %v6042_v49 = vadd.f32 %v6041_v45, %v5966_v7  ;;  %v8464_v56 = vpop.f32.mrb[67].mxu1  ;;  %v6408_v7 = vld [vmem:[#allocation10 + $0xb0] sm:$0xff]  ;;  %v6409_v45 = vld [vmem:[#allocation10 + $0xb8] sm:$0xff] }
0x1a92   :  { %v6045_v4 = vadd.f32 %v10576_v63, %v6042_v49  ;;  %v10668_v63 = vld [vmem:[%s10780_s4 + $0x3] ss:$0 sm:$0xff]  ;;  %v9046_v49 = vpack.c.bf16 %v6409_v45, %v6408_v7 }
0x1a93   :  { %v6141_v48 = vpop.f32.mrb[68].mxu0 }
0x1a94   :  { %9381 = vtanh.f32 %v6045_v4  ;;  %v8475_v11 = vpop.f32.mrb[69].mxu0  ;;  %v7291_v2 = vmul.f32 -1.442695, %v6045_v4 }
0x1a97   :  { %v6211_v41 = vpop.f32.mrb[68].mxu1 }
0x1a98   :  { %v6212_v52 = vadd.f32 %v6211_v41, %v6141_v48  ;;  %v8486_v12 = vpop.f32.mrb[69].mxu1 }
0x1a9a   :  { %v6215_v59 = vadd.f32 %v10668_v63, %v6212_v52 }
0x1a9b   :  { %v6306_v53 = vpop.f32.mrb[70].mxu0 }
0x1a9c   :  { %v8497_v43 = vpop.f32.mrb[71].mxu0  ;;  %v7294_v58 = vmul.f32 -1.442695, %v6215_v59 }
0x1a9e   :  { %v9382_v36 = vpop.eup %9381 }
0x1a9f   :  { %v6376_v16 = vpop.f32.mrb[70].mxu1  ;;  %6055 = vrot.lane.b32.xlu1 %v9382_v36, %s9587_s14 }
0x1aa0   :  { %v6377_v26 = vadd.f32 %v6376_v16, %v6306_v53  ;;  %v8508_v18 = vpop.f32.mrb[71].mxu1 }
0x1aa2   :  { %v6380_v46 = vadd.f32 %v10453_v31, %v6377_v26 }
0x1aa4   :  { %9383 = vtanh.f32 %v6380_v46  ;;  %v7297_v30 = vmul.f32 -1.442695, %v6380_v46 }
0x1aa5   :  { %9385 = vtanh.f32 %v6215_v59 }
0x1aa6   :  { %9387 = vpow2.f32 %v7291_v2 }
0x1aa7   :  { %9389 = vpow2.f32 %v7297_v30 }
0x1aae   :  { %v9384_v61 = vpop.eup %9383 }
0x1aaf   :  { %6390 = vrot.lane.b32.xlu0 %v9384_v61, %s9587_s14  ;;  %v9386_v23 = vpop.eup %9385 }
0x1ab0   :  { %v9388_v20 = vpop.eup %9387 }
0x1ab1   :  { %v6049_v9 = vadd.f32 1.0, %v9388_v20  ;;  %v9390_v28 = vpop.eup %9389 }
0x1ab2   :  { %v6384_v40 = vadd.f32 1.0, %v9390_v28 }
0x1ab3   :  { %6225 = vrot.lane.b32.xlu0 %v9386_v23, %s9587_s14  ;;  %9391 = vrcp.f32 %v6049_v9 }
0x1ab4   :  { %9393 = vpow2.f32 %v7294_v58 }
0x1ab5   :  { %9395 = vrcp.f32 %v6384_v40 }
0x1abd   :  { %v9392_v54 = vpop.eup %9391 }
0x1abe   :  { %v9394_v50 = vpop.eup %9393  ;;  %v6053_v32 = vmul.f32 %v9392_v54, %v10601_v44  ;;  %v6406_v44 = vld [vmem:[#allocation10 + $0xa0] sm:$0xff] }
0x1abf   :  { %v6219_v14 = vadd.f32 1.0, %v9394_v50  ;;  %v9396_v5 = vpop.eup %9395  ;;  %v9043_v29 = vpack.c.bf16 %v6407_v55, %v6406_v44  ;;  %v6830_v44 = vld [vmem:[#allocation10 + $0xd8] sm:$0xff] }
0x1ac0   :  { %v6388_v34 = vmul.f32 %v9396_v5, %v10597_v37 }
0x1ac1   :  { %9397 = vrcp.f32 %v6219_v14  ;;  %9044 = vmatpush3.bf16.msra.mxu0 %v9043_v29 }
0x1ac2   :  { %9045 = vmatprep.subr.bf16.mxu0 %v9584_v0 }
0x1ac5   :  { %9047 = vmatpush3.bf16.msra.mxu0 %v9046_v49 }
0x1ac6   :  { %9054 = vmatprep.subr.bf16.mxu0 %v9584_v0 }
0x1acb   :  { %v9398_v21 = vpop.eup %9397 }
0x1acc   :  { %v6223_v15 = vmul.f32 %v9398_v21, %v10593_v51 }
0x1b11   :  { %v6056_v33 = vpop.permute.xlu1 %6055 }
0x1b12   :  { %v6058_v3 = vmul.f32 %v9392_v54, %v6056_v33 }
0x1b14   :  { %6060 = vrot.lane.b32.xlu0 %v6058_v3, %s9588_s3 }
0x1b21   :  { %v6391_v62 = vpop.permute.xlu0 %6390 }
0x1b22   :  { %v6393_v60 = vmul.f32 %v9396_v5, %v6391_v62 }
0x1b24   :  { %6395 = vrot.lane.b32.xlu1 %v6393_v60, %s9588_s3 }
0x1b25   :  { %v6226_v57 = vpop.permute.xlu0 %6225 }
0x1b26   :  { %v6228_v6 = vmul.f32 %v9398_v21, %v6226_v57 }
0x1b28   :  { %6230 = vrot.lane.b32.xlu1 %v6228_v6, %s9588_s3 }
0x1b86   :  { %v6061_v38 = vpop.permute.xlu0 %6060 }
0x1b87   :  { %v6063_v35 = vadd.f32 %v6061_v38, %v6053_v32 }
0x1b89   :  { %9399 = vtanh.f32 %v6063_v35 }
0x1b93   :  { %v9400_v27 = vpop.eup %9399 }
0x1b94   :  { %6066 = vrot.lane.b32.xlu1 %v9400_v27, %s9587_s14 }
0x1b96   :  { %v6396_v19 = vpop.permute.xlu1 %6395 }
0x1b97   :  { %v10679_v22 = vadd.f32 %v6396_v19, %v6388_v34  ;;  %v6827_v34 = vld [vmem:[#allocation10 + $0xc0] sm:$0xff]  ;;  %v6828_v19 = vld [vmem:[#allocation10 + $0xc8] sm:$0xff] }
0x1b99   :  { %9401 = vtanh.f32 %v10679_v22 }
0x1b9a   :  { %v6231_v42 = vpop.permute.xlu1 %6230 }
0x1b9b   :  { %v10683_v47 = vadd.f32 %v6231_v42, %v6223_v15  ;;  %v9073_v15 = vpack.c.bf16 %v6828_v19, %v6827_v34  ;;  %v6829_v42 = vld [vmem:[#allocation10 + $0xd0] sm:$0xff] }
0x1b9d   :  { %9403 = vtanh.f32 %v10683_v47 }
0x1ba3   :  { %v9402_v37 = vpop.eup %9401 }
0x1ba4   :  { %6401 = vrot.lane.b32.xlu0 %v9402_v37, %s9587_s14 }
0x1ba7   :  { %v9404_v51 = vpop.eup %9403 }
0x1ba8   :  { %6236 = vrot.lane.b32.xlu0 %v9404_v51, %s9587_s14 }
0x1c06   :  { %v6067_v48 = vpop.permute.xlu1 %6066 }
0x1c07   :  { %v6069_v41 = vmul.f32 %v9392_v54, %v6067_v48 }
0x1c16   :  { %v6402_v56 = vpop.permute.xlu0 %6401 }
0x1c17   :  { %v6404_v4 = vmul.f32 %v9396_v5, %v6402_v56 }
0x1c19   :  { %6411 = vrot.lane.b32.xlu1 %v6404_v4, %s9588_s3 }
0x1c1a   :  { %v6237_v11 = vpop.permute.xlu0 %6236 }
0x1c1b   :  { %v6239_v52 = vmul.f32 %v9398_v21, %v6237_v11 }
0x1c1d   :  { %6562 = vrot.lane.b32.xlu1 %v6069_v41, %s9588_s3  ;;  %6487 = vrot.lane.b32.xlu0 %v6239_v52, %s9588_s3  ;;  %v9436_v52 = vld [vmem:[%s10780_s4 + $0x4] ss:$0 sm:$0xff] }
0x1c8b   :  { %v6412_v12 = vpop.permute.xlu1 %6411 }
0x1c8c   :  { %8518 = vmatmul.mubr.msk.f32.vlgmr.msra.gmra.mrb[72].mxu0 %vm108_vm1, %v6412_v12 }
0x1c8d   :  { %9056 = vmatpush3.bf16.msra.mxu0 %v9908_v8  ;;  %8539 = vmatprep.mubr.msk.f32.mxu0 %vm9585_vm0, %v9586_v1 }
0x1c8e   :  { %9057 = vmatprep.subr.bf16.mxu0 %v9584_v0 }
0x1c8f   :  { %v6488_v53 = vpop.permute.xlu0 %6487  ;;  %v6563_v43 = vpop.permute.xlu1 %6562 }
0x1c90   :  { %8529 = vmatmul.mubr.msk.f32.vlgmr.msra.gmra.mrb[72].mxu1 %vm108_vm1, %v6488_v53 }
0x1c91   :  { %9059 = vmatpush3.bf16.msra.mxu0 %v9920_v13  ;;  %9062 = vmatpush3.bf16.msra.mxu1 %v10015_v10 }
0x1c92   :  { %9063 = vmatprep.subr.bf16.mxu1 %v9584_v0  ;;  %9066 = vmatprep.subr.bf16.mxu0 %v9584_v0 }
0x1c93   :  { %8550 = vmatprep.mubr.msk.f32.mxu1 %vm9585_vm0, %v9586_v1 }
0x1c94   :  { %8540 = vmatmul.mubr.msk.f32.vlgmr.msra.gmra.mrb[74].mxu0 %vm108_vm1, %v6563_v43 }
0x1c95   :  { %9065 = vmatpush3.bf16.msra.mxu1 %v10024_v24  ;;  %9068 = vmatpush3.bf16.msra.mxu0 %v10019_v17 }
0x1c96   :  { %9069 = vmatprep.subr.bf16.mxu0 %v9584_v0  ;;  %8561 = vmatprep.mubr.msk.f32.mxu0 %vm9585_vm0, %v9586_v1 }
0x1c97   :  { %9072 = vmatprep.subr.bf16.mxu1 %v9584_v0 }
0x1c98   :  { %8551 = vmatmul.mubr.msk.f32.vlgmr.msra.gmra.mrb[74].mxu1 %vm108_vm1, %v6412_v12 }
0x1c99   :  { %9071 = vmatpush3.bf16.msra.mxu0 %v10031_v25  ;;  %8572 = vmatprep.mubr.msk.f32.mxu1 %vm9585_vm0, %v9586_v1 }
0x1c9a   :  { %9078 = vmatprep.subr.bf16.mxu0 %v9584_v0  ;;  %9074 = vmatpush3.bf16.msra.mxu1 %v9073_v15 }
0x1c9b   :  { %9075 = vmatprep.subr.bf16.mxu1 %v9584_v0 }
0x1c9c   :  { %8562 = vmatmul.mubr.msk.f32.vlgmr.msra.gmra.mrb[76].mxu0 %vm108_vm1, %v6488_v53 }
0x1c9d   :  { %9080 = vmatpush3.bf16.msra.mxu0 %v10015_v10  ;;  %8583 = vmatprep.mubr.msk.f32.mxu0 %vm9585_vm0, %v9586_v1 }
0x1c9e   :  { %9081 = vmatprep.subr.bf16.mxu0 %v9584_v0 }
0x1ca1   :  { %9083 = vmatpush3.bf16.msra.mxu0 %v10024_v24 }
0x1ca2   :  { %9090 = vmatprep.subr.bf16.mxu0 %v9584_v0 }
0x1d5f   :  { %v6481_v8 = vpop.f32.mrb[72].mxu0 }
0x1d60   :  { %v10725_v13 = vadd.f32 %v6481_v8, %v10660_v39  ;;  %v8519_v36 = vpop.f32.mrb[73].mxu0 }
0x1d63   :  { %v6557_v16 = vpop.f32.mrb[72].mxu1 }
0x1d64   :  { %v8530_v26 = vpop.f32.mrb[73].mxu1 }
0x1d67   :  { %v6632_v18 = vpop.f32.mrb[74].mxu0 }
0x1d68   :  { %v6633_v46 = vadd.f32 %v6632_v18, %v6557_v16  ;;  %v8541_v59 = vpop.f32.mrb[75].mxu0 }
0x1d69   :  { %v7079_v59 = vld [vmem:[#allocation10 + $0xe8] sm:$0xff] }
0x1d6a   :  { %v6636_v10 = vadd.f32 %v10668_v63, %v6633_v46  ;;  %v7078_v46 = vld [vmem:[#allocation10 + $0xe0] sm:$0xff] }
0x1d6b   :  { %v6727_v61 = vpop.f32.mrb[74].mxu1 }
0x1d6c   :  { %9405 = vtanh.f32 %v6636_v10  ;;  %v8552_v23 = vpop.f32.mrb[75].mxu1  ;;  %v7301_v58 = vmul.f32 -1.442695, %v6636_v10  ;;  %v7080_v10 = vld [vmem:[#allocation10 + $0xf0] sm:$0xff] }
0x1d6d   :  { %v7081_v23 = vld [vmem:[#allocation10 + $0xf8] sm:$0xff] }
0x1d6f   :  { %v6797_v2 = vpop.f32.mrb[76].mxu0 }
0x1d70   :  { %v6798_v20 = vadd.f32 %v6797_v2, %v6727_v61  ;;  %v8563_v24 = vpop.f32.mrb[77].mxu0  ;;  %v9091_v61 = vpack.c.bf16 %v7079_v59, %v7078_v46  ;;  %v9094_v2 = vpack.c.bf16 %v7081_v23, %v7080_v10 }
0x1d72   :  { %v6801_v30 = vadd.f32 %v10453_v31, %v6798_v20 }
0x1d74   :  { %9407 = vtanh.f32 %v6801_v30  ;;  %v7304_v28 = vmul.f32 -1.442695, %v6801_v30 }
0x1d75   :  { %9409 = vpow2.f32 %v7301_v58  ;;  %v7310_v58 = vld [vmem:[%s10782_s6] ss:$0 sm:$0xff] }
0x1d76   :  { %v9406_v9 = vpop.eup %9405  ;;  %9411 = vpow2.f32 %v7304_v28 }
0x1d77   :  { %6646 = vrot.lane.b32.xlu1 %v9406_v9, %s9587_s14 }
0x1d7e   :  { %v9408_v39 = vpop.eup %9407 }
0x1d7f   :  { %6811 = vrot.lane.b32.xlu0 %v9408_v39, %s9587_s14  ;;  %v9410_v63 = vpop.eup %9409 }
0x1d80   :  { %v6640_v54 = vadd.f32 1.0, %v9410_v63  ;;  %v9412_v33 = vpop.eup %9411 }
0x1d81   :  { %v6805_v3 = vadd.f32 1.0, %v9412_v33 }
0x1d82   :  { %9413 = vrcp.f32 %v6640_v54 }
0x1d83   :  { %9415 = vrcp.f32 %v6805_v3 }
0x1d8c   :  { %v9414_v40 = vpop.eup %9413 }
0x1d8d   :  { %v9416_v14 = vpop.eup %9415  ;;  %v6644_v60 = vmul.f32 %v9414_v40, %v10683_v47  ;;  %v9076_v47 = vpack.c.bf16 %v6830_v44, %v6829_v42 }
0x1d8e   :  { %v6809_v6 = vmul.f32 %v9416_v14, %v10679_v22 }
0x1d8f   :  { %9077 = vmatpush3.bf16.msra.mxu1 %v9076_v47 }
0x1d90   :  { %9084 = vmatprep.subr.bf16.mxu1 %v9584_v0 }
0x1de9   :  { %v6647_v50 = vpop.permute.xlu1 %6646 }
0x1dea   :  { %v6649_v31 = vmul.f32 %v9414_v40, %v6647_v50 }
0x1dec   :  { %6651 = vrot.lane.b32.xlu1 %v6649_v31, %s9588_s3 }
0x1df1   :  { %v6812_v5 = vpop.permute.xlu0 %6811 }
0x1df2   :  { %v6814_v62 = vmul.f32 %v9416_v14, %v6812_v5 }
0x1df4   :  { %6816 = vrot.lane.b32.xlu0 %v6814_v62, %s9588_s3 }
0x1e5e   :  { %v6652_v21 = vpop.permute.xlu1 %6651 }
0x1e5f   :  { %v6654_v57 = vadd.f32 %v6652_v21, %v6644_v60 }
0x1e61   :  { %9417 = vtanh.f32 %v6654_v57 }
0x1e66   :  { %v6817_v32 = vpop.permute.xlu0 %6816 }
0x1e67   :  { %v6819_v38 = vadd.f32 %v6817_v32, %v6809_v6 }
0x1e69   :  { %9419 = vtanh.f32 %v6819_v38 }
0x1e6b   :  { %v9418_v35 = vpop.eup %9417 }
0x1e6c   :  { %6657 = vrot.lane.b32.xlu1 %v9418_v35, %s9587_s14 }
0x1e73   :  { %v9420_v27 = vpop.eup %9419 }
0x1e74   :  { %6822 = vrot.lane.b32.xlu0 %v9420_v27, %s9587_s14 }
0x1ede   :  { %v6658_v22 = vpop.permute.xlu1 %6657 }
0x1edf   :  { %v6660_v55 = vmul.f32 %v9414_v40, %v6658_v22 }
0x1ee1   :  { %6978 = vrot.lane.b32.xlu1 %v6660_v55, %s9588_s3 }
0x1ee6   :  { %v6823_v7 = vpop.permute.xlu0 %6822 }
0x1ee7   :  { %v6825_v29 = vmul.f32 %v9416_v14, %v6823_v7 }
0x1ee9   :  { %6832 = vrot.lane.b32.xlu0 %v6825_v29, %s9588_s3 }
0x1f53   :  { %v6979_v49 = vpop.permute.xlu1 %6978 }
0x1f5b   :  { %v6833_v45 = vpop.permute.xlu0 %6832 }
0x1f5c   :  { %8573 = vmatmul.mubr.msk.f32.vlgmr.msra.gmra.mrb[76].mxu1 %vm108_vm1, %v6833_v45  ;;  %8584 = vmatmul.mubr.msk.f32.vlgmr.msra.gmra.mrb[78].mxu0 %vm108_vm1, %v6833_v45 }
0x1f5d   :  { %9086 = vmatpush3.bf16.msra.mxu1 %v10019_v17  ;;  %8594 = vmatprep.mubr.msk.f32.mxu1 %vm9585_vm0, %v9586_v1 }
0x1f5e   :  { %9087 = vmatprep.subr.bf16.mxu1 %v9584_v0  ;;  %8605 = vmatprep.mubr.msk.f32.mxu0 %vm9585_vm0, %v9586_v1 }
0x1f5f   :  { %9092 = vmatpush3.bf16.msra.mxu0 %v9091_v61 }
0x1f60   :  { %9093 = vmatprep.subr.bf16.mxu0 %v9584_v0 }
0x1f61   :  { %9089 = vmatpush3.bf16.msra.mxu1 %v10031_v25 }
0x1f63   :  { %9095 = vmatpush3.bf16.msra.mxu0 %v9094_v2 }
0x1f64   :  { %8595 = vmatmul.mubr.msk.f32.vlgmr.msra.gmra.mrb[78].mxu1 %vm108_vm1, %v6979_v49 }
0x202f   :  { %v6902_v37 = vpop.f32.mrb[76].mxu1  ;;  %v6973_v51 = vpop.f32.mrb[78].mxu0 }
0x2030   :  { %v6906_v56 = vadd.f32 %v6902_v37, %v10725_v13  ;;  %v8574_v4 = vpop.f32.mrb[77].mxu1  ;;  %v8585_v48 = vpop.f32.mrb[79].mxu0 }
0x2037   :  { %v7048_v17 = vpop.f32.mrb[78].mxu1 }
0x2038   :  { %v7049_v11 = vadd.f32 %v7048_v17, %v6973_v51  ;;  %v8596_v41 = vpop.f32.mrb[79].mxu1 }
0x203a   :  { %v7052_v12 = vadd.f32 %v9436_v52, %v7049_v11 }
0x203c   :  { %9421 = vtanh.f32 %v7052_v12  ;;  %v7308_v25 = vmul.f32 -1.442695, %v7052_v12 }
0x203e   :  { %9423 = vpow2.f32 %v7308_v25 }
0x2046   :  { %v9422_v1 = vpop.eup %9421 }
0x2047   :  { %7062 = vrot.lane.b32.xlu0 %v9422_v1, %s9587_s14 }
0x2048   :  { %v9424_v53 = vpop.eup %9423 }
0x2049   :  { %v7056_v43 = vadd.f32 1.0, %v9424_v53 }
0x204b   :  { %9425 = vrcp.f32 %v7056_v43 }
0x2055   :  { %v9426_v8 = vpop.eup %9425 }
0x2056   :  { %v7060_v16 = vmul.f32 %v9426_v8, %v6819_v38 }
0x20b9   :  { %v7063_v13 = vpop.permute.xlu0 %7062 }
0x20ba   :  { %v7065_v36 = vmul.f32 %v9426_v8, %v7063_v13 }
0x20bc   :  { %7067 = vrot.lane.b32.xlu1 %v7065_v36, %s9588_s3 }
0x212e   :  { %v7068_v26 = vpop.permute.xlu1 %7067 }
0x212f   :  { %v7070_v18 = vadd.f32 %v7068_v26, %v7060_v16 }
0x2131   :  { %9427 = vtanh.f32 %v7070_v18 }
0x213b   :  { %v9428_v20 = vpop.eup %9427 }
0x213c   :  { %7073 = vrot.lane.b32.xlu0 %v9428_v20, %s9587_s14  ;;  %s9547_s14 = scalar_lea.vmem %s7174_s27, 32 }
0x213d   :  { %p9548_p12 = scmp.ne.s32.totalorder %s7174_s27, %s9547_s14  ;;  %p9553_p0 = scmp.lt.s32.totalorder %s9547_s14, %s9547_s14 }
0x213f   :  { %p9554_p1 = por %p9553_p0, %p9552_p13 }
0x2141   :  { %p9555_p2 = pnand %p9554_p1, %p9548_p12 }
0x21ae   :  { %v7074_v24 = vpop.permute.xlu0 %7073 }
0x21af   :  { %v7076_v30 = vmul.f32 %v9426_v8, %v7074_v24 }
0x21b1   :  { %7083 = vrot.lane.b32.xlu1 %v7076_v30, %s9588_s3 }
0x2223   :  { %v7084_v9 = vpop.permute.xlu1 %7083 }
0x2224   :  { %8606 = vmatmul.mubr.msk.f32.vlgmr.msra.gmra.mrb[80].mxu0 %vm108_vm1, %v7084_v9 }
0x22f7   :  { %v7153_v39 = vpop.f32.mrb[80].mxu0 }
0x22f8   :  { %v7157_v28 = vadd.f32 %v7153_v39, %v6906_v56  ;;  %v8607_v0 = vpop.f32.mrb[81].mxu0 }
0x22fa   :  { %v7165_v63 = vadd.f32 %v7310_v58, %v7157_v28 }
0x22fc   :  { %7166 = vst [vmem:[#allocation11] sm:$0x3] %v7165_v63 }
0x22fd   :  { %9558 = shalt.err (!%p9555_p2)
}
0x22fe   :  { %s9559_s18 = scalar_lea.hbm %s10783_s7, 32 }
0x22ff   :  { %p9560_p3 = scmp.ne.s32.totalorder %s10783_s7, %s9559_s18  ;;  %p9563_p4 = scmp.lt.u32.totalorder %s9559_s18, %s10783_s7 }
0x2301   :  { %p9565_p5 = pnand %p9563_p4, %p9560_p3 }
0x2303   :  { %9568 = shalt.err (!%p9565_p5)
}
0x2304   :  { %7176 = dma.vmem_to_hbm [thread:$0]  %s7174_s27, 32, %s10783_s7, [#allocation4]  }
0x2305   :  { %9575 = dma.done.wait [#allocation4], 32  }
0x2306   :  { %9576 = vsyncadd [#allocation4], 4294967264 }
0x2307   :  { %7180 = vsyncpa [#allocation3], 1 }
0x2308   :  { %7181 = vsyncpa [#allocation6], 1 }
0x2309   :  { %7182 = vsyncpa [#allocation9], 1 }
0x230a   :  { %7183 = vsyncpa [#allocation4], 1 }

</bundles_post_ra>
